<compile_context>
chip_gen: v7x
topology: tpu7x:2x2x1
jax: 0.10.0
libtpu: 0.0.40
codegen_flags: <defaults>
</compile_context>

<pallas_src>
import functools

import numpy as np
import jax
import jax.numpy as jnp
from jax.experimental import pallas as pl
from jax.experimental.pallas import tpu as pltpu


# ----------------------------------------------------------------------------
# Constant tables (DCT matrix, frequency band base filters) -- plain numpy.
# ----------------------------------------------------------------------------
def dct_mat(size):
    m = np.zeros((size, size), dtype=np.float32)
    for i in range(size):
        scale = np.sqrt(1.0 / size) if i == 0 else np.sqrt(2.0 / size)
        for j in range(size):
            m[i, j] = scale * np.cos((j + 0.5) * np.pi * i / size)
    return m


def fad_base_filters(size):
    i_idx = np.arange(size)[:, None]
    j_idx = np.arange(size)[None, :]
    s = i_idx + j_idx
    low = (s <= size // 16).astype(np.float32)
    middle = ((s > size // 16) & (s <= size // 8)).astype(np.float32)
    high = (s > size // 8).astype(np.float32)
    return np.stack([low, middle, high], axis=0)  # (3, size, size)


def norm_sigma(x):
    # (1 - exp(-x)) / (1 + exp(-x)) == tanh(x/2): single EUP op, no inf/inf NaN.
    return jnp.tanh(0.5 * x)


# ----------------------------------------------------------------------------
# Pallas kernels
# ----------------------------------------------------------------------------
def fad_kernel(x_ref, d_ref, dt_ref, m_ref, o_ref):
    """All C planes of one batch element: DCT -> 3 band masks -> inverse DCT."""
    _, c, h, w = x_ref.shape
    x = x_ref[0]                   # (C, H, W)
    d = d_ref[...]                 # (H, H)   DCT matrix
    dt = dt_ref[...]               # (H, H)   DCT^T
    masks = m_ref[...]             # (3, H, W) band filters

    # Forward 2-D DCT over all C planes:  xf = D @ x @ D^T
    #   right part: one flat lane-dense matmul (C*H, W) @ (W, W)
    #   left part : batched matmul over the C planes (no transposes)
    u = jnp.dot(x.reshape(c * h, w), dt,
                preferred_element_type=jnp.float32).reshape(c, h, w)
    xf = jnp.einsum('bij,bjk->bik', jnp.broadcast_to(d, (c, h, h)), u,
                    preferred_element_type=jnp.float32)           # (C, H, W)

    # Apply all 3 band filters at once and fuse the 3*C inverse DCTs into
    # one batched matmul + one flat (3*C*H, W) lane-dense matmul.
    masked = (masks[:, None, :, :] * xf[None, :, :, :]).reshape(3 * c, h, w)
    v = jnp.einsum('bij,bjk->bik', jnp.broadcast_to(dt, (3 * c, h, h)), masked,
                   preferred_element_type=jnp.float32)            # (3C, H, W)
    y = jnp.dot(v.reshape(3 * c * h, w), d,
                preferred_element_type=jnp.float32)               # (3C*H, W)

    # Band-major layout: free reshape to (N, 3C, H, W) outside the kernel.
    o_ref[0] = y.reshape(3, c, h, w)


def proj_head_kernel(p_ref, w_ref, fcw_ref, fcb_ref, o_ref, acc_ref, *, inv_count):
    """Fused (stem conv + 1x1 projection) matmul -> ReLU -> mean pool -> fc."""
    mb = pl.program_id(1)

    @pl.when(mb == 0)
    def _():
        acc_ref[...] = jnp.zeros_like(acc_ref)

    # (TM, 81)bf16 @ (81, 2048)bf16 with f32 accumulation.
    feat = jnp.dot(p_ref[0], w_ref[...], preferred_element_type=jnp.float32)
    feat = jnp.maximum(feat, 0.0)                        # relu (zero pad rows stay 0)
    acc_ref[...] += jnp.sum(feat, axis=0, keepdims=True)  # (1, 2048) pooled sum

    @pl.when(mb == pl.num_programs(1) - 1)
    def _():
        pooled = acc_ref[...] * inv_count                # mean over true Ho*Wo
        # fc(2048 -> 1) as a VPU reduction: avoids a 1-wide MXU output / masked stores.
        logit = jnp.sum(pooled * fcw_ref[...], axis=-1, keepdims=True) + fcb_ref[...]
        o_ref[0] = logit                                 # (1, 1)


# ----------------------------------------------------------------------------
# Wrappers calling pallas_call
# ----------------------------------------------------------------------------
def fad_branch(x, dct, dct_t, masks):
    """x: (N, C, H, W) -> (N, 3*C, H, W), channel order [low(C), mid(C), high(C)]."""
    n, c, h, w = x.shape
    out = pl.pallas_call(
        fad_kernel,
        out_shape=jax.ShapeDtypeStruct((n, 3, c, h, w), jnp.float32),
        grid=(n,),
        in_specs=[
            pl.BlockSpec((1, c, h, w), lambda i: (i, 0, 0, 0)),
            pl.BlockSpec((h, h), lambda i: (0, 0)),
            pl.BlockSpec((h, h), lambda i: (0, 0)),
            pl.BlockSpec((3, h, h), lambda i: (0, 0, 0)),
        ],
        out_specs=pl.BlockSpec((1, 3, c, h, w), lambda i: (i, 0, 0, 0, 0)),
        compiler_params=pltpu.CompilerParams(dimension_semantics=("parallel",)),
    )(x, dct, dct_t, masks)
    # (N, 3, C, H, W) -> (N, 3C, H, W): pure reshape, matches torch.cat(dim=1).
    return out.reshape(n, 3 * c, h, w)


def im2col(x, k=3, stride=2):
    """NCHW -> (N, Ho*Wo, C*k*k) patch matrix (pad=0). Pure glue (slicing)."""
    n, c, h, w = x.shape
    ho = (h - k) // stride + 1
    wo = (w - k) // stride + 1
    cols = []
    for kh in range(k):
        for kw in range(k):
            cols.append(x[:, :, kh:kh + stride * ho:stride,
                          kw:kw + stride * wo:stride])   # (N, C, Ho, Wo)
    cols = jnp.stack(cols, axis=2)                        # (N, C, k*k, Ho, Wo)
    cols = cols.reshape(n, c * k * k, ho * wo).transpose(0, 2, 1)
    return cols, ho, wo


def projection_head(patches, combined_w, fc_w, fc_b, *, hw_true, tm=128,
                    use_bf16=True):
    """patches: (N, HoWo, 81) -> logits (N, 1).

    One Pallas call: tiled over HoWo (tm rows / step; tune per generation --
    larger on v5e/v6e 128 MiB VMEM, smaller on v7x 64 MiB), with a VMEM f32
    accumulator for the ReLU+mean pool and the fc done as a VPU reduction.
    """
    n, m, kk = patches.shape
    cf = combined_w.shape[1]
    n_mb = int(pl.cdiv(m, tm))
    m_pad = n_mb * tm
    if m_pad != m:
        # zero pad rows contribute exactly 0 to the pooled sum.
        patches = jnp.pad(patches, ((0, 0), (0, m_pad - m), (0, 0)))
    if use_bf16:
        patches = patches.astype(jnp.bfloat16)
        combined_w = combined_w.astype(jnp.bfloat16)

    kernel = functools.partial(proj_head_kernel, inv_count=1.0 / float(hw_true))
    out = pl.pallas_call(
        kernel,
        out_shape=jax.ShapeDtypeStruct((n, 1, 1), jnp.float32),
        grid=(n, n_mb),
        in_specs=[
            pl.BlockSpec((1, tm, kk), lambda i, j: (i, j, 0)),
            pl.BlockSpec((kk, cf), lambda i, j: (0, 0)),
            pl.BlockSpec((1, cf), lambda i, j: (0, 0)),
            pl.BlockSpec((1, 1), lambda i, j: (0, 0)),
        ],
        out_specs=pl.BlockSpec((1, 1, 1), lambda i, j: (i, 0, 0)),
        scratch_shapes=[pltpu.VMEM((1, cf), jnp.float32)],
        compiler_params=pltpu.CompilerParams(
            dimension_semantics=("parallel", "arbitrary")),
    )(patches, combined_w, fc_w, fc_b)
    return out.reshape(n, 1)


# ----------------------------------------------------------------------------
# Full forward (mode='FAD')
# ----------------------------------------------------------------------------
def f3net_fad_forward(x, params, *, use_bf16=True):
    # _FAD: masks = base_filter + norm_sigma(w_filter)  (elementwise glue)
    masks = params["fad_base"] + norm_sigma(params["fad_w"])          # (3, H, H)
    fea = fad_branch(x, params["dct"], params["dct_t"], masks)        # (N, 9, H, W)

    # xcep_FAD.conv1: Conv2d(9, 32, 3, stride=2, pad=0, bias=False) via im2col.
    patches, ho, wo = im2col(fea, k=3, stride=2)                      # (N, HoWo, 81)
    w_stem = params["conv1_w"].reshape(32, -1).T                      # (81, 32)

    # TODO(synk): Xception blocks 1-12 / conv2-4 / bn not available in the
    # given source; deterministic linear 32->2048 projection used as stand-in.
    # Because the stand-in is linear, it is folded into the stem conv weight
    # (one (81, 2048) matmul) -- revisit once the real nonlinear blocks land.
    combined_w = jnp.dot(w_stem, params["proj_w"])                    # (81, 2048)

    # _norm_fea (relu + adaptive_avg_pool2d(1,1) + flatten) + dropout(identity) + fc
    logits = projection_head(patches, combined_w, params["fc_w"], params["fc_b"],
                             hw_true=ho * wo, use_bf16=use_bf16)      # (N, 1)
    return logits


def make_params(img_size, key):
    k1, k2, k3, k4 = jax.random.split(key, 4)
    dct = jnp.asarray(dct_mat(img_size))
    params = {
        "dct": dct,
        "dct_t": dct.T,
        "fad_base": jnp.asarray(fad_base_filters(img_size)),
        # F_w_filters zero-initialized (as in init_filters())
        "fad_w": jnp.zeros((3, img_size, img_size), jnp.float32),
        # conv1.weight.data.normal_(0.0, 0.02)
        "conv1_w": 0.02 * jax.random.normal(k1, (32, 9, 3, 3), jnp.float32),
        # stand-in pointwise projection 32 -> 2048
        "proj_w": 0.02 * jax.random.normal(k2, (32, 2048), jnp.float32),
        # nn.Linear(2048, 1): weight (1, 2048), bias (1,); uniform(+-1/sqrt(2048))
        "fc_w": jax.random.uniform(k3, (1, 2048), jnp.float32,
                                   -1.0 / np.sqrt(2048), 1.0 / np.sqrt(2048)),
        "fc_b": jax.random.uniform(k4, (1, 1), jnp.float32,
                                   -1.0 / np.sqrt(2048), 1.0 / np.sqrt(2048)),
    }
    return params


if __name__ == "__main__":
    IMG = 32          # small square image (module requires img_width == img_height)
    N, C = 2, 3       # C must be 3: FAD outputs 3*C = 9 channels feeding conv1(9, ...)

    key = jax.random.PRNGKey(0)
    kx, kp = jax.random.split(key)
    x = jax.random.normal(kx, (N, C, IMG, IMG), jnp.float32)
    params = make_params(IMG, kp)

    out = jax.jit(f3net_fad_forward)(x, params)
    out = jax.block_until_ready(out)
    assert out.shape == (N, 1) and out.dtype == jnp.float32
    print("KERNEL_OK")
</pallas_src>

<mosaic_0001>
module attributes {stable_mosaic.version = 11 : i64} {
  func.func @fad_kernel(%arg0: i32, %arg1: memref<1x3x32x32xf32, #tpu.memory_space<vmem>>, %arg2: memref<32x32xf32, #tpu.memory_space<vmem>>, %arg3: memref<32x32xf32, #tpu.memory_space<vmem>>, %arg4: memref<3x32x32xf32, #tpu.memory_space<vmem>>, %arg5: memref<1x3x3x32x32xf32, #tpu.memory_space<vmem>>) attributes {dimension_semantics = [#tpu.dimension_semantics<parallel>], iteration_bounds = array<i64: 2>, scalar_prefetch = 0 : i64, scratch_operands = 0 : i64, tpu.core_type = #tpu.core_type<tc>, window_params = [{transform_indices = @transform_0, window_bounds = array<i64: 1, 3, 32, 32>}, {pipeline_mode = #tpu.pipeline_mode<synchronous>, transform_indices = @transform_1, window_bounds = array<i64: 32, 32>}, {pipeline_mode = #tpu.pipeline_mode<synchronous>, transform_indices = @transform_2, window_bounds = array<i64: 32, 32>}, {pipeline_mode = #tpu.pipeline_mode<synchronous>, transform_indices = @transform_3, window_bounds = array<i64: 3, 32, 32>}, {transform_indices = @transform_4, window_bounds = array<i64: 1, 3, 3, 32, 32>}]} {
    %c0 = arith.constant 0 : index
    %c0_0 = arith.constant 0 : index
    %c0_1 = arith.constant 0 : index
    %c0_2 = arith.constant 0 : index
    %0 = vector.load %arg1[%c0, %c0_0, %c0_1, %c0_2] : memref<1x3x32x32xf32, #tpu.memory_space<vmem>>, vector<1x3x32x32xf32>
    %1 = vector.shape_cast %0 : vector<1x3x32x32xf32> to vector<3x32x32xf32>
    %c0_3 = arith.constant 0 : index
    %c0_4 = arith.constant 0 : index
    %2 = vector.load %arg2[%c0_3, %c0_4] : memref<32x32xf32, #tpu.memory_space<vmem>>, vector<32x32xf32>
    %c0_5 = arith.constant 0 : index
    %c0_6 = arith.constant 0 : index
    %3 = vector.load %arg3[%c0_5, %c0_6] : memref<32x32xf32, #tpu.memory_space<vmem>>, vector<32x32xf32>
    %c0_7 = arith.constant 0 : index
    %c0_8 = arith.constant 0 : index
    %c0_9 = arith.constant 0 : index
    %4 = vector.load %arg4[%c0_7, %c0_8, %c0_9] : memref<3x32x32xf32, #tpu.memory_space<vmem>>, vector<3x32x32xf32>
    %5 = vector.shape_cast %1 : vector<3x32x32xf32> to vector<96x32xf32>
    %cst = arith.constant dense<0.000000e+00> : vector<96x32xf32>
    %6 = tpu.matmul %5, %3, %cst {dimension_numbers = #tpu.dot_dimension_numbers<[1], [0], [0], [1], [0, 0, 1, 1], [], []>} : vector<96x32xf32>, vector<32x32xf32>, vector<96x32xf32> -> vector<96x32xf32>
    %7 = vector.shape_cast %6 : vector<96x32xf32> to vector<3x32x32xf32>
    %8 = vector.shape_cast %2 : vector<32x32xf32> to vector<1x32x32xf32>
    %9 = vector.broadcast %8 : vector<1x32x32xf32> to vector<3x32x32xf32>
    "tpu.trace_start"() <{level = 10 : i32, message = "bij,bjk->bik"}> : () -> ()
    %cst_10 = arith.constant dense<0.000000e+00> : vector<3x32x32xf32>
    %10 = tpu.matmul %9, %7, %cst_10 {dimension_numbers = #tpu.dot_dimension_numbers<[2], [1], [1], [2], [0, 0, 0, 1, 1, 2], [0], [0]>} : vector<3x32x32xf32>, vector<3x32x32xf32>, vector<3x32x32xf32> -> vector<3x32x32xf32>
    "tpu.trace_stop"() : () -> ()
    %11 = vector.shape_cast %4 : vector<3x32x32xf32> to vector<3x1x32x32xf32>
    %12 = vector.shape_cast %10 : vector<3x32x32xf32> to vector<1x3x32x32xf32>
    %13 = vector.broadcast %11 : vector<3x1x32x32xf32> to vector<3x3x32x32xf32>
    %14 = vector.broadcast %12 : vector<1x3x32x32xf32> to vector<3x3x32x32xf32>
    %15 = arith.mulf %13, %14 : vector<3x3x32x32xf32>
    %16 = vector.shape_cast %15 : vector<3x3x32x32xf32> to vector<9x32x32xf32>
    %17 = vector.shape_cast %3 : vector<32x32xf32> to vector<1x32x32xf32>
    %18 = vector.broadcast %17 : vector<1x32x32xf32> to vector<9x32x32xf32>
    "tpu.trace_start"() <{level = 10 : i32, message = "bij,bjk->bik"}> : () -> ()
    %cst_11 = arith.constant dense<0.000000e+00> : vector<9x32x32xf32>
    %19 = tpu.matmul %18, %16, %cst_11 {dimension_numbers = #tpu.dot_dimension_numbers<[2], [1], [1], [2], [0, 0, 0, 1, 1, 2], [0], [0]>} : vector<9x32x32xf32>, vector<9x32x32xf32>, vector<9x32x32xf32> -> vector<9x32x32xf32>
    "tpu.trace_stop"() : () -> ()
    %20 = vector.shape_cast %19 : vector<9x32x32xf32> to vector<288x32xf32>
    %cst_12 = arith.constant dense<0.000000e+00> : vector<288x32xf32>
    %21 = tpu.matmul %20, %2, %cst_12 {dimension_numbers = #tpu.dot_dimension_numbers<[1], [0], [0], [1], [0, 0, 1, 1], [], []>} : vector<288x32xf32>, vector<32x32xf32>, vector<288x32xf32> -> vector<288x32xf32>
    %22 = vector.shape_cast %21 : vector<288x32xf32> to vector<3x3x32x32xf32>
    %c0_13 = arith.constant 0 : index
    %c0_14 = arith.constant 0 : index
    %c0_15 = arith.constant 0 : index
    %c0_16 = arith.constant 0 : index
    %c0_17 = arith.constant 0 : index
    %23 = vector.load %arg5[%c0_13, %c0_14, %c0_15, %c0_16, %c0_17] : memref<1x3x3x32x32xf32, #tpu.memory_space<vmem>>, vector<1x3x3x32x32xf32>
    %24 = vector.shape_cast %23 : vector<1x3x3x32x32xf32> to vector<3x3x32x32xf32>
    %25 = vector.shape_cast %22 : vector<3x3x32x32xf32> to vector<1x3x3x32x32xf32>
    tpu.vector_store %arg5[%c0_13, %c0_14, %c0_15, %c0_16, %c0_17], %25 {strides = array<i32>} : memref<1x3x3x32x32xf32, #tpu.memory_space<vmem>>, vector<1x3x3x32x32xf32>,
    return
  }
  func.func @transform_0(%arg0: i32) -> (i32, i32, i32, i32) {
    %c0_i32 = arith.constant 0 : i32
    %c0_i32_0 = arith.constant 0 : i32
    %c0_i32_1 = arith.constant 0 : i32
    %c0_i32_2 = arith.constant 0 : i32
    return %arg0, %c0_i32, %c0_i32_0, %c0_i32_1 : i32, i32, i32, i32
  }
  func.func @transform_1(%arg0: i32) -> (i32, i32) {
    %c0_i32 = arith.constant 0 : i32
    %c0_i32_0 = arith.constant 0 : i32
    %c0_i32_1 = arith.constant 0 : i32
    return %c0_i32, %c0_i32_0 : i32, i32
  }
  func.func @transform_2(%arg0: i32) -> (i32, i32) {
    %c0_i32 = arith.constant 0 : i32
    %c0_i32_0 = arith.constant 0 : i32
    %c0_i32_1 = arith.constant 0 : i32
    return %c0_i32, %c0_i32_0 : i32, i32
  }
  func.func @transform_3(%arg0: i32) -> (i32, i32, i32) {
    %c0_i32 = arith.constant 0 : i32
    %c0_i32_0 = arith.constant 0 : i32
    %c0_i32_1 = arith.constant 0 : i32
    %c0_i32_2 = arith.constant 0 : i32
    return %c0_i32, %c0_i32_0, %c0_i32_1 : i32, i32, i32
  }
  func.func @transform_4(%arg0: i32) -> (i32, i32, i32, i32, i32) {
    %c0_i32 = arith.constant 0 : i32
    %c0_i32_0 = arith.constant 0 : i32
    %c0_i32_1 = arith.constant 0 : i32
    %c0_i32_2 = arith.constant 0 : i32
    %c0_i32_3 = arith.constant 0 : i32
    return %arg0, %c0_i32, %c0_i32_0, %c0_i32_1, %c0_i32_2 : i32, i32, i32, i32, i32
  }
}

module attributes {stable_mosaic.version = 11 : i64} {
  func.func @proj_head_kernel(%arg0: i32, %arg1: i32, %arg2: memref<1x128x81xbf16, #tpu.memory_space<vmem>>, %arg3: memref<81x2048xbf16, #tpu.memory_space<vmem>>, %arg4: memref<1x2048xf32, #tpu.memory_space<vmem>>, %arg5: memref<1x1xf32, #tpu.memory_space<vmem>>, %arg6: memref<1x1x1xf32, #tpu.memory_space<vmem>>, %arg7: memref<1x2048xf32, #tpu.memory_space<vmem>>) attributes {dimension_semantics = [#tpu.dimension_semantics<parallel>, #tpu.dimension_semantics<arbitrary>], iteration_bounds = array<i64: 2, 2>, scalar_prefetch = 0 : i64, scratch_operands = 1 : i64, tpu.core_type = #tpu.core_type<tc>, window_params = [{transform_indices = @transform_0, window_bounds = array<i64: 1, 128, 81>}, {pipeline_mode = #tpu.pipeline_mode<synchronous>, transform_indices = @transform_1, window_bounds = array<i64: 81, 2048>}, {pipeline_mode = #tpu.pipeline_mode<synchronous>, transform_indices = @transform_2, window_bounds = array<i64: 1, 2048>}, {pipeline_mode = #tpu.pipeline_mode<synchronous>, transform_indices = @transform_3, window_bounds = array<i64: 1, 1>}, {transform_indices = @transform_4, window_bounds = array<i64: 1, 1, 1>}]} {
    %c0_i32 = arith.constant 0 : i32
    %0 = arith.cmpi eq, %arg1, %c0_i32 : i32
    %1 = arith.extui %0 : i1 to i32
    %c0_i32_0 = arith.constant 0 : i32
    %2 = arith.cmpi ne, %1, %c0_i32_0 : i32
    scf.if %2 {
      %cst_12 = arith.constant 0.000000e+00 : f32
      %17 = vector.broadcast %cst_12 : f32 to vector<1x2048xf32>
      %c0_13 = arith.constant 0 : index
      %c0_14 = arith.constant 0 : index
      %18 = vector.load %arg7[%c0_13, %c0_14] : memref<1x2048xf32, #tpu.memory_space<vmem>>, vector<1x2048xf32>
      tpu.vector_store %arg7[%c0_13, %c0_14], %17 {strides = array<i32>} : memref<1x2048xf32, #tpu.memory_space<vmem>>, vector<1x2048xf32>,
    } else {
    }
    %c0 = arith.constant 0 : index
    %c0_1 = arith.constant 0 : index
    %c0_2 = arith.constant 0 : index
    %3 = vector.load %arg2[%c0, %c0_1, %c0_2] : memref<1x128x81xbf16, #tpu.memory_space<vmem>>, vector<1x128x81xbf16>
    %4 = vector.shape_cast %3 : vector<1x128x81xbf16> to vector<128x81xbf16>
    %c0_3 = arith.constant 0 : index
    %c0_4 = arith.constant 0 : index
    %5 = vector.load %arg3[%c0_3, %c0_4] : memref<81x2048xbf16, #tpu.memory_space<vmem>>, vector<81x2048xbf16>
    %cst = arith.constant dense<0.000000e+00> : vector<128x2048xf32>
    %6 = tpu.matmul %4, %5, %cst {dimension_numbers = #tpu.dot_dimension_numbers<[1], [0], [0], [1], [0, 0, 1, 1], [], []>} : vector<128x81xbf16>, vector<81x2048xbf16>, vector<128x2048xf32> -> vector<128x2048xf32>
    %cst_5 = arith.constant 0.000000e+00 : f32
    %7 = vector.broadcast %cst_5 : f32 to vector<128x2048xf32>
    %8 = arith.maximumf %6, %7 : vector<128x2048xf32>
    %c0_6 = arith.constant 0 : index
    %c0_7 = arith.constant 0 : index
    %9 = vector.load %arg7[%c0_6, %c0_7] : memref<1x2048xf32, #tpu.memory_space<vmem>>, vector<1x2048xf32>
    %cst_8 = arith.constant dense<0.000000e+00> : vector<2048xf32>
    %10 = vector.multi_reduction <add>, %8, %cst_8 [0] : vector<128x2048xf32> to vector<2048xf32>
    %11 = vector.shape_cast %10 : vector<2048xf32> to vector<1x2048xf32>
    %12 = arith.addf %9, %11 : vector<1x2048xf32>
    %c0_9 = arith.constant 0 : index
    %c0_10 = arith.constant 0 : index
    %13 = vector.load %arg7[%c0_9, %c0_10] : memref<1x2048xf32, #tpu.memory_space<vmem>>, vector<1x2048xf32>
    tpu.vector_store %arg7[%c0_9, %c0_10], %12 {strides = array<i32>} : memref<1x2048xf32, #tpu.memory_space<vmem>>, vector<1x2048xf32>,
    %c1_i32 = arith.constant 1 : i32
    %14 = arith.cmpi eq, %arg1, %c1_i32 : i32
    %15 = arith.extui %14 : i1 to i32
    %c0_i32_11 = arith.constant 0 : i32
    %16 = arith.cmpi ne, %15, %c0_i32_11 : i32
    scf.if %16 {
      %c0_12 = arith.constant 0 : index
      %c0_13 = arith.constant 0 : index
      %17 = vector.load %arg7[%c0_12, %c0_13] : memref<1x2048xf32, #tpu.memory_space<vmem>>, vector<1x2048xf32>
      %cst_14 = arith.constant 0.00444444455 : f32
      %18 = vector.broadcast %cst_14 : f32 to vector<1x2048xf32>
      %19 = arith.mulf %17, %18 : vector<1x2048xf32>
      %c0_15 = arith.constant 0 : index
      %c0_16 = arith.constant 0 : index
      %20 = vector.load %arg4[%c0_15, %c0_16] : memref<1x2048xf32, #tpu.memory_space<vmem>>, vector<1x2048xf32>
      %21 = arith.mulf %19, %20 : vector<1x2048xf32>
      %cst_17 = arith.constant dense<0.000000e+00> : vector<1xf32>
      %22 = vector.multi_reduction <add>, %21, %cst_17 [1] : vector<1x2048xf32> to vector<1xf32>
      %23 = vector.shape_cast %22 : vector<1xf32> to vector<1x1xf32>
      %c0_18 = arith.constant 0 : index
      %c0_19 = arith.constant 0 : index
      %24 = vector.load %arg5[%c0_18, %c0_19] : memref<1x1xf32, #tpu.memory_space<vmem>>, vector<1x1xf32>
      %25 = arith.addf %23, %24 : vector<1x1xf32>
      %c0_20 = arith.constant 0 : index
      %c0_21 = arith.constant 0 : index
      %c0_22 = arith.constant 0 : index
      %26 = vector.load %arg6[%c0_20, %c0_21, %c0_22] : memref<1x1x1xf32, #tpu.memory_space<vmem>>, vector<1x1x1xf32>
      %27 = vector.shape_cast %26 : vector<1x1x1xf32> to vector<1x1xf32>
      %28 = vector.shape_cast %25 : vector<1x1xf32> to vector<1x1x1xf32>
      tpu.vector_store %arg6[%c0_20, %c0_21, %c0_22], %28 {strides = array<i32>} : memref<1x1x1xf32, #tpu.memory_space<vmem>>, vector<1x1x1xf32>,
    } else {
    }
    return
  }
  func.func @transform_0(%arg0: i32, %arg1: i32) -> (i32, i32, i32) {
    %c0_i32 = arith.constant 0 : i32
    %c0_i32_0 = arith.constant 0 : i32
    return %arg0, %arg1, %c0_i32 : i32, i32, i32
  }
  func.func @transform_1(%arg0: i32, %arg1: i32) -> (i32, i32) {
    %c0_i32 = arith.constant 0 : i32
    %c0_i32_0 = arith.constant 0 : i32
    %c0_i32_1 = arith.constant 0 : i32
    return %c0_i32, %c0_i32_0 : i32, i32
  }
  func.func @transform_2(%arg0: i32, %arg1: i32) -> (i32, i32) {
    %c0_i32 = arith.constant 0 : i32
    %c0_i32_0 = arith.constant 0 : i32
    %c0_i32_1 = arith.constant 0 : i32
    return %c0_i32, %c0_i32_0 : i32, i32
  }
  func.func @transform_3(%arg0: i32, %arg1: i32) -> (i32, i32) {
    %c0_i32 = arith.constant 0 : i32
    %c0_i32_0 = arith.constant 0 : i32
    %c0_i32_1 = arith.constant 0 : i32
    return %c0_i32, %c0_i32_0 : i32, i32
  }
  func.func @transform_4(%arg0: i32, %arg1: i32) -> (i32, i32, i32) {
    %c0_i32 = arith.constant 0 : i32
    %c0_i32_0 = arith.constant 0 : i32
    %c0_i32_1 = arith.constant 0 : i32
    return %arg0, %c0_i32, %c0_i32_0 : i32, i32, i32
  }
}

</mosaic_0001>

<bundles_post_ra>
// kernel: f3net_fad_forward.2
= control target key start
LH: loop header
LB: loop body
LE: loop exit
PB: predicated region body
PF: predicated region fallthrough
CT: control target
= control target key end

     0   :  { %s2588_s15 = smov 0   ;;  %s2995_s0 = inlined_call_operand.vmem [shape: f32[2,3,32,32], index: 0, kind: input, shape index: {}]   ;;  %s2996_s1 = inlined_call_operand.vmem [shape: f32[32,32], index: 1, kind: input, shape index: {}]   ;;  %s2997_s2 = inlined_call_operand.vmem [shape: f32[32,32], index: 2, kind: input, shape index: {}]   ;;  %s2998_s3 = inlined_call_operand.vmem [shape: f32[3,32,32], index: 3, kind: input, shape index: {}]   ;;  %s2999_s4 = inlined_call_operand.vmem [shape: f32[2,3,3,32,32], index: 4, kind: output, shape index: {}]  }
   0x1 LB: > { %s1916_s16 = sadd.s32 4294967295, %s2561_s15   ;;  %p1920_p0 = scmp.ge.s32.totalorder %s2561_s15, 1  ;;  %s2561_s15 = sphi %s2588_s15, %s14_s15  }
   0x2   : > { %p162_p1 = scmp.lt.s32.totalorder %s2561_s15, 3 }
   0x4   : > { %p163_p2 = pnand %p1920_p0, %p162_p1 }
   0x5   : > { %v2599_v0 = vld [vmem:[%s2997_s2] sm:$0xff] (!%p163_p2)  ;;  %v2604_v1 = vld [vmem:[%s2997_s2 + $0x8] sm:$0xff] (!%p163_p2)  ;;  %v2609_v2 = vld [vmem:[%s2997_s2 + $0x10] sm:$0xff] (!%p163_p2)  ;;  %p188_p3 = scmp.lt.s32.totalorder (!%p163_p2), %s1916_s16, 1  ;;  %vm230_vm0 = vcmask (!%p163_p2), 261120  }
   0x6   : > { %166 = sbr.rel (%p163_p2) target bundleno = 955 (0x3bb), region = 36  ;;  %v2429_v3 = vpack.c.bf16 (!%p163_p2), %v2604_v1, %v2599_v0  ;;  %v2616_v4 = vld [vmem:[%s2997_s2 + $0x18] sm:$0xff] (!%p163_p2)  ;;  %v2643_v18 = vld [vmem:[%s2996_s1] sm:$0xff] (!%p163_p2)  ;;  %v2650_v27 = vld [vmem:[%s2996_s1 + $0x8] sm:$0xff] (!%p163_p2) }
   0x7   : > { %v2433_v5 = vpack.c.bf16 (!%p163_p2), %v2616_v4, %v2609_v2  ;;  %2207 = vmatprep.mubr.msk.f32.mxu1 (!%p163_p2), %vm230_vm0, %v2643_v18  ;;  %v2655_v29 = vld [vmem:[%s2996_s1 + $0x10] sm:$0xff] (!%p163_p2)  ;;  %v2664_v32 = vld [vmem:[%s2996_s1 + $0x18] sm:$0xff] (!%p163_p2)  ;;  %v2689_v40 = vld [vmem:[%s2998_s3 + $0x8] sm:$0xff] (!%p163_p2) }
   0x8   : > { %2430 = vmatprep.subr.bf16.mxu0 (!%p163_p2), %v2429_v3  ;;  %v2694_v41 = vld [vmem:[%s2998_s3 + $0x28] sm:$0xff] (!%p163_p2)  ;;  %v2704_v43 = vld [vmem:[%s2998_s3] sm:$0xff] (!%p163_p2)  ;;  %v2725_v54 = vld [vmem:[%s2998_s3 + $0x18] sm:$0xff] (!%p163_p2) }
   0x9   : > { %2432 = vmatpush3.bf16.msra.mxu0 (!%p163_p2), %v2429_v3  ;;  %v2699_v42 = vld [vmem:[%s2998_s3 + $0x48] sm:$0xff] (!%p163_p2)  ;;  %v2709_v44 = vld [vmem:[%s2998_s3 + $0x20] sm:$0xff] (!%p163_p2)  ;;  %v2730_v55 = vld [vmem:[%s2998_s3 + $0x38] sm:$0xff] (!%p163_p2) }
   0xa   : > { %2434 = vmatprep.subr.bf16.mxu0 (!%p163_p2), %v2433_v5  ;;  %v2714_v45 = vld [vmem:[%s2998_s3 + $0x40] sm:$0xff] (!%p163_p2)  ;;  %v2735_v56 = vld [vmem:[%s2998_s3 + $0x58] sm:$0xff] (!%p163_p2)  ;;  %v2740_v57 = vld [vmem:[%s2998_s3 + $0x10] sm:$0xff] (!%p163_p2) }
   0xb   : > { %v2745_v58 = vld [vmem:[%s2998_s3 + $0x30] sm:$0xff] (!%p163_p2) }
   0xc   : > { %v2750_v59 = vld [vmem:[%s2998_s3 + $0x50] sm:$0xff] (!%p163_p2) }
   0xd   : > { %s3001_s16 = smov (!%p188_p3, %s1916_s16), 1  ;;  %2436 = vmatpush3.bf16.msra.mxu0 %v2433_v5 }
   0xe   : > { %s2545_s25 = smul.u32 96, %s3001_s16 }
   0xf   : > { %s2546_s11 = smul.u32 288, %s3001_s16 }
  0x10   : > { %s192_s28 = scalar_lea.vmem %s2995_s0, %s2545_s25 }
  0x11   : > { %v198_v6 = vld [vmem:[%s192_s28] sm:$0xff]  ;;  %v199_v7 = vld [vmem:[%s192_s28 + $0x8] sm:$0xff]  ;;  %v200_v8 = vld [vmem:[%s192_s28 + $0x10] sm:$0xff]  ;;  %s2918_s14 = scalar_lea.vmem %s2999_s4, %s2546_s11 }
  0x12   : > { %2181 = vmatprep.mubr.msk.f32.mxu0 %vm230_vm0, %v198_v6  ;;  %v201_v9 = vld [vmem:[%s192_s28 + $0x18] sm:$0xff]  ;;  %v202_v10 = vld [vmem:[%s192_s28 + $0x20] sm:$0xff]  ;;  %v203_v11 = vld [vmem:[%s192_s28 + $0x28] sm:$0xff] }
  0x13   : > { %2182 = vmatmul.mubr.msk.f32.vlgmr.msra.gmra.mrb[0].mxu0 %vm230_vm0, %v199_v7  ;;  %v204_v12 = vld [vmem:[%s192_s28 + $0x30] sm:$0xff]  ;;  %v205_v13 = vld [vmem:[%s192_s28 + $0x38] sm:$0xff]  ;;  %v206_v14 = vld [vmem:[%s192_s28 + $0x40] sm:$0xff] }
  0x14   : > { %2184 = vmatprep.mubr.msk.f32.mxu0 %vm230_vm0, %v200_v8  ;;  %v207_v15 = vld [vmem:[%s192_s28 + $0x48] sm:$0xff]  ;;  %v208_v16 = vld [vmem:[%s192_s28 + $0x50] sm:$0xff]  ;;  %v209_v17 = vld [vmem:[%s192_s28 + $0x58] sm:$0xff] }
  0x17   : > { %2185 = vmatmul.mubr.msk.f32.gmra.mrb[2].mxu0 %vm230_vm0, %v201_v9 }
  0x18   : > { %2187 = vmatprep.mubr.msk.f32.mxu0 %vm230_vm0, %v202_v10 }
  0x1b   : > { %2188 = vmatmul.mubr.msk.f32.gmra.mrb[4].mxu0 %vm230_vm0, %v203_v11 }
  0x1c   : > { %2190 = vmatprep.mubr.msk.f32.mxu0 %vm230_vm0, %v204_v12 }
  0x1f   : > { %2191 = vmatmul.mubr.msk.f32.gmra.mrb[6].mxu0 %vm230_vm0, %v205_v13 }
  0x20   : > { %2193 = vmatprep.mubr.msk.f32.mxu0 %vm230_vm0, %v206_v14 }
  0x23   : > { %2194 = vmatmul.mubr.msk.f32.gmra.mrb[8].mxu0 %vm230_vm0, %v207_v15 }
  0x24   : > { %2196 = vmatprep.mubr.msk.f32.mxu0 %vm230_vm0, %v208_v16 }
  0x27   : > { %2197 = vmatmul.mubr.msk.f32.gmra.mrb[10].mxu0 %vm230_vm0, %v209_v17 }
  0x28   : > { %2249 = vmatprep.mubr.msk.f32.mxu0 %vm230_vm0, %v2599_v0 }
  0xe6   : > { %v2183_v19 = vpop.f32.mrb[0].mxu0 }
  0xe7   : > { %v333_v20 = vpop.f32.mrb[1].mxu0 }
  0xe8   : > { %v2437_v21 = vpack.c.bf16 %v2183_v19, %v333_v20 }
  0xea   : > { %v2186_v22 = vpop.f32.mrb[2].mxu0  ;;  %2438 = vmatprep.subr.bf16.mxu1 %v2437_v21 }
  0xeb   : > { %v343_v23 = vpop.f32.mrb[3].mxu0  ;;  %2440 = vmatpush3.bf16.msra.mxu1 %v2437_v21 }
  0xec   : > { %v2441_v24 = vpack.c.bf16 %v2186_v22, %v343_v23 }
  0xee   : > { %v2189_v25 = vpop.f32.mrb[4].mxu0  ;;  %2442 = vmatprep.subr.bf16.mxu1 %v2441_v24 }
  0xef   : > { %v353_v26 = vpop.f32.mrb[5].mxu0  ;;  %2444 = vmatpush3.bf16.msra.mxu1 %v2441_v24 }
  0xf0   : > { %v2445_v28 = vpack.c.bf16 %v2189_v25, %v353_v26 }
  0xf2   : > { %v2192_v30 = vpop.f32.mrb[6].mxu0  ;;  %2208 = vmatmul.mubr.msk.f32.vlgmr.msra.gmra.mrb[0].mxu1 %vm230_vm0, %v2650_v27  ;;  %2446 = vmatprep.subr.bf16.mxu1 %v2445_v28 }
  0xf3   : > { %v363_v31 = vpop.f32.mrb[7].mxu0  ;;  %2448 = vmatpush3.bf16.msra.mxu1 %v2445_v28  ;;  %2210 = vmatprep.mubr.msk.f32.mxu1 %vm230_vm0, %v2655_v29 }
  0xf4   : > { %v2449_v33 = vpack.c.bf16 %v2192_v30, %v363_v31 }
  0xf6   : > { %v2195_v34 = vpop.f32.mrb[8].mxu0  ;;  %2211 = vmatmul.mubr.msk.f32.gmra.mrb[2].mxu1 %vm230_vm0, %v2664_v32  ;;  %2450 = vmatprep.subr.bf16.mxu1 %v2449_v33 }
  0xf7   : > { %v373_v35 = vpop.f32.mrb[9].mxu0  ;;  %2452 = vmatpush3.bf16.msra.mxu1 %v2449_v33  ;;  %2221 = vmatprep.mubr.msk.f32.mxu1 %vm230_vm0, %v2643_v18 }
  0xf8   : > { %v2453_v36 = vpack.c.bf16 %v2195_v34, %v373_v35 }
  0xfa   : > { %v2198_v37 = vpop.f32.mrb[10].mxu0  ;;  %2222 = vmatmul.mubr.msk.f32.vlgmr.msra.gmra.mrb[4].mxu1 %vm230_vm0, %v2650_v27  ;;  %2454 = vmatprep.subr.bf16.mxu1 %v2453_v36 }
  0xfb   : > { %v383_v38 = vpop.f32.mrb[11].mxu0  ;;  %2456 = vmatpush3.bf16.msra.mxu1 %v2453_v36  ;;  %2224 = vmatprep.mubr.msk.f32.mxu1 %vm230_vm0, %v2655_v29 }
  0xfc   : > { %v2457_v39 = vpack.c.bf16 %v2198_v37, %v383_v38 }
  0xfe   : > { %2225 = vmatmul.mubr.msk.f32.gmra.mrb[6].mxu1 %vm230_vm0, %v2664_v32  ;;  %2458 = vmatprep.subr.bf16.mxu1 %v2457_v39 }
  0xff   : > { %2460 = vmatpush3.bf16.msra.mxu1 %v2457_v39  ;;  %2235 = vmatprep.mubr.msk.f32.mxu1 %vm230_vm0, %v2643_v18 }
 0x102   : > { %2236 = vmatmul.mubr.msk.f32.vlgmr.msra.gmra.mrb[8].mxu1 %vm230_vm0, %v2650_v27 }
 0x103   : > { %2238 = vmatprep.mubr.msk.f32.mxu1 %vm230_vm0, %v2655_v29 }
 0x106   : > { %2239 = vmatmul.mubr.msk.f32.gmra.mrb[10].mxu1 %vm230_vm0, %v2664_v32 }
 0x107   : > { %2263 = vmatprep.mubr.msk.f32.mxu1 %vm230_vm0, %v2599_v0 }
 0x1c5   : > { %v2209_v46 = vpop.f32.mrb[0].mxu1 }
 0x1c6   : > { %v660_v47 = vmul.f32 %v2209_v46, %v2689_v40  ;;  %v672_v48 = vmul.f32 %v2209_v46, %v2694_v41  ;;  %v684_v49 = vmul.f32 %v2209_v46, %v2699_v42  ;;  %v470_v50 = vpop.f32.mrb[1].mxu1 }
 0x1c7   : > { %v659_v51 = vmul.f32 %v470_v50, %v2704_v43  ;;  %v671_v52 = vmul.f32 %v470_v50, %v2709_v44  ;;  %v683_v53 = vmul.f32 %v470_v50, %v2714_v45 }
 0x1c9   : > { %v2212_v60 = vpop.f32.mrb[2].mxu1  ;;  %v2461_v61 = vpack.c.bf16 %v660_v47, %v659_v51  ;;  %v2752_v62 = vpack.c.bf16 %v672_v48, %v671_v52  ;;  %v2754_v63 = vpack.c.bf16 %v684_v49, %v683_v53 }
 0x1ca   : > { %v662_v3 = vmul.f32 %v2212_v60, %v2725_v54  ;;  %v674_v5 = vmul.f32 %v2212_v60, %v2730_v55  ;;  %v686_v6 = vmul.f32 %v2212_v60, %v2735_v56  ;;  %v480_v7 = vpop.f32.mrb[3].mxu1 }
 0x1cb   : > { %2462 = vmatprep.subr.bf16.mxu0 %v2461_v61  ;;  %v661_v8 = vmul.f32 %v480_v7, %v2740_v57  ;;  %v673_v9 = vmul.f32 %v480_v7, %v2745_v58  ;;  %v685_v10 = vmul.f32 %v480_v7, %v2750_v59 }
 0x1cc   : > { %2464 = vmatpush3.bf16.msra.mxu0 %v2461_v61 }
 0x1cd   : > { %v2223_v11 = vpop.f32.mrb[4].mxu1  ;;  %v2465_v12 = vpack.c.bf16 %v662_v3, %v661_v8  ;;  %v2762_v13 = vpack.c.bf16 %v674_v5, %v673_v9  ;;  %v2764_v14 = vpack.c.bf16 %v686_v6, %v685_v10 }
 0x1ce   : > { %v664_v15 = vmul.f32 %v2223_v11, %v2689_v40  ;;  %v676_v16 = vmul.f32 %v2223_v11, %v2694_v41  ;;  %v688_v17 = vmul.f32 %v2223_v11, %v2699_v42  ;;  %v555_v19 = vpop.f32.mrb[5].mxu1 }
 0x1cf   : > { %v663_v20 = vmul.f32 %v555_v19, %v2704_v43  ;;  %v675_v21 = vmul.f32 %v555_v19, %v2709_v44  ;;  %v687_v22 = vmul.f32 %v555_v19, %v2714_v45  ;;  %2466 = vmatprep.subr.bf16.mxu0 %v2465_v12 }
 0x1d0   : > { %2468 = vmatpush3.bf16.msra.mxu0 %v2465_v12 }
 0x1d1   : > { %v2226_v23 = vpop.f32.mrb[6].mxu1  ;;  %v2469_v24 = vpack.c.bf16 %v664_v15, %v663_v20  ;;  %v2493_v25 = vpack.c.bf16 %v676_v16, %v675_v21  ;;  %v2772_v26 = vpack.c.bf16 %v688_v17, %v687_v22 }
 0x1d2   : > { %v666_v28 = vmul.f32 %v2226_v23, %v2725_v54  ;;  %v678_v30 = vmul.f32 %v2226_v23, %v2730_v55  ;;  %v690_v31 = vmul.f32 %v2226_v23, %v2735_v56  ;;  %v565_v33 = vpop.f32.mrb[7].mxu1 }
 0x1d3   : > { %v665_v34 = vmul.f32 %v565_v33, %v2740_v57  ;;  %v677_v35 = vmul.f32 %v565_v33, %v2745_v58  ;;  %v689_v36 = vmul.f32 %v565_v33, %v2750_v59  ;;  %2470 = vmatprep.subr.bf16.mxu1 %v2469_v24  ;;  %2250 = vmatmul.mubr.msk.f32.vlgmr.msra.gmra.mrb[12].mxu0 %vm230_vm0, %v2604_v1 }
 0x1d4   : > { %2472 = vmatpush3.bf16.msra.mxu1 %v2469_v24  ;;  %2252 = vmatprep.mubr.msk.f32.mxu0 %vm230_vm0, %v2609_v2 }
 0x1d5   : > { %v2237_v37 = vpop.f32.mrb[8].mxu1  ;;  %v2473_v38 = vpack.c.bf16 %v666_v28, %v665_v34  ;;  %v2497_v39 = vpack.c.bf16 %v678_v30, %v677_v35  ;;  %v2784_v46 = vpack.c.bf16 %v690_v31, %v689_v36 }
 0x1d6   : > { %v668_v47 = vmul.f32 %v2237_v37, %v2689_v40  ;;  %v680_v48 = vmul.f32 %v2237_v37, %v2694_v41  ;;  %v692_v49 = vmul.f32 %v2237_v37, %v2699_v42  ;;  %v640_v50 = vpop.f32.mrb[9].mxu1 }
 0x1d7   : > { %v667_v51 = vmul.f32 %v640_v50, %v2704_v43  ;;  %v679_v52 = vmul.f32 %v640_v50, %v2709_v44  ;;  %v691_v53 = vmul.f32 %v640_v50, %v2714_v45  ;;  %2474 = vmatprep.subr.bf16.mxu1 %v2473_v38  ;;  %2253 = vmatmul.mubr.msk.f32.gmra.mrb[14].mxu0 %vm230_vm0, %v2616_v4 }
 0x1d8   : > { %2476 = vmatpush3.bf16.msra.mxu1 %v2473_v38  ;;  %2277 = vmatprep.mubr.msk.f32.mxu0 %vm230_vm0, %v2599_v0 }
 0x1d9   : > { %v2240_v40 = vpop.f32.mrb[10].mxu1  ;;  %2486 = vmatprep.subr.bf16.mxu1 %v2752_v62  ;;  %v2477_v41 = vpack.c.bf16 %v668_v47, %v667_v51  ;;  %v2501_v42 = vpack.c.bf16 %v680_v48, %v679_v52  ;;  %v2525_v60 = vpack.c.bf16 %v692_v49, %v691_v53 }
 0x1da   : > { %v670_v43 = vmul.f32 %v2240_v40, %v2725_v54  ;;  %v682_v44 = vmul.f32 %v2240_v40, %v2730_v55  ;;  %v694_v45 = vmul.f32 %v2240_v40, %v2735_v56  ;;  %v650_v61 = vpop.f32.mrb[11].mxu1 }
 0x1db   : > { %v669_v3 = vmul.f32 %v650_v61, %v2740_v57  ;;  %v681_v5 = vmul.f32 %v650_v61, %v2745_v58  ;;  %v693_v6 = vmul.f32 %v650_v61, %v2750_v59  ;;  %2478 = vmatprep.subr.bf16.mxu0 %v2477_v41  ;;  %2264 = vmatmul.mubr.msk.f32.vlgmr.msra.gmra.mrb[12].mxu1 %vm230_vm0, %v2604_v1 }
 0x1dc   : > { %2480 = vmatpush3.bf16.msra.mxu0 %v2477_v41  ;;  %2488 = vmatpush3.bf16.msra.mxu1 %v2752_v62  ;;  %v2533_v57 = vpack.c.bf16 %v2650_v27, %v2643_v18  ;;  %v2537_v18 = vpack.c.bf16 %v2664_v32, %v2655_v29 }
 0x1dd   : > { %2490 = vmatprep.subr.bf16.mxu1 %v2762_v13  ;;  %2266 = vmatprep.mubr.msk.f32.mxu1 %vm230_vm0, %v2609_v2  ;;  %v2481_v54 = vpack.c.bf16 %v670_v43, %v669_v3  ;;  %v2505_v55 = vpack.c.bf16 %v682_v44, %v681_v5  ;;  %v2529_v56 = vpack.c.bf16 %v694_v45, %v693_v6 }
 0x1df   : > { %2482 = vmatprep.subr.bf16.mxu0 %v2481_v54  ;;  %2267 = vmatmul.mubr.msk.f32.gmra.mrb[14].mxu1 %vm230_vm0, %v2616_v4 }
 0x1e0   : > { %2484 = vmatpush3.bf16.msra.mxu0 %v2481_v54  ;;  %2492 = vmatpush3.bf16.msra.mxu1 %v2762_v13 }
 0x1e1   : > { %2494 = vmatprep.subr.bf16.mxu0 %v2493_v25  ;;  %2502 = vmatprep.subr.bf16.mxu1 %v2501_v42 }
 0x1e2   : > { %2291 = vmatprep.mubr.msk.f32.mxu1 %vm230_vm0, %v2599_v0 }
 0x1e3   : > { %2278 = vmatmul.mubr.msk.f32.vlgmr.msra.gmra.mrb[16].mxu0 %vm230_vm0, %v2604_v1  ;;  %2292 = vmatmul.mubr.msk.f32.vlgmr.msra.gmra.mrb[16].mxu1 %vm230_vm0, %v2604_v1 }
 0x1e4   : > { %2496 = vmatpush3.bf16.msra.mxu0 %v2493_v25  ;;  %2504 = vmatpush3.bf16.msra.mxu1 %v2501_v42 }
 0x1e5   : > { %2498 = vmatprep.subr.bf16.mxu0 %v2497_v39  ;;  %2506 = vmatprep.subr.bf16.mxu1 %v2505_v55 }
 0x1e6   : > { %2280 = vmatprep.mubr.msk.f32.mxu0 %vm230_vm0, %v2609_v2  ;;  %2294 = vmatprep.mubr.msk.f32.mxu1 %vm230_vm0, %v2609_v2 }
 0x1e7   : > { %2281 = vmatmul.mubr.msk.f32.gmra.mrb[18].mxu0 %vm230_vm0, %v2616_v4  ;;  %2295 = vmatmul.mubr.msk.f32.gmra.mrb[18].mxu1 %vm230_vm0, %v2616_v4 }
 0x1e8   : > { %2500 = vmatpush3.bf16.msra.mxu0 %v2497_v39  ;;  %2508 = vmatpush3.bf16.msra.mxu1 %v2505_v55 }
 0x1e9   : > { %2510 = vmatprep.subr.bf16.mxu0 %v2754_v63  ;;  %2518 = vmatprep.subr.bf16.mxu1 %v2772_v26 }
 0x1ea   : > { %2305 = vmatprep.mubr.msk.f32.mxu0 %vm230_vm0, %v2599_v0  ;;  %2319 = vmatprep.mubr.msk.f32.mxu1 %vm230_vm0, %v2599_v0 }
 0x1eb   : > { %2306 = vmatmul.mubr.msk.f32.vlgmr.msra.gmra.mrb[20].mxu0 %vm230_vm0, %v2604_v1  ;;  %2320 = vmatmul.mubr.msk.f32.vlgmr.msra.gmra.mrb[20].mxu1 %vm230_vm0, %v2604_v1 }
 0x1ec   : > { %2512 = vmatpush3.bf16.msra.mxu0 %v2754_v63  ;;  %2520 = vmatpush3.bf16.msra.mxu1 %v2772_v26 }
 0x1ed   : > { %2514 = vmatprep.subr.bf16.mxu0 %v2764_v14  ;;  %2522 = vmatprep.subr.bf16.mxu1 %v2784_v46 }
 0x1ee   : > { %2308 = vmatprep.mubr.msk.f32.mxu0 %vm230_vm0, %v2609_v2  ;;  %2322 = vmatprep.mubr.msk.f32.mxu1 %vm230_vm0, %v2609_v2 }
 0x1ef   : > { %2309 = vmatmul.mubr.msk.f32.gmra.mrb[22].mxu0 %vm230_vm0, %v2616_v4  ;;  %2323 = vmatmul.mubr.msk.f32.gmra.mrb[22].mxu1 %vm230_vm0, %v2616_v4 }
 0x1f0   : > { %2516 = vmatpush3.bf16.msra.mxu0 %v2764_v14  ;;  %2524 = vmatpush3.bf16.msra.mxu1 %v2784_v46 }
 0x1f1   : > { %2526 = vmatprep.subr.bf16.mxu0 %v2525_v60  ;;  %2333 = vmatprep.mubr.msk.f32.mxu0 %vm230_vm0, %v2599_v0 }
 0x1f2   : > { %2347 = vmatprep.mubr.msk.f32.mxu1 %vm230_vm0, %v2599_v0  ;;  %2541 = vmatprep.subr.bf16.mxu1 %v2533_v57 }
 0x1f3   : > { %2334 = vmatmul.mubr.msk.f32.vlgmr.msra.gmra.mrb[24].mxu0 %vm230_vm0, %v2604_v1  ;;  %2348 = vmatmul.mubr.msk.f32.vlgmr.msra.gmra.mrb[24].mxu1 %vm230_vm0, %v2604_v1 }
 0x1f4   : > { %2528 = vmatpush3.bf16.msra.mxu0 %v2525_v60  ;;  %2336 = vmatprep.mubr.msk.f32.mxu0 %vm230_vm0, %v2609_v2 }
 0x1f5   : > { %2530 = vmatprep.subr.bf16.mxu0 %v2529_v56  ;;  %2350 = vmatprep.mubr.msk.f32.mxu1 %vm230_vm0, %v2609_v2 }
 0x1f6   : > { %2543 = vmatpush3.bf16.msra.mxu1 %v2533_v57 }
 0x1f7   : > { %2337 = vmatmul.mubr.msk.f32.gmra.mrb[26].mxu0 %vm230_vm0, %v2616_v4  ;;  %2351 = vmatmul.mubr.msk.f32.gmra.mrb[26].mxu1 %vm230_vm0, %v2616_v4 }
 0x1f8   : > { %2532 = vmatpush3.bf16.msra.mxu0 %v2529_v56  ;;  %2361 = vmatprep.mubr.msk.f32.mxu0 %vm230_vm0, %v2599_v0 }
 0x1f9   : > { %2534 = vmatprep.subr.bf16.mxu0 %v2533_v57  ;;  %2542 = vmatprep.subr.bf16.mxu1 %v2537_v18 }
 0x1fa   : > { %2544 = vmatpush3.bf16.msra.mxu1 %v2537_v18 }
 0x1fb   : > { %2362 = vmatmul.mubr.msk.f32.vlgmr.msra.gmra.mrb[28].mxu0 %vm230_vm0, %v2604_v1 }
 0x1fc   : > { %2364 = vmatprep.mubr.msk.f32.mxu0 %vm230_vm0, %v2609_v2  ;;  %2536 = vmatpush3.bf16.msra.mxu0 %v2533_v57 }
 0x1fd   : > { %2538 = vmatprep.subr.bf16.mxu0 %v2537_v18 }
 0x1ff   : > { %2365 = vmatmul.mubr.msk.f32.gmra.mrb[30].mxu0 %vm230_vm0, %v2616_v4 }
 0x200   : > { %2540 = vmatpush3.bf16.msra.mxu0 %v2537_v18 }
 0x2a6   : > { %v2251_v27 = vpop.f32.mrb[12].mxu0 }
 0x2a7   : > { %v773_v29 = vpop.f32.mrb[13].mxu0 }
 0x2a8   : > { %2375 = vmatprep.mubr.msk.f32.mxu0 %vm230_vm0, %v773_v29 }
 0x2a9   : > { %2376 = vmatmul.mubr.msk.f32.vlgmr.msra.gmra.mrb[32].mxu0 %vm230_vm0, %v2251_v27 }
 0x2aa   : > { %v2254_v0 = vpop.f32.mrb[14].mxu0 }
 0x2ab   : > { %v783_v32 = vpop.f32.mrb[15].mxu0 }
 0x2ac   : > { %2378 = vmatprep.mubr.msk.f32.mxu0 %vm230_vm0, %v783_v32 }
 0x2ad   : > { %2379 = vmatmul.mubr.msk.f32.gmra.mrb[34].mxu0 %vm230_vm0, %v2254_v0 }
 0x2ae   : > { %v2265_v1 = vpop.f32.mrb[12].mxu1 }
 0x2af   : > { %v858_v2 = vpop.f32.mrb[13].mxu1 }
 0x2b0   : > { %2381 = vmatprep.mubr.msk.f32.mxu0 %vm230_vm0, %v858_v2 }
 0x2b1   : > { %2382 = vmatmul.mubr.msk.f32.gmra.mrb[36].mxu0 %vm230_vm0, %v2265_v1 }
 0x2b2   : > { %v2268_v4 = vpop.f32.mrb[14].mxu1 }
 0x2b3   : > { %v868_v58 = vpop.f32.mrb[15].mxu1 }
 0x2b4   : > { %2384 = vmatprep.mubr.msk.f32.mxu0 %vm230_vm0, %v868_v58 }
 0x2b5   : > { %2385 = vmatmul.mubr.msk.f32.gmra.mrb[38].mxu0 %vm230_vm0, %v2268_v4 }
 0x2b6   : > { %v2279_v59 = vpop.f32.mrb[16].mxu0  ;;  %v2293_v62 = vpop.f32.mrb[16].mxu1 }
 0x2b7   : > { %v943_v63 = vpop.f32.mrb[17].mxu0  ;;  %v1028_v7 = vpop.f32.mrb[17].mxu1 }
 0x2b8   : > { %2387 = vmatprep.mubr.msk.f32.mxu0 %vm230_vm0, %v943_v63 }
 0x2b9   : > { %2388 = vmatmul.mubr.msk.f32.gmra.mrb[40].mxu0 %vm230_vm0, %v2279_v59 }
 0x2ba   : > { %v2282_v8 = vpop.f32.mrb[18].mxu0  ;;  %v2296_v9 = vpop.f32.mrb[18].mxu1 }
 0x2bb   : > { %v953_v10 = vpop.f32.mrb[19].mxu0  ;;  %v1038_v11 = vpop.f32.mrb[19].mxu1 }
 0x2bc   : > { %2390 = vmatprep.mubr.msk.f32.mxu0 %vm230_vm0, %v953_v10 }
 0x2bd   : > { %2391 = vmatmul.mubr.msk.f32.gmra.mrb[42].mxu0 %vm230_vm0, %v2282_v8 }
 0x2be   : > { %v2307_v12 = vpop.f32.mrb[20].mxu0  ;;  %2393 = vmatprep.mubr.msk.f32.mxu0 %vm230_vm0, %v1028_v7  ;;  %v2321_v13 = vpop.f32.mrb[20].mxu1 }
 0x2bf   : > { %v1113_v14 = vpop.f32.mrb[21].mxu0  ;;  %v1198_v15 = vpop.f32.mrb[21].mxu1 }
 0x2c0   : > { %2399 = vmatprep.mubr.msk.f32.mxu1 %vm230_vm0, %v1113_v14 }
 0x2c1   : > { %2394 = vmatmul.mubr.msk.f32.gmra.mrb[44].mxu0 %vm230_vm0, %v2293_v62  ;;  %2400 = vmatmul.mubr.msk.f32.vlgmr.msra.gmra.mrb[28].mxu1 %vm230_vm0, %v2307_v12 }
 0x2c2   : > { %v2310_v16 = vpop.f32.mrb[22].mxu0  ;;  %2396 = vmatprep.mubr.msk.f32.mxu0 %vm230_vm0, %v1038_v11  ;;  %v2324_v17 = vpop.f32.mrb[22].mxu1 }
 0x2c3   : > { %v1123_v19 = vpop.f32.mrb[23].mxu0  ;;  %v1208_v20 = vpop.f32.mrb[23].mxu1 }
 0x2c4   : > { %2402 = vmatprep.mubr.msk.f32.mxu1 %vm230_vm0, %v1123_v19 }
 0x2c5   : > { %2397 = vmatmul.mubr.msk.f32.gmra.mrb[46].mxu0 %vm230_vm0, %v2296_v9  ;;  %2403 = vmatmul.mubr.msk.f32.gmra.mrb[30].mxu1 %vm230_vm0, %v2310_v16 }
 0x2c6   : > { %2405 = vmatprep.mubr.msk.f32.mxu1 %vm230_vm0, %v1198_v15  ;;  %v2335_v21 = vpop.f32.mrb[24].mxu0  ;;  %v2349_v22 = vpop.f32.mrb[24].mxu1 }
 0x2c7   : > { %v1283_v23 = vpop.f32.mrb[25].mxu0  ;;  %v1368_v24 = vpop.f32.mrb[25].mxu1 }
 0x2c9   : > { %2406 = vmatmul.mubr.msk.f32.gmra.mrb[32].mxu1 %vm230_vm0, %v2321_v13 }
 0x2ca   : > { %2408 = vmatprep.mubr.msk.f32.mxu1 %vm230_vm0, %v1208_v20  ;;  %v2338_v25 = vpop.f32.mrb[26].mxu0  ;;  %v2352_v26 = vpop.f32.mrb[26].mxu1 }
 0x2cb   : > { %v1293_v28 = vpop.f32.mrb[27].mxu0  ;;  %v1378_v30 = vpop.f32.mrb[27].mxu1 }
 0x2cd   : > { %2409 = vmatmul.mubr.msk.f32.gmra.mrb[34].mxu1 %vm230_vm0, %v2324_v17 }
 0x2ce   : > { %2411 = vmatprep.mubr.msk.f32.mxu1 %vm230_vm0, %v1283_v23  ;;  %v2363_v31 = vpop.f32.mrb[28].mxu0 }
 0x2cf   : > { %v1453_v33 = vpop.f32.mrb[29].mxu0 }
 0x2d1   : > { %2412 = vmatmul.mubr.msk.f32.gmra.mrb[36].mxu1 %vm230_vm0, %v2335_v21 }
 0x2d2   : > { %2414 = vmatprep.mubr.msk.f32.mxu1 %vm230_vm0, %v1293_v28  ;;  %v2366_v34 = vpop.f32.mrb[30].mxu0 }
 0x2d3   : > { %v1463_v35 = vpop.f32.mrb[31].mxu0 }
 0x2d5   : > { %2415 = vmatmul.mubr.msk.f32.gmra.mrb[38].mxu1 %vm230_vm0, %v2338_v25 }
 0x2d6   : > { %2417 = vmatprep.mubr.msk.f32.mxu1 %vm230_vm0, %v1368_v24 }
 0x2d9   : > { %2418 = vmatmul.mubr.msk.f32.gmra.mrb[40].mxu1 %vm230_vm0, %v2349_v22 }
 0x2da   : > { %2420 = vmatprep.mubr.msk.f32.mxu1 %vm230_vm0, %v1378_v30 }
 0x2dd   : > { %2421 = vmatmul.mubr.msk.f32.gmra.mrb[42].mxu1 %vm230_vm0, %v2352_v26 }
 0x2de   : > { %2423 = vmatprep.mubr.msk.f32.mxu1 %vm230_vm0, %v1453_v33 }
 0x2e1   : > { %2424 = vmatmul.mubr.msk.f32.gmra.mrb[44].mxu1 %vm230_vm0, %v2363_v31 }
 0x2e2   : > { %2426 = vmatprep.mubr.msk.f32.mxu1 %vm230_vm0, %v1463_v35 }
 0x2e5   : > { %2427 = vmatmul.mubr.msk.f32.gmra.mrb[46].mxu1 %vm230_vm0, %v2366_v34 }
 0x37c   : > { %v2377_v36 = vpop.f32.mrb[32].mxu0 }
 0x37d   : > { %1826 = vst.msk [vmem:[%s2918_s14 + $0x8] sm:$0xff] %vm230_vm0, %v2377_v36  ;;  %v1646_v37 = vpop.f32.mrb[33].mxu0 }
 0x37e   : > { %1825 = vst.msk [vmem:[%s2918_s14] sm:$0xff] %vm230_vm0, %v1646_v37 }
 0x380   : > { %v2380_v38 = vpop.f32.mrb[34].mxu0 }
 0x381   : > { %1828 = vst.msk [vmem:[%s2918_s14 + $0x18] sm:$0xff] %vm230_vm0, %v2380_v38  ;;  %v1656_v39 = vpop.f32.mrb[35].mxu0 }
 0x382   : > { %1827 = vst.msk [vmem:[%s2918_s14 + $0x10] sm:$0xff] %vm230_vm0, %v1656_v39 }
 0x384   : > { %v2383_v46 = vpop.f32.mrb[36].mxu0 }
 0x385   : > { %1830 = vst.msk [vmem:[%s2918_s14 + $0x28] sm:$0xff] %vm230_vm0, %v2383_v46  ;;  %v1666_v47 = vpop.f32.mrb[37].mxu0 }
 0x386   : > { %1829 = vst.msk [vmem:[%s2918_s14 + $0x20] sm:$0xff] %vm230_vm0, %v1666_v47 }
 0x388   : > { %v2386_v48 = vpop.f32.mrb[38].mxu0 }
 0x389   : > { %1832 = vst.msk [vmem:[%s2918_s14 + $0x38] sm:$0xff] %vm230_vm0, %v2386_v48  ;;  %v1676_v49 = vpop.f32.mrb[39].mxu0 }
 0x38a   : > { %1831 = vst.msk [vmem:[%s2918_s14 + $0x30] sm:$0xff] %vm230_vm0, %v1676_v49 }
 0x38c   : > { %v2389_v50 = vpop.f32.mrb[40].mxu0 }
 0x38d   : > { %1834 = vst.msk [vmem:[%s2918_s14 + $0x48] sm:$0xff] %vm230_vm0, %v2389_v50  ;;  %v1686_v51 = vpop.f32.mrb[41].mxu0 }
 0x38e   : > { %1833 = vst.msk [vmem:[%s2918_s14 + $0x40] sm:$0xff] %vm230_vm0, %v1686_v51 }
 0x390   : > { %v2392_v52 = vpop.f32.mrb[42].mxu0 }
 0x391   : > { %1836 = vst.msk [vmem:[%s2918_s14 + $0x58] sm:$0xff] %vm230_vm0, %v2392_v52  ;;  %v1696_v53 = vpop.f32.mrb[43].mxu0 }
 0x392   : > { %1835 = vst.msk [vmem:[%s2918_s14 + $0x50] sm:$0xff] %vm230_vm0, %v1696_v53 }
 0x394   : > { %v2395_v40 = vpop.f32.mrb[44].mxu0  ;;  %v2401_v41 = vpop.f32.mrb[28].mxu1 }
 0x395   : > { %1838 = vst.msk [vmem:[%s2918_s14 + $0x68] sm:$0xff] %vm230_vm0, %v2395_v40  ;;  %1842 = vst.msk [vmem:[%s2918_s14 + $0x88] sm:$0xff] %vm230_vm0, %v2401_v41  ;;  %v1706_v42 = vpop.f32.mrb[45].mxu0  ;;  %v1726_v60 = vpop.f32.mrb[29].mxu1 }
 0x396   : > { %1837 = vst.msk [vmem:[%s2918_s14 + $0x60] sm:$0xff] %vm230_vm0, %v1706_v42  ;;  %1841 = vst.msk [vmem:[%s2918_s14 + $0x80] sm:$0xff] %vm230_vm0, %v1726_v60 }
 0x398   : > { %v2398_v43 = vpop.f32.mrb[46].mxu0  ;;  %v2404_v44 = vpop.f32.mrb[30].mxu1 }
 0x399   : > { %1840 = vst.msk [vmem:[%s2918_s14 + $0x78] sm:$0xff] %vm230_vm0, %v2398_v43  ;;  %1844 = vst.msk [vmem:[%s2918_s14 + $0x98] sm:$0xff] %vm230_vm0, %v2404_v44  ;;  %v1716_v45 = vpop.f32.mrb[47].mxu0  ;;  %v1736_v61 = vpop.f32.mrb[31].mxu1 }
 0x39a   : > { %1839 = vst.msk [vmem:[%s2918_s14 + $0x70] sm:$0xff] %vm230_vm0, %v1716_v45  ;;  %1843 = vst.msk [vmem:[%s2918_s14 + $0x90] sm:$0xff] %vm230_vm0, %v1736_v61 }
 0x39c   : > { %v2407_v3 = vpop.f32.mrb[32].mxu1 }
 0x39d   : > { %1846 = vst.msk [vmem:[%s2918_s14 + $0xa8] sm:$0xff] %vm230_vm0, %v2407_v3  ;;  %v1746_v5 = vpop.f32.mrb[33].mxu1 }
 0x39e   : > { %1845 = vst.msk [vmem:[%s2918_s14 + $0xa0] sm:$0xff] %vm230_vm0, %v1746_v5 }
 0x3a0   : > { %v2410_v6 = vpop.f32.mrb[34].mxu1 }
 0x3a1   : > { %1848 = vst.msk [vmem:[%s2918_s14 + $0xb8] sm:$0xff] %vm230_vm0, %v2410_v6  ;;  %v1756_v54 = vpop.f32.mrb[35].mxu1 }
 0x3a2   : > { %1847 = vst.msk [vmem:[%s2918_s14 + $0xb0] sm:$0xff] %vm230_vm0, %v1756_v54 }
 0x3a4   : > { %v2413_v55 = vpop.f32.mrb[36].mxu1 }
 0x3a5   : > { %1850 = vst.msk [vmem:[%s2918_s14 + $0xc8] sm:$0xff] %vm230_vm0, %v2413_v55  ;;  %v1766_v56 = vpop.f32.mrb[37].mxu1 }
 0x3a6   : > { %1849 = vst.msk [vmem:[%s2918_s14 + $0xc0] sm:$0xff] %vm230_vm0, %v1766_v56 }
 0x3a8   : > { %v2416_v57 = vpop.f32.mrb[38].mxu1 }
 0x3a9   : > { %1852 = vst.msk [vmem:[%s2918_s14 + $0xd8] sm:$0xff] %vm230_vm0, %v2416_v57  ;;  %v1776_v18 = vpop.f32.mrb[39].mxu1 }
 0x3aa   : > { %1851 = vst.msk [vmem:[%s2918_s14 + $0xd0] sm:$0xff] %vm230_vm0, %v1776_v18 }
 0x3ac   : > { %v2419_v27 = vpop.f32.mrb[40].mxu1 }
 0x3ad   : > { %1854 = vst.msk [vmem:[%s2918_s14 + $0xe8] sm:$0xff] %vm230_vm0, %v2419_v27  ;;  %v1786_v29 = vpop.f32.mrb[41].mxu1 }
 0x3ae   : > { %1853 = vst.msk [vmem:[%s2918_s14 + $0xe0] sm:$0xff] %vm230_vm0, %v1786_v29 }
 0x3b0   : > { %v2422_v0 = vpop.f32.mrb[42].mxu1 }
 0x3b1   : > { %1856 = vst.msk [vmem:[%s2918_s14 + $0xf8] sm:$0xff] %vm230_vm0, %v2422_v0  ;;  %v1796_v32 = vpop.f32.mrb[43].mxu1 }
 0x3b2   : > { %1855 = vst.msk [vmem:[%s2918_s14 + $0xf0] sm:$0xff] %vm230_vm0, %v1796_v32 }
 0x3b4   : > { %v2425_v1 = vpop.f32.mrb[44].mxu1 }
 0x3b5   : > { %1858 = vst.msk [vmem:[%s2918_s14 + $0x108] sm:$0xff] %vm230_vm0, %v2425_v1  ;;  %v1806_v2 = vpop.f32.mrb[45].mxu1 }
 0x3b6   : > { %1857 = vst.msk [vmem:[%s2918_s14 + $0x100] sm:$0xff] %vm230_vm0, %v1806_v2 }
 0x3b8   : > { %v2428_v4 = vpop.f32.mrb[46].mxu1 }
 0x3b9   : > { %1860 = vst.msk [vmem:[%s2918_s14 + $0x118] sm:$0xff] %vm230_vm0, %v2428_v4  ;;  %v1816_v58 = vpop.f32.mrb[47].mxu1 }
 0x3ba   : > { %1859 = vst.msk [vmem:[%s2918_s14 + $0x110] sm:$0xff] %vm230_vm0, %v1816_v58 }
 0x3bb PF: > { %s14_s15 = sadd.s32 1, %s2561_s15  }
 0x3bc   : > { %p11_p4 = scmp.ge.s32.totalorder %s14_s15, 4  }
 0x3be   :  { %13 = sbr.rel (!%p11_p4) target bundleno = 1 (0x1), region = 66 }

// kernel: f3net_fad_forward.3
= control target key start
LH: loop header
LB: loop body
LE: loop exit
PB: predicated region body
PF: predicated region fallthrough
CT: control target
= control target key end

     0   :  { %s3022_s17 = smov 0   ;;  %s3024_s18 = smov 0   ;;  %s3654_s0 = inlined_call_operand.vmem [shape: bf16[2,256,81], index: 0, kind: input, shape index: {}]   ;;  %s3655_s1 = inlined_call_operand.vmem [shape: bf16[81,2048], index: 1, kind: input, shape index: {}]   ;;  %s3656_s2 = inlined_call_operand.vmem [shape: f32[1,2048], index: 2, kind: input, shape index: {}]   ;;  %s3657_s3 = inlined_call_operand.<no memory space> [shape: f32[1,1], index: 3, kind: input, shape index: {}]   ;;  %s3658_s4 = inlined_call_operand.vmem [shape: f32[2,1,1], index: 4, kind: output, shape index: {}]  }
   0x1   :  { %v9_v0 = vstv %s3657_s3  ;;  %s3026_s19 = smov 0   ;;  %s3028_s20 = smov 0  }
   0x2   :  { %10 = vst [vmem:[#allocation3] sm:$0x1] %v9_v0  ;;  %s3030_s21 = smov 0  }
   0x3 LB: > { %s25_s3 = sadd.s32 1, %s2981_s19  ;;  %s28_s22 = sadd.s32 1, %s2985_s20  ;;  %s2989_s21 = sphi %s3030_s21, %s16_s21   ;;  %s2985_s20 = sphi %s3028_s20, %s3662_s20   ;;  %s2981_s19 = sphi %s3026_s19, %s3661_s19   ;;  %s2977_s18 = sphi %s3024_s18, %s3660_s18   ;;  %s2973_s17 = sphi %s3022_s17, %s3659_s17  }
   0x4   : > { %p26_p0 = scmp.ge.s32.totalorder %s25_s3, 2  ;;  %p2708_p1 = scmp.ge.s32.totalorder %s2989_s21, 1 }
   0x5   : > { %p183_p2 = scmp.lt.s32.totalorder %s2989_s21, 5 }
   0x6   : > { %s3664_s3 = smov (%p26_p0, %s25_s3), 0  ;;  %s3666_s22 = smov (!%p26_p0, %s28_s22), %s2985_s20 }
   0x7   : > { %p184_p3 = pnand %p2708_p1, %p183_p2  ;;  %p30_p4 = scmp.ge.s32.totalorder %s3666_s22, 2 }
   0x8   : > { %s2709_s23 = sshll.u32 (!%p184_p3), %s2973_s17, 4  ;;  %p212_p5 = scmp.lt.s32.totalorder (!%p184_p3), %s2977_s18, 1 }
   0x9   : > { %s3668_s22 = smov (%p30_p4, %s3666_s22), 0  ;;  %187 = sbr.rel (%p184_p3) target bundleno = 720 (0x2d0), region = 36 }
   0xa   : > { %p214_p6 = scmp.lt.s32.totalorder (!%p184_p3), %s2709_s23, 31  ;;  %p2712_p7 = scmp.ne.s32.totalorder (!%p184_p3), %s2973_s17, 0 }
  0x10   : > { %s3670_s18 = smov (!%p212_p5, %s2977_s18), 1  ;;  %s3672_s23 = smov (!%p214_p6, %s2709_s23), 31 }
  0x11   : > { %s2710_s24 = sshll.u32 %s3670_s18, 5  ;;  %s223_s27 = scalar_lea.vmem %s3658_s4, %s3670_s18  ;;  %v2991_v1 = vmov (!%p2712_p7), 0.0  }
  0x12   : > { %s217_s28 = sadd.s32 %s2710_s24, %s3672_s23  ;;  %228 = sbr.rel (%p2712_p7) target bundleno = 25 (0x19), region = 40  ;;  %229 = vst [vmem:[#allocation2] sm:$0xff] (!%p2712_p7), %v2991_v1  ;;  %230 = vst [vmem:[#allocation2 + $0x8] sm:$0xff] (!%p2712_p7), %v2991_v1 }
  0x13   : > { %s2711_s29 = sshll.u32 %s217_s28, 2 }
  0x14   : > { %s3065_s6 = scalar_lea.vmem %s3654_s0, %s2711_s29 }
  0x19 PF: > { %v247_v2 = vld [vmem:[%s3655_s1] sm:$0xff]  ;;  %v248_v4 = vld [vmem:[%s3655_s1 + $0x8] sm:$0xff]  ;;  %v2992_v10 = vmov 0   ;;  %vm840_vm0 = vcmask 1040384   ;;  %v249_v52 = vld [vmem:[%s3655_s1 + $0x10] sm:$0xff]  ;;  %vm815_vm1 = vcmask 662528  }
  0x1a   : > { %v255_v3 = vld [vmem:[%s3655_s1 + $0x40] sm:$0xff]  ;;  %v256_v6 = vld [vmem:[%s3655_s1 + $0x48] sm:$0xff]  ;;  %923 = vmatprep.mubr.bf16.mxu0 %v2992_v10  ;;  %1036 = vmatprep.mubr.bf16.mxu1 %v2992_v10  ;;  %v3138_v44 = vsel %vm840_vm0, 65535, %v2992_v10  ;;  %v257_v53 = vld [vmem:[%s3655_s1 + $0x50] sm:$0xff]  ;;  %p2881_p8 = scmp.ne.s32.totalorder %s2973_s17, 1 }
  0x1b   : > { %v2722_v5 = vcombine.high %v247_v2, %v255_v3  ;;  %v2721_v7 = vcombine.low %v247_v2, %v255_v3  ;;  %v263_v8 = vld [vmem:[%s3655_s1 + $0x80] sm:$0xff]  ;;  %v2724_v11 = vcombine.high %v248_v4, %v256_v6  ;;  %v2723_v12 = vcombine.low %v248_v4, %v256_v6  ;;  %v264_v14 = vld [vmem:[%s3655_s1 + $0x88] sm:$0xff]  ;;  %v250_v54 = vld [vmem:[%s3655_s1 + $0x18] sm:$0xff] }
  0x1c   : > { %v271_v9 = vld [vmem:[%s3655_s1 + $0xc0] sm:$0xff]  ;;  %v272_v15 = vld [vmem:[%s3655_s1 + $0xc8] sm:$0xff]  ;;  %v258_v55 = vld [vmem:[%s3655_s1 + $0x58] sm:$0xff]  ;;  %v2726_v58 = vcombine.high %v249_v52, %v257_v53  ;;  %v2725_v63 = vcombine.low %v249_v52, %v257_v53  ;;  %vm2638_vm2 = vcmask (!%p2881_p8), 0  }
  0x1d   : > { %v2738_v13 = vcombine.high %v263_v8, %v271_v9  ;;  %v279_v16 = vld [vmem:[%s3655_s1 + $0x100] sm:$0xff]  ;;  %891 = vmatprep.subr.bf16.mxu0 %v2722_v5  ;;  %v2740_v17 = vcombine.high %v264_v14, %v272_v15  ;;  %v280_v19 = vld [vmem:[%s3655_s1 + $0x108] sm:$0xff]  ;;  %1004 = vmatprep.subr.bf16.mxu1 %v2724_v11  ;;  %v2737_v21 = vcombine.low %v263_v8, %v271_v9  ;;  %v265_v61 = vld [vmem:[%s3655_s1 + $0x90] sm:$0xff] }
  0x1e   : > { %v287_v18 = vld [vmem:[%s3655_s1 + $0x140] sm:$0xff]  ;;  %v288_v20 = vld [vmem:[%s3655_s1 + $0x148] sm:$0xff]  ;;  %892 = vmatpush1.bf16.msra.mxu0 %v2721_v7  ;;  %1005 = vmatpush1.bf16.msra.mxu1 %v2723_v12  ;;  %v2739_v22 = vcombine.low %v264_v14, %v272_v15  ;;  %v2728_v59 = vcombine.high %v250_v54, %v258_v55  ;;  %v273_v62 = vld [vmem:[%s3655_s1 + $0xd0] sm:$0xff]  ;;  %v2727_v2 = vcombine.low %v250_v54, %v258_v55 }
  0x1f   : > { %893 = vmatprep.subr.bf16.mxu0 %v2738_v13  ;;  %v2754_v23 = vcombine.high %v279_v16, %v287_v18  ;;  %1006 = vmatprep.subr.bf16.mxu1 %v2740_v17  ;;  %v2756_v24 = vcombine.high %v280_v19, %v288_v20  ;;  %v295_v25 = vld [vmem:[%s3655_s1 + $0x180] sm:$0xff]  ;;  %v296_v27 = vld [vmem:[%s3655_s1 + $0x188] sm:$0xff]  ;;  %v2753_v29 = vcombine.low %v279_v16, %v287_v18  ;;  %v266_v0 = vld [vmem:[%s3655_s1 + $0x98] sm:$0xff] }
  0x20   : > { %v303_v26 = vld [vmem:[%s3655_s1 + $0x1c0] sm:$0xff]  ;;  %v304_v28 = vld [vmem:[%s3655_s1 + $0x1c8] sm:$0xff]  ;;  %v2755_v30 = vcombine.low %v280_v19, %v288_v20  ;;  %v274_v1 = vld [vmem:[%s3655_s1 + $0xd8] sm:$0xff]  ;;  %v2742_v3 = vcombine.high %v265_v61, %v273_v62  ;;  %v2741_v9 = vcombine.low %v265_v61, %v273_v62 }
  0x21   : > { %v2770_v31 = vcombine.high %v295_v25, %v303_v26  ;;  %v311_v32 = vld [vmem:[%s3655_s1 + $0x200] sm:$0xff]  ;;  %v2772_v33 = vcombine.high %v296_v27, %v304_v28  ;;  %v312_v36 = vld [vmem:[%s3655_s1 + $0x208] sm:$0xff]  ;;  %v2769_v39 = vcombine.low %v295_v25, %v303_v26  ;;  %v2771_v40 = vcombine.low %v296_v27, %v304_v28  ;;  %v281_v4 = vld [vmem:[%s3655_s1 + $0x110] sm:$0xff] }
  0x22   : > { %894 = vmatpush1.bf16.msra.mxu0 %v2737_v21  ;;  %1007 = vmatpush1.bf16.msra.mxu1 %v2739_v22  ;;  %v319_v34 = vld [vmem:[%s3655_s1 + $0x240] sm:$0xff]  ;;  %v320_v37 = vld [vmem:[%s3655_s1 + $0x248] sm:$0xff]  ;;  %v289_v5 = vld [vmem:[%s3655_s1 + $0x150] sm:$0xff]  ;;  %v2744_v6 = vcombine.high %v266_v0, %v274_v1  ;;  %v2743_v11 = vcombine.low %v266_v0, %v274_v1 }
  0x23   : > { %895 = vmatprep.subr.bf16.mxu0 %v2754_v23  ;;  %1008 = vmatprep.subr.bf16.mxu1 %v2756_v24  ;;  %v327_v35 = vld [vmem:[%s3655_s1 + $0x280] sm:$0x11]  ;;  %v328_v38 = vld [vmem:[%s3655_s1 + $0x288] sm:$0x11]  ;;  %v2786_v41 = vcombine.high %v311_v32, %v319_v34  ;;  %v2788_v43 = vcombine.high %v312_v36, %v320_v37  ;;  %v2785_v46 = vcombine.low %v311_v32, %v319_v34  ;;  %v282_v7 = vld [vmem:[%s3655_s1 + $0x118] sm:$0xff] }
  0x24   : > { %v2802_v42 = vcombine.high %v327_v35, %v327_v35  ;;  %v2804_v45 = vcombine.high %v328_v38, %v328_v38  ;;  %v2801_v47 = vcombine.low %v327_v35, %v327_v35  ;;  %v2787_v48 = vcombine.low %v312_v36, %v320_v37  ;;  %v3157_v60 = vld [vmem:[%s3065_s6] sm:$0xff]   ;;  %v290_v8 = vld [vmem:[%s3655_s1 + $0x158] sm:$0xff]  ;;  %v3190_v14 = vld [vmem:[%s3065_s6 + $0x8] sm:$0xff]  }
  0x25   : > { %v2803_v50 = vcombine.low %v328_v38, %v328_v38  ;;  %v2758_v12 = vcombine.high %v281_v4, %v289_v5  ;;  %v2760_v13 = vcombine.high %v282_v7, %v290_v8  ;;  %v297_v15 = vld [vmem:[%s3655_s1 + $0x190] sm:$0xff]  ;;  %v298_v17 = vld [vmem:[%s3655_s1 + $0x198] sm:$0xff]  ;;  %v2757_v19 = vcombine.low %v281_v4, %v289_v5  ;;  %v3263_v52 = vld [vmem:[%s3065_s6 + $0x20] sm:$0xff]  }
  0x26   : > { %896 = vmatpush1.bf16.msra.mxu0 %v2753_v29  ;;  %1009 = vmatpush1.bf16.msra.mxu1 %v2755_v30  ;;  %v847_v49 = vand.u32 %v2802_v42, %v3138_v44  ;;  %v853_v51 = vand.u32 %v2804_v45, %v3138_v44  ;;  %v844_v56 = vand.u32 %v2801_v47, %v3138_v44  ;;  %v305_v16 = vld [vmem:[%s3655_s1 + $0x1d0] sm:$0xff]  ;;  %v306_v18 = vld [vmem:[%s3655_s1 + $0x1d8] sm:$0xff]  ;;  %v251_v42 = vld [vmem:[%s3655_s1 + $0x20] sm:$0xff] }
  0x27   : > { %897 = vmatprep.subr.bf16.mxu0 %v2770_v31  ;;  %1010 = vmatprep.subr.bf16.mxu1 %v2772_v33  ;;  %v850_v57 = vand.u32 %v2803_v50, %v3138_v44  ;;  %v2759_v20 = vcombine.low %v282_v7, %v290_v8  ;;  %v2774_v21 = vcombine.high %v297_v15, %v305_v16  ;;  %v313_v23 = vld [vmem:[%s3655_s1 + $0x210] sm:$0xff]  ;;  %v314_v26 = vld [vmem:[%s3655_s1 + $0x218] sm:$0xff]  ;;  %v252_v45 = vld [vmem:[%s3655_s1 + $0x28] sm:$0xff] }
  0x28   : > { %v2776_v22 = vcombine.high %v298_v17, %v306_v18  ;;  %v321_v24 = vld [vmem:[%s3655_s1 + $0x250] sm:$0xff]  ;;  %v322_v27 = vld [vmem:[%s3655_s1 + $0x258] sm:$0xff]  ;;  %v2773_v29 = vcombine.low %v297_v15, %v305_v16  ;;  %v2775_v30 = vcombine.low %v298_v17, %v306_v18  ;;  %v3272_v53 = vld [vmem:[%s3065_s6 + $0x28] sm:$0xff]  }
  0x29   : > { %v329_v25 = vld [vmem:[%s3655_s1 + $0x290] sm:$0x11]  ;;  %v330_v28 = vld [vmem:[%s3655_s1 + $0x298] sm:$0x11]  ;;  %v2790_v31 = vcombine.high %v313_v23, %v321_v24  ;;  %v2792_v34 = vcombine.high %v314_v26, %v322_v27  ;;  %v2789_v36 = vcombine.low %v313_v23, %v321_v24  ;;  %v2791_v38 = vcombine.low %v314_v26, %v322_v27  ;;  %v276_v61 = vld [vmem:[%s3655_s1 + $0xe8] sm:$0xff] }
  0x2a   : > { %898 = vmatpush1.bf16.msra.mxu0 %v2769_v39  ;;  %1011 = vmatpush1.bf16.msra.mxu1 %v2771_v40  ;;  %v2806_v32 = vcombine.high %v329_v25, %v329_v25  ;;  %v3229_v33 = vld [vmem:[%s3065_s6 + $0x10] sm:$0xff]   ;;  %v2808_v35 = vcombine.high %v330_v28, %v330_v28  ;;  %v2805_v37 = vcombine.low %v329_v25, %v329_v25  ;;  %v3254_v50 = vld [vmem:[%s3065_s6 + $0x18] sm:$0xff]   ;;  %v283_v0 = vld [vmem:[%s3655_s1 + $0x120] sm:$0xff] }
  0x2b   : > { %899 = vmatprep.subr.bf16.mxu0 %v2786_v41  ;;  %1012 = vmatprep.subr.bf16.mxu1 %v2788_v43  ;;  %v2807_v40 = vcombine.low %v330_v28, %v330_v28  ;;  %v259_v43 = vld [vmem:[%s3655_s1 + $0x60] sm:$0xff]  ;;  %v3281_v54 = vld [vmem:[%s3065_s6 + $0x30] sm:$0xff]   ;;  %v3290_v55 = vld [vmem:[%s3065_s6 + $0x38] sm:$0xff]  }
  0x2c   : > { %v859_v39 = vand.u32 %v2806_v32, %v3138_v44  ;;  %v865_v41 = vand.u32 %v2808_v35, %v3138_v44  ;;  %v856_v47 = vand.u32 %v2805_v37, %v3138_v44  ;;  %v291_v1 = vld [vmem:[%s3655_s1 + $0x160] sm:$0xff]  ;;  %v292_v4 = vld [vmem:[%s3655_s1 + $0x168] sm:$0xff] }
  0x2d   : > { %v2762_v7 = vcombine.high %v283_v0, %v291_v1  ;;  %v2761_v15 = vcombine.low %v283_v0, %v291_v1  ;;  %v324_v23 = vld [vmem:[%s3655_s1 + $0x268] sm:$0xff]  ;;  %v294_v0 = vld [vmem:[%s3655_s1 + $0x178] sm:$0xff] }
  0x2e   : > { %900 = vmatpush1.bf16.msra.mxu0 %v2785_v46  ;;  %1013 = vmatpush1.bf16.msra.mxu1 %v2787_v48  ;;  %v260_v46 = vld [vmem:[%s3655_s1 + $0x68] sm:$0xff]  ;;  %v862_v48 = vand.u32 %v2807_v40, %v3138_v44  ;;  %v254_v40 = vld [vmem:[%s3655_s1 + $0x38] sm:$0xff] }
  0x2f   : > { %901 = vmatprep.subr.bf16.mxu0 %v847_v49  ;;  %1014 = vmatprep.subr.bf16.mxu1 %v853_v51  ;;  %v2730_v49 = vcombine.high %v251_v42, %v259_v43  ;;  %v2732_v51 = vcombine.high %v252_v45, %v260_v46  ;;  %v2731_v62 = vcombine.low %v252_v45, %v260_v46  ;;  %v332_v24 = vld [vmem:[%s3655_s1 + $0x2a8] sm:$0x11] }
  0x32   : > { %902 = vmatpush1.bf16.msra.mxu0 %v844_v56  ;;  %1015 = vmatpush1.bf16.msra.mxu1 %v850_v57  ;;  %v267_v56 = vld [vmem:[%s3655_s1 + $0xa0] sm:$0xff] }
  0x33   : > { %1117 = vmatprep.subr.bf16.mxu0 %v2726_v58  ;;  %1230 = vmatprep.subr.bf16.mxu1 %v2728_v59  ;;  %v275_v57 = vld [vmem:[%s3655_s1 + $0xe0] sm:$0xff]  ;;  %v2729_v58 = vcombine.low %v251_v42, %v259_v43  ;;  %v268_v59 = vld [vmem:[%s3655_s1 + $0xa8] sm:$0xff] }
  0x34   : > { %v2745_v5 = vcombine.low %v267_v56, %v275_v57 }
  0x35   : > { %2817 = vmatmul.mubr.msk.bf16.vlgmr.msra.gmra.mrb[0].mxu0 %vm815_vm1, %v3157_v60  ;;  %2825 = vmatmul.mubr.msk.bf16.vlgmr.msra.gmra.mrb[0].mxu1 %vm815_vm1, %v3157_v60 }
  0x36   : > { %1118 = vmatpush1.bf16.msra.mxu0 %v2725_v63  ;;  %1231 = vmatpush1.bf16.msra.mxu1 %v2727_v2  ;;  %v2746_v63 = vcombine.high %v267_v56, %v275_v57  ;;  %v2748_v2 = vcombine.high %v268_v59, %v276_v61  ;;  %v278_v56 = vld [vmem:[%s3655_s1 + $0xf8] sm:$0xff] }
  0x37   : > { %933 = vmatprep.mubr.bf16.mxu0 %v2992_v10  ;;  %1046 = vmatprep.mubr.bf16.mxu1 %v2992_v10 }
  0x38   : > { %1119 = vmatprep.subr.bf16.mxu0 %v2742_v3  ;;  %1232 = vmatprep.subr.bf16.mxu1 %v2744_v6  ;;  %v284_v3 = vld [vmem:[%s3655_s1 + $0x128] sm:$0xff]  ;;  %v2747_v6 = vcombine.low %v268_v59, %v276_v61  ;;  %v285_v59 = vld [vmem:[%s3655_s1 + $0x130] sm:$0xff] }
  0x39   : > { %v2764_v8 = vcombine.high %v284_v3, %v292_v4  ;;  %v2763_v16 = vcombine.low %v284_v3, %v292_v4  ;;  %v293_v61 = vld [vmem:[%s3655_s1 + $0x170] sm:$0xff] }
  0x3a   : > { %1120 = vmatpush1.bf16.msra.mxu0 %v2741_v9  ;;  %1233 = vmatpush1.bf16.msra.mxu1 %v2743_v11  ;;  %v299_v9 = vld [vmem:[%s3655_s1 + $0x1a0] sm:$0xff]  ;;  %v2766_v3 = vcombine.high %v285_v59, %v293_v61 }
  0x3b   : > { %1121 = vmatprep.subr.bf16.mxu0 %v2758_v12  ;;  %1234 = vmatprep.subr.bf16.mxu1 %v2760_v13  ;;  %v307_v11 = vld [vmem:[%s3655_s1 + $0x1e0] sm:$0xff]  ;;  %v300_v12 = vld [vmem:[%s3655_s1 + $0x1a8] sm:$0xff] }
  0x3c   : > { %v308_v13 = vld [vmem:[%s3655_s1 + $0x1e8] sm:$0xff]  ;;  %v2778_v17 = vcombine.high %v299_v9, %v307_v11  ;;  %v2777_v25 = vcombine.low %v299_v9, %v307_v11  ;;  %v2765_v9 = vcombine.low %v285_v59, %v293_v61 }
  0x3d   : > { %2818 = vmatmul.mubr.msk.bf16.gmra.mrb[4].mxu0 %vm815_vm1, %v3190_v14  ;;  %2826 = vmatmul.mubr.msk.bf16.gmra.mrb[4].mxu1 %vm815_vm1, %v3190_v14  ;;  %v2780_v18 = vcombine.high %v300_v12, %v308_v13  ;;  %v2779_v26 = vcombine.low %v300_v12, %v308_v13 }
  0x3e   : > { %943 = vmatprep.mubr.bf16.mxu0 %v2992_v10  ;;  %1056 = vmatprep.mubr.bf16.mxu1 %v2992_v10 }
  0x3f   : > { %1122 = vmatpush1.bf16.msra.mxu0 %v2757_v19  ;;  %1235 = vmatpush1.bf16.msra.mxu1 %v2759_v20  ;;  %v315_v19 = vld [vmem:[%s3655_s1 + $0x220] sm:$0xff] }
  0x40   : > { %1123 = vmatprep.subr.bf16.mxu0 %v2774_v21  ;;  %1236 = vmatprep.subr.bf16.mxu1 %v2776_v22  ;;  %v323_v20 = vld [vmem:[%s3655_s1 + $0x260] sm:$0xff]  ;;  %v316_v22 = vld [vmem:[%s3655_s1 + $0x228] sm:$0xff] }
  0x41   : > { %v331_v21 = vld [vmem:[%s3655_s1 + $0x2a0] sm:$0x11]  ;;  %v2794_v27 = vcombine.high %v315_v19, %v323_v20 }
  0x42   : > { %v2810_v28 = vcombine.high %v331_v21, %v331_v21  ;;  %v2809_v32 = vcombine.low %v331_v21, %v331_v21 }
  0x43   : > { %1124 = vmatpush1.bf16.msra.mxu0 %v2773_v29  ;;  %1237 = vmatpush1.bf16.msra.mxu1 %v2775_v30  ;;  %v2796_v29 = vcombine.high %v316_v22, %v324_v23  ;;  %v2812_v30 = vcombine.high %v332_v24, %v332_v24 }
  0x44   : > { %1125 = vmatprep.subr.bf16.mxu0 %v2790_v31  ;;  %1238 = vmatprep.subr.bf16.mxu1 %v2792_v34  ;;  %v2793_v31 = vcombine.low %v315_v19, %v323_v20  ;;  %v2795_v34 = vcombine.low %v316_v22, %v324_v23  ;;  %v871_v35 = vand.u32 %v2810_v28, %v3138_v44  ;;  %v326_v19 = vld [vmem:[%s3655_s1 + $0x278] sm:$0xff] }
  0x45   : > { %2819 = vmatmul.mubr.msk.bf16.gmra.mrb[8].mxu0 %vm815_vm1, %v3229_v33  ;;  %2827 = vmatmul.mubr.msk.bf16.gmra.mrb[8].mxu1 %vm815_vm1, %v3229_v33  ;;  %v877_v37 = vand.u32 %v2812_v30, %v3138_v44  ;;  %v868_v42 = vand.u32 %v2809_v32, %v3138_v44  ;;  %v334_v20 = vld [vmem:[%s3655_s1 + $0x2b8] sm:$0x11] }
  0x46   : > { %953 = vmatprep.mubr.bf16.mxu0 %v2992_v10  ;;  %1066 = vmatprep.mubr.bf16.mxu1 %v2992_v10 }
  0x47   : > { %1126 = vmatpush1.bf16.msra.mxu0 %v2789_v36  ;;  %1239 = vmatpush1.bf16.msra.mxu1 %v2791_v38  ;;  %v2811_v36 = vcombine.low %v332_v24, %v332_v24  ;;  %v253_v38 = vld [vmem:[%s3655_s1 + $0x30] sm:$0xff] }
  0x48   : > { %1127 = vmatprep.subr.bf16.mxu0 %v859_v39  ;;  %1240 = vmatprep.subr.bf16.mxu1 %v865_v41  ;;  %v261_v39 = vld [vmem:[%s3655_s1 + $0x70] sm:$0xff]  ;;  %v262_v41 = vld [vmem:[%s3655_s1 + $0x78] sm:$0xff] }
  0x49   : > { %v874_v43 = vand.u32 %v2811_v36, %v3138_v44  ;;  %v2734_v45 = vcombine.high %v253_v38, %v261_v39  ;;  %v2736_v46 = vcombine.high %v254_v40, %v262_v41  ;;  %v2735_v57 = vcombine.low %v254_v40, %v262_v41 }
  0x4b   : > { %1128 = vmatpush1.bf16.msra.mxu0 %v856_v47  ;;  %1241 = vmatpush1.bf16.msra.mxu1 %v862_v48  ;;  %v269_v47 = vld [vmem:[%s3655_s1 + $0xb0] sm:$0xff] }
  0x4c   : > { %1343 = vmatprep.subr.bf16.mxu0 %v2730_v49  ;;  %1456 = vmatprep.subr.bf16.mxu1 %v2732_v51  ;;  %v277_v48 = vld [vmem:[%s3655_s1 + $0xf0] sm:$0xff]  ;;  %v2733_v49 = vcombine.low %v253_v38, %v261_v39  ;;  %v270_v51 = vld [vmem:[%s3655_s1 + $0xb8] sm:$0xff] }
  0x4d   : > { %2820 = vmatmul.mubr.msk.bf16.gmra.mrb[12].mxu0 %vm815_vm1, %v3254_v50  ;;  %2828 = vmatmul.mubr.msk.bf16.gmra.mrb[12].mxu1 %vm815_vm1, %v3254_v50  ;;  %v2749_v1 = vcombine.low %v269_v47, %v277_v48 }
  0x4e   : > { %963 = vmatprep.mubr.bf16.mxu0 %v2992_v10  ;;  %1076 = vmatprep.mubr.bf16.mxu1 %v2992_v10 }
  0x55   : > { %2821 = vmatmul.mubr.msk.bf16.gmra.mrb[16].mxu0 %vm815_vm1, %v3263_v52  ;;  %2829 = vmatmul.mubr.msk.bf16.gmra.mrb[16].mxu1 %vm815_vm1, %v3263_v52 }
  0x56   : > { %973 = vmatprep.mubr.bf16.mxu0 %v2992_v10  ;;  %1086 = vmatprep.mubr.bf16.mxu1 %v2992_v10 }
  0x5d   : > { %2822 = vmatmul.mubr.msk.bf16.gmra.mrb[20].mxu0 %vm815_vm1, %v3272_v53  ;;  %2830 = vmatmul.mubr.msk.bf16.gmra.mrb[20].mxu1 %vm815_vm1, %v3272_v53 }
  0x5e   : > { %983 = vmatprep.mubr.bf16.mxu0 %v2992_v10  ;;  %1096 = vmatprep.mubr.bf16.mxu1 %v2992_v10 }
  0x65   : > { %2823 = vmatmul.mubr.msk.bf16.gmra.mrb[24].mxu0 %vm815_vm1, %v3281_v54  ;;  %2831 = vmatmul.mubr.msk.bf16.gmra.mrb[24].mxu1 %vm815_vm1, %v3281_v54 }
  0x66   : > { %993 = vmatprep.mubr.bf16.mxu0 %v2992_v10  ;;  %1106 = vmatprep.mubr.bf16.mxu1 %v2992_v10 }
  0x6d   : > { %2824 = vmatmul.mubr.msk.bf16.gmra.mrb[28].mxu0 %vm815_vm1, %v3290_v55  ;;  %2832 = vmatmul.mubr.msk.bf16.gmra.mrb[28].mxu1 %vm815_vm1, %v3290_v55 }
  0x6e   : > { %1149 = vmatprep.mubr.bf16.mxu0 %v2992_v10  ;;  %1262 = vmatprep.mubr.bf16.mxu1 %v2992_v10 }
  0x75   : > { %2833 = vmatmul.mubr.msk.bf16.vlgmr.msra.gmra.mrb[32].mxu0 %vm815_vm1, %v3157_v60  ;;  %2841 = vmatmul.mubr.msk.bf16.vlgmr.msra.gmra.mrb[32].mxu1 %vm815_vm1, %v3157_v60 }
  0x76   : > { %1344 = vmatpush1.bf16.msra.mxu0 %v2729_v58  ;;  %1457 = vmatpush1.bf16.msra.mxu1 %v2731_v62  ;;  %v2750_v58 = vcombine.high %v269_v47, %v277_v48  ;;  %v2752_v62 = vcombine.high %v270_v51, %v278_v56 }
  0x77   : > { %1159 = vmatprep.mubr.bf16.mxu0 %v2992_v10  ;;  %1272 = vmatprep.mubr.bf16.mxu1 %v2992_v10 }
  0x78   : > { %1345 = vmatprep.subr.bf16.mxu0 %v2746_v63  ;;  %1458 = vmatprep.subr.bf16.mxu1 %v2748_v2  ;;  %v286_v63 = vld [vmem:[%s3655_s1 + $0x138] sm:$0xff]  ;;  %v2751_v2 = vcombine.low %v270_v51, %v278_v56 }
  0x79   : > { %v2768_v4 = vcombine.high %v286_v63, %v294_v0  ;;  %v2767_v11 = vcombine.low %v286_v63, %v294_v0 }
  0x7a   : > { %1346 = vmatpush1.bf16.msra.mxu0 %v2745_v5  ;;  %1459 = vmatpush1.bf16.msra.mxu1 %v2747_v6  ;;  %v301_v5 = vld [vmem:[%s3655_s1 + $0x1b0] sm:$0xff] }
  0x7b   : > { %1347 = vmatprep.subr.bf16.mxu0 %v2762_v7  ;;  %1460 = vmatprep.subr.bf16.mxu1 %v2764_v8  ;;  %v309_v6 = vld [vmem:[%s3655_s1 + $0x1f0] sm:$0xff]  ;;  %v302_v7 = vld [vmem:[%s3655_s1 + $0x1b8] sm:$0xff] }
  0x7c   : > { %v310_v8 = vld [vmem:[%s3655_s1 + $0x1f8] sm:$0xff]  ;;  %v2782_v12 = vcombine.high %v301_v5, %v309_v6  ;;  %v2781_v21 = vcombine.low %v301_v5, %v309_v6 }
  0x7d   : > { %2834 = vmatmul.mubr.msk.bf16.gmra.mrb[36].mxu0 %vm815_vm1, %v3190_v14  ;;  %2842 = vmatmul.mubr.msk.bf16.gmra.mrb[36].mxu1 %vm815_vm1, %v3190_v14  ;;  %v2784_v13 = vcombine.high %v302_v7, %v310_v8  ;;  %v2783_v22 = vcombine.low %v302_v7, %v310_v8 }
  0x7e   : > { %1169 = vmatprep.mubr.bf16.mxu0 %v2992_v10  ;;  %1282 = vmatprep.mubr.bf16.mxu1 %v2992_v10 }
  0x7f   : > { %1348 = vmatpush1.bf16.msra.mxu0 %v2761_v15  ;;  %1461 = vmatpush1.bf16.msra.mxu1 %v2763_v16  ;;  %v317_v15 = vld [vmem:[%s3655_s1 + $0x230] sm:$0xff] }
  0x80   : > { %1349 = vmatprep.subr.bf16.mxu0 %v2778_v17  ;;  %1462 = vmatprep.subr.bf16.mxu1 %v2780_v18  ;;  %v325_v16 = vld [vmem:[%s3655_s1 + $0x270] sm:$0xff]  ;;  %v318_v18 = vld [vmem:[%s3655_s1 + $0x238] sm:$0xff] }
  0x81   : > { %v333_v17 = vld [vmem:[%s3655_s1 + $0x2b0] sm:$0x11]  ;;  %v2798_v23 = vcombine.high %v317_v15, %v325_v16 }
  0x82   : > { %v2814_v24 = vcombine.high %v333_v17, %v333_v17  ;;  %v2813_v28 = vcombine.low %v333_v17, %v333_v17 }
  0x83   : > { %1350 = vmatpush1.bf16.msra.mxu0 %v2777_v25  ;;  %1463 = vmatpush1.bf16.msra.mxu1 %v2779_v26  ;;  %v2800_v25 = vcombine.high %v318_v18, %v326_v19  ;;  %v2816_v26 = vcombine.high %v334_v20, %v334_v20 }
  0x84   : > { %1351 = vmatprep.subr.bf16.mxu0 %v2794_v27  ;;  %1464 = vmatprep.subr.bf16.mxu1 %v2796_v29  ;;  %v2797_v27 = vcombine.low %v317_v15, %v325_v16  ;;  %v2799_v29 = vcombine.low %v318_v18, %v326_v19  ;;  %v883_v30 = vand.u32 %v2814_v24, %v3138_v44 }
  0x85   : > { %2835 = vmatmul.mubr.msk.bf16.gmra.mrb[40].mxu0 %vm815_vm1, %v3229_v33  ;;  %2843 = vmatmul.mubr.msk.bf16.gmra.mrb[40].mxu1 %vm815_vm1, %v3229_v33  ;;  %v889_v32 = vand.u32 %v2816_v26, %v3138_v44 }
  0x86   : > { %1179 = vmatprep.mubr.bf16.mxu0 %v2992_v10  ;;  %1292 = vmatprep.mubr.bf16.mxu1 %v2992_v10 }
  0x87   : > { %1352 = vmatpush1.bf16.msra.mxu0 %v2793_v31  ;;  %1465 = vmatpush1.bf16.msra.mxu1 %v2795_v34  ;;  %v2815_v31 = vcombine.low %v334_v20, %v334_v20  ;;  %v880_v34 = vand.u32 %v2813_v28, %v3138_v44 }
  0x88   : > { %1353 = vmatprep.subr.bf16.mxu0 %v871_v35  ;;  %1466 = vmatprep.subr.bf16.mxu1 %v877_v37 }
  0x89   : > { %v886_v35 = vand.u32 %v2815_v31, %v3138_v44 }
  0x8b   : > { %1354 = vmatpush1.bf16.msra.mxu0 %v868_v42  ;;  %1467 = vmatpush1.bf16.msra.mxu1 %v874_v43 }
  0x8c   : > { %1569 = vmatprep.subr.bf16.mxu0 %v2734_v45  ;;  %1682 = vmatprep.subr.bf16.mxu1 %v2736_v46 }
  0x8d   : > { %2836 = vmatmul.mubr.msk.bf16.gmra.mrb[44].mxu0 %vm815_vm1, %v3254_v50  ;;  %2844 = vmatmul.mubr.msk.bf16.gmra.mrb[44].mxu1 %vm815_vm1, %v3254_v50 }
  0x8e   : > { %1189 = vmatprep.mubr.bf16.mxu0 %v2992_v10  ;;  %1302 = vmatprep.mubr.bf16.mxu1 %v2992_v10 }
  0x95   : > { %2837 = vmatmul.mubr.msk.bf16.gmra.mrb[48].mxu0 %vm815_vm1, %v3263_v52  ;;  %2845 = vmatmul.mubr.msk.bf16.gmra.mrb[48].mxu1 %vm815_vm1, %v3263_v52 }
  0x96   : > { %1199 = vmatprep.mubr.bf16.mxu0 %v2992_v10  ;;  %1312 = vmatprep.mubr.bf16.mxu1 %v2992_v10 }
  0x9d   : > { %2838 = vmatmul.mubr.msk.bf16.gmra.mrb[52].mxu0 %vm815_vm1, %v3272_v53  ;;  %2846 = vmatmul.mubr.msk.bf16.gmra.mrb[52].mxu1 %vm815_vm1, %v3272_v53 }
  0x9e   : > { %1209 = vmatprep.mubr.bf16.mxu0 %v2992_v10  ;;  %1322 = vmatprep.mubr.bf16.mxu1 %v2992_v10 }
  0xa5   : > { %2839 = vmatmul.mubr.msk.bf16.gmra.mrb[56].mxu0 %vm815_vm1, %v3281_v54  ;;  %2847 = vmatmul.mubr.msk.bf16.gmra.mrb[56].mxu1 %vm815_vm1, %v3281_v54 }
  0xa6   : > { %1219 = vmatprep.mubr.bf16.mxu0 %v2992_v10  ;;  %1332 = vmatprep.mubr.bf16.mxu1 %v2992_v10 }
  0xad   : > { %2840 = vmatmul.mubr.msk.bf16.gmra.mrb[60].mxu0 %vm815_vm1, %v3290_v55  ;;  %2848 = vmatmul.mubr.msk.bf16.gmra.mrb[60].mxu1 %vm815_vm1, %v3290_v55 }
  0xae   : > { %1375 = vmatprep.mubr.bf16.mxu0 %v2992_v10  ;;  %1488 = vmatprep.mubr.bf16.mxu1 %v2992_v10 }
  0xb5   : > { %2849 = vmatmul.mubr.msk.bf16.vlgmr.msra.gmra.mrb[64].mxu0 %vm815_vm1, %v3157_v60  ;;  %2857 = vmatmul.mubr.msk.bf16.vlgmr.msra.gmra.mrb[64].mxu1 %vm815_vm1, %v3157_v60 }
  0xb6   : > { %1570 = vmatpush1.bf16.msra.mxu0 %v2733_v49  ;;  %1683 = vmatpush1.bf16.msra.mxu1 %v2735_v57 }
  0xb7   : > { %1385 = vmatprep.mubr.bf16.mxu0 %v2992_v10  ;;  %1498 = vmatprep.mubr.bf16.mxu1 %v2992_v10 }
  0xb8   : > { %1571 = vmatprep.subr.bf16.mxu0 %v2750_v58  ;;  %1684 = vmatprep.subr.bf16.mxu1 %v2752_v62 }
  0xba   : > { %1572 = vmatpush1.bf16.msra.mxu0 %v2749_v1  ;;  %1685 = vmatpush1.bf16.msra.mxu1 %v2751_v2 }
  0xbb   : > { %1573 = vmatprep.subr.bf16.mxu0 %v2766_v3  ;;  %1686 = vmatprep.subr.bf16.mxu1 %v2768_v4 }
  0xbd   : > { %2850 = vmatmul.mubr.msk.bf16.gmra.mrb[68].mxu0 %vm815_vm1, %v3190_v14  ;;  %2858 = vmatmul.mubr.msk.bf16.gmra.mrb[68].mxu1 %vm815_vm1, %v3190_v14 }
  0xbe   : > { %1395 = vmatprep.mubr.bf16.mxu0 %v2992_v10  ;;  %1508 = vmatprep.mubr.bf16.mxu1 %v2992_v10 }
  0xbf   : > { %1574 = vmatpush1.bf16.msra.mxu0 %v2765_v9  ;;  %1687 = vmatpush1.bf16.msra.mxu1 %v2767_v11 }
  0xc0   : > { %1575 = vmatprep.subr.bf16.mxu0 %v2782_v12  ;;  %1688 = vmatprep.subr.bf16.mxu1 %v2784_v13 }
  0xc3   : > { %1576 = vmatpush1.bf16.msra.mxu0 %v2781_v21  ;;  %1689 = vmatpush1.bf16.msra.mxu1 %v2783_v22 }
  0xc4   : > { %1577 = vmatprep.subr.bf16.mxu0 %v2798_v23  ;;  %1690 = vmatprep.subr.bf16.mxu1 %v2800_v25 }
  0xc5   : > { %2851 = vmatmul.mubr.msk.bf16.gmra.mrb[72].mxu0 %vm815_vm1, %v3229_v33  ;;  %2859 = vmatmul.mubr.msk.bf16.gmra.mrb[72].mxu1 %vm815_vm1, %v3229_v33 }
  0xc6   : > { %1405 = vmatprep.mubr.bf16.mxu0 %v2992_v10  ;;  %1518 = vmatprep.mubr.bf16.mxu1 %v2992_v10 }
  0xc7   : > { %1578 = vmatpush1.bf16.msra.mxu0 %v2797_v27  ;;  %1691 = vmatpush1.bf16.msra.mxu1 %v2799_v29 }
  0xc8   : > { %1579 = vmatprep.subr.bf16.mxu0 %v883_v30  ;;  %1692 = vmatprep.subr.bf16.mxu1 %v889_v32 }
  0xcb   : > { %1580 = vmatpush1.bf16.msra.mxu0 %v880_v34  ;;  %1693 = vmatpush1.bf16.msra.mxu1 %v886_v35 }
  0xcd   : > { %2852 = vmatmul.mubr.msk.bf16.gmra.mrb[76].mxu0 %vm815_vm1, %v3254_v50  ;;  %2860 = vmatmul.mubr.msk.bf16.gmra.mrb[76].mxu1 %vm815_vm1, %v3254_v50 }
  0xce   : > { %1415 = vmatprep.mubr.bf16.mxu0 %v2992_v10  ;;  %1528 = vmatprep.mubr.bf16.mxu1 %v2992_v10 }
  0xd5   : > { %2853 = vmatmul.mubr.msk.bf16.gmra.mrb[80].mxu0 %vm815_vm1, %v3263_v52  ;;  %2861 = vmatmul.mubr.msk.bf16.gmra.mrb[80].mxu1 %vm815_vm1, %v3263_v52 }
  0xd6   : > { %1425 = vmatprep.mubr.bf16.mxu0 %v2992_v10  ;;  %1538 = vmatprep.mubr.bf16.mxu1 %v2992_v10 }
  0xdd   : > { %2854 = vmatmul.mubr.msk.bf16.gmra.mrb[84].mxu0 %vm815_vm1, %v3272_v53  ;;  %2862 = vmatmul.mubr.msk.bf16.gmra.mrb[84].mxu1 %vm815_vm1, %v3272_v53 }
  0xde   : > { %1435 = vmatprep.mubr.bf16.mxu0 %v2992_v10  ;;  %1548 = vmatprep.mubr.bf16.mxu1 %v2992_v10 }
  0xe5   : > { %2855 = vmatmul.mubr.msk.bf16.gmra.mrb[88].mxu0 %vm815_vm1, %v3281_v54  ;;  %2863 = vmatmul.mubr.msk.bf16.gmra.mrb[88].mxu1 %vm815_vm1, %v3281_v54 }
  0xe6   : > { %1445 = vmatprep.mubr.bf16.mxu0 %v2992_v10  ;;  %1558 = vmatprep.mubr.bf16.mxu1 %v2992_v10 }
  0xed   : > { %2856 = vmatmul.mubr.msk.bf16.gmra.mrb[92].mxu0 %vm815_vm1, %v3290_v55  ;;  %2864 = vmatmul.mubr.msk.bf16.gmra.mrb[92].mxu1 %vm815_vm1, %v3290_v55 }
  0xee   : > { %1601 = vmatprep.mubr.bf16.mxu0 %v2992_v10  ;;  %1714 = vmatprep.mubr.bf16.mxu1 %v2992_v10 }
  0xf5   : > { %2865 = vmatmul.mubr.msk.bf16.vlgmr.msra.gmra.mrb[96].mxu0 %vm815_vm1, %v3157_v60  ;;  %2873 = vmatmul.mubr.msk.bf16.vlgmr.msra.gmra.mrb[96].mxu1 %vm815_vm1, %v3157_v60 }
  0xf6   : > { %1611 = vmatprep.mubr.bf16.mxu0 %v2992_v10  ;;  %1724 = vmatprep.mubr.bf16.mxu1 %v2992_v10 }
  0xfd   : > { %2866 = vmatmul.mubr.msk.bf16.gmra.mrb[100].mxu0 %vm815_vm1, %v3190_v14  ;;  %2874 = vmatmul.mubr.msk.bf16.gmra.mrb[100].mxu1 %vm815_vm1, %v3190_v14 }
  0xfe   : > { %1621 = vmatprep.mubr.bf16.mxu0 %v2992_v10  ;;  %1734 = vmatprep.mubr.bf16.mxu1 %v2992_v10 }
 0x105   : > { %2867 = vmatmul.mubr.msk.bf16.gmra.mrb[104].mxu0 %vm815_vm1, %v3229_v33  ;;  %2875 = vmatmul.mubr.msk.bf16.gmra.mrb[104].mxu1 %vm815_vm1, %v3229_v33 }
 0x106   : > { %1631 = vmatprep.mubr.bf16.mxu0 %v2992_v10  ;;  %1744 = vmatprep.mubr.bf16.mxu1 %v2992_v10 }
 0x108   : > { %v925_v44 = vpop.f32.mrb[0].mxu0  ;;  %v1038_v60 = vpop.f32.mrb[0].mxu1 }
 0x109   : > { %v927_v36 = vpop.f32.mrb[1].mxu0  ;;  %v1040_v37 = vpop.f32.mrb[1].mxu1  ;;  %v1795_v14 = vmax.f32 %v925_v44, 0.0  ;;  %v1797_v42 = vmax.f32 %v1038_v60, 0.0 }
 0x10a   : > { %v929_v38 = vpop.f32.mrb[2].mxu0  ;;  %v1042_v40 = vpop.f32.mrb[2].mxu1  ;;  %v1796_v43 = vmax.f32 %v927_v36, 0.0  ;;  %v1798_v48 = vmax.f32 %v1040_v37, 0.0 }
 0x10b   : > { %v1811_v39 = vmax.f32 %v929_v38, 0.0  ;;  %v931_v41 = vpop.f32.mrb[3].mxu0  ;;  %v1813_v45 = vmax.f32 %v1042_v40, 0.0  ;;  %v1044_v47 = vpop.f32.mrb[3].mxu1 }
 0x10c   : > { %v1812_v46 = vmax.f32 %v931_v41, 0.0  ;;  %v1814_v49 = vmax.f32 %v1044_v47, 0.0 }
 0x10d   : > { %v2053_v33 = vadd.f32 %v1811_v39, %v1795_v14  ;;  %2868 = vmatmul.mubr.msk.bf16.gmra.mrb[108].mxu0 %vm815_vm1, %v3254_v50  ;;  %v2095_v51 = vadd.f32 %v1813_v45, %v1797_v42  ;;  %2876 = vmatmul.mubr.msk.bf16.gmra.mrb[108].mxu1 %vm815_vm1, %v3254_v50 }
 0x10e   : > { %v2074_v56 = vadd.f32 %v1812_v46, %v1796_v43  ;;  %1641 = vmatprep.mubr.bf16.mxu0 %v2992_v10  ;;  %v2116_v57 = vadd.f32 %v1814_v49, %v1798_v48  ;;  %1754 = vmatprep.mubr.bf16.mxu1 %v2992_v10 }
 0x110   : > { %v935_v58 = vpop.f32.mrb[4].mxu0  ;;  %v1048_v61 = vpop.f32.mrb[4].mxu1 }
 0x111   : > { %v1827_v59 = vmax.f32 %v935_v58, 0.0  ;;  %v937_v62 = vpop.f32.mrb[5].mxu0  ;;  %v1829_v63 = vmax.f32 %v1048_v61, 0.0  ;;  %v1050_v1 = vpop.f32.mrb[5].mxu1 }
 0x112   : > { %v1828_v0 = vmax.f32 %v937_v62, 0.0  ;;  %v939_v2 = vpop.f32.mrb[6].mxu0  ;;  %v1830_v4 = vmax.f32 %v1050_v1, 0.0  ;;  %v1052_v6 = vpop.f32.mrb[6].mxu1 }
 0x113   : > { %v2054_v3 = vadd.f32 %v2053_v33, %v1827_v59  ;;  %v1843_v5 = vmax.f32 %v939_v2, 0.0  ;;  %v941_v7 = vpop.f32.mrb[7].mxu0  ;;  %v2096_v8 = vadd.f32 %v2095_v51, %v1829_v63  ;;  %v1845_v9 = vmax.f32 %v1052_v6, 0.0  ;;  %v1054_v12 = vpop.f32.mrb[7].mxu1 }
 0x114   : > { %v2075_v50 = vadd.f32 %v2074_v56, %v1828_v0  ;;  %v1844_v11 = vmax.f32 %v941_v7, 0.0  ;;  %v2117_v13 = vadd.f32 %v2116_v57, %v1830_v4  ;;  %v1846_v16 = vmax.f32 %v1054_v12, 0.0 }
 0x115   : > { %v2055_v15 = vadd.f32 %v2054_v3, %v1843_v5  ;;  %2869 = vmatmul.mubr.msk.bf16.gmra.mrb[112].mxu0 %vm815_vm1, %v3263_v52  ;;  %v2097_v17 = vadd.f32 %v2096_v8, %v1845_v9  ;;  %2877 = vmatmul.mubr.msk.bf16.gmra.mrb[112].mxu1 %vm815_vm1, %v3263_v52 }
 0x116   : > { %v2076_v18 = vadd.f32 %v2075_v50, %v1844_v11  ;;  %1651 = vmatprep.mubr.bf16.mxu0 %v2992_v10  ;;  %v2118_v19 = vadd.f32 %v2117_v13, %v1846_v16  ;;  %1764 = vmatprep.mubr.bf16.mxu1 %v2992_v10 }
 0x118   : > { %v945_v20 = vpop.f32.mrb[8].mxu0  ;;  %v1058_v22 = vpop.f32.mrb[8].mxu1 }
 0x119   : > { %v1859_v21 = vmax.f32 %v945_v20, 0.0  ;;  %v947_v23 = vpop.f32.mrb[9].mxu0  ;;  %v1861_v24 = vmax.f32 %v1058_v22, 0.0  ;;  %v1060_v26 = vpop.f32.mrb[9].mxu1 }
 0x11a   : > { %v1860_v25 = vmax.f32 %v947_v23, 0.0  ;;  %v949_v27 = vpop.f32.mrb[10].mxu0  ;;  %v1862_v29 = vmax.f32 %v1060_v26, 0.0  ;;  %v1062_v31 = vpop.f32.mrb[10].mxu1 }
 0x11b   : > { %v2056_v28 = vadd.f32 %v2055_v15, %v1859_v21  ;;  %v1875_v30 = vmax.f32 %v949_v27, 0.0  ;;  %v951_v32 = vpop.f32.mrb[11].mxu0  ;;  %v2098_v34 = vadd.f32 %v2097_v17, %v1861_v24  ;;  %v1877_v35 = vmax.f32 %v1062_v31, 0.0  ;;  %v1064_v60 = vpop.f32.mrb[11].mxu1 }
 0x11c   : > { %v2077_v52 = vadd.f32 %v2076_v18, %v1860_v25  ;;  %v1876_v44 = vmax.f32 %v951_v32, 0.0  ;;  %v2119_v36 = vadd.f32 %v2118_v19, %v1862_v29  ;;  %v1878_v38 = vmax.f32 %v1064_v60, 0.0 }
 0x11d   : > { %v2057_v37 = vadd.f32 %v2056_v28, %v1875_v30  ;;  %2870 = vmatmul.mubr.msk.bf16.gmra.mrb[116].mxu0 %vm815_vm1, %v3272_v53  ;;  %v2099_v14 = vadd.f32 %v2098_v34, %v1877_v35  ;;  %2878 = vmatmul.mubr.msk.bf16.gmra.mrb[116].mxu1 %vm815_vm1, %v3272_v53 }
 0x11e   : > { %v2078_v39 = vadd.f32 %v2077_v52, %v1876_v44  ;;  %1661 = vmatprep.mubr.bf16.mxu0 %v2992_v10  ;;  %v2120_v40 = vadd.f32 %v2119_v36, %v1878_v38  ;;  %1774 = vmatprep.mubr.bf16.mxu1 %v2992_v10 }
 0x120   : > { %v955_v41 = vpop.f32.mrb[12].mxu0  ;;  %v1068_v43 = vpop.f32.mrb[12].mxu1 }
 0x121   : > { %v1891_v42 = vmax.f32 %v955_v41, 0.0  ;;  %v957_v45 = vpop.f32.mrb[13].mxu0  ;;  %v1893_v46 = vmax.f32 %v1068_v43, 0.0  ;;  %v1070_v48 = vpop.f32.mrb[13].mxu1 }
 0x122   : > { %v1892_v47 = vmax.f32 %v957_v45, 0.0  ;;  %v959_v33 = vpop.f32.mrb[14].mxu0  ;;  %v1894_v51 = vmax.f32 %v1070_v48, 0.0  ;;  %v1072_v57 = vpop.f32.mrb[14].mxu1 }
 0x123   : > { %v2058_v49 = vadd.f32 %v2057_v37, %v1891_v42  ;;  %v1907_v56 = vmax.f32 %v959_v33, 0.0  ;;  %v961_v58 = vpop.f32.mrb[15].mxu0  ;;  %v2100_v59 = vadd.f32 %v2099_v14, %v1893_v46  ;;  %v1909_v61 = vmax.f32 %v1072_v57, 0.0  ;;  %v1074_v63 = vpop.f32.mrb[15].mxu1 }
 0x124   : > { %v2079_v53 = vadd.f32 %v2078_v39, %v1892_v47  ;;  %v1908_v62 = vmax.f32 %v961_v58, 0.0  ;;  %v2121_v0 = vadd.f32 %v2120_v40, %v1894_v51  ;;  %v1910_v2 = vmax.f32 %v1074_v63, 0.0 }
 0x125   : > { %v2059_v1 = vadd.f32 %v2058_v49, %v1907_v56  ;;  %2871 = vmatmul.mubr.msk.bf16.gmra.mrb[120].mxu0 %vm815_vm1, %v3281_v54  ;;  %v2101_v3 = vadd.f32 %v2100_v59, %v1909_v61  ;;  %2879 = vmatmul.mubr.msk.bf16.gmra.mrb[120].mxu1 %vm815_vm1, %v3281_v54 }
 0x126   : > { %v2080_v4 = vadd.f32 %v2079_v53, %v1908_v62  ;;  %1671 = vmatprep.mubr.bf16.mxu0 %v2992_v10  ;;  %v2122_v5 = vadd.f32 %v2121_v0, %v1910_v2  ;;  %1784 = vmatprep.mubr.bf16.mxu1 %v2992_v10 }
 0x128   : > { %v965_v6 = vpop.f32.mrb[16].mxu0  ;;  %v1078_v8 = vpop.f32.mrb[16].mxu1 }
 0x129   : > { %v1923_v7 = vmax.f32 %v965_v6, 0.0  ;;  %v967_v50 = vpop.f32.mrb[17].mxu0  ;;  %v1925_v9 = vmax.f32 %v1078_v8, 0.0  ;;  %v1080_v12 = vpop.f32.mrb[17].mxu1 }
 0x12a   : > { %v1924_v11 = vmax.f32 %v967_v50, 0.0  ;;  %v969_v13 = vpop.f32.mrb[18].mxu0  ;;  %v1926_v16 = vmax.f32 %v1080_v12, 0.0  ;;  %v1082_v18 = vpop.f32.mrb[18].mxu1 }
 0x12b   : > { %v2060_v15 = vadd.f32 %v2059_v1, %v1923_v7  ;;  %v1939_v17 = vmax.f32 %v969_v13, 0.0  ;;  %v971_v19 = vpop.f32.mrb[19].mxu0  ;;  %v2102_v20 = vadd.f32 %v2101_v3, %v1925_v9  ;;  %v1941_v21 = vmax.f32 %v1082_v18, 0.0  ;;  %v1084_v23 = vpop.f32.mrb[19].mxu1 }
 0x12c   : > { %v2081_v54 = vadd.f32 %v2080_v4, %v1924_v11  ;;  %v1940_v22 = vmax.f32 %v971_v19, 0.0  ;;  %v2123_v24 = vadd.f32 %v2122_v5, %v1926_v16  ;;  %v1942_v25 = vmax.f32 %v1084_v23, 0.0 }
 0x12d   : > { %v2061_v10 = vadd.f32 %v2060_v15, %v1939_v17  ;;  %2872 = vmatmul.mubr.msk.bf16.gmra.mrb[124].mxu0 %vm815_vm1, %v3290_v55  ;;  %v2103_v26 = vadd.f32 %v2102_v20, %v1941_v21  ;;  %2880 = vmatmul.mubr.msk.bf16.gmra.mrb[124].mxu1 %vm815_vm1, %v3290_v55 }
 0x12e   : > { %v2082_v27 = vadd.f32 %v2081_v54, %v1940_v22  ;;  %v2124_v28 = vadd.f32 %v2123_v24, %v1942_v25 }
 0x130   : > { %v975_v29 = vpop.f32.mrb[20].mxu0  ;;  %v1088_v31 = vpop.f32.mrb[20].mxu1 }
 0x131   : > { %v1955_v30 = vmax.f32 %v975_v29, 0.0  ;;  %v977_v32 = vpop.f32.mrb[21].mxu0  ;;  %v1957_v34 = vmax.f32 %v1088_v31, 0.0  ;;  %v1090_v35 = vpop.f32.mrb[21].mxu1 }
 0x132   : > { %v1956_v52 = vmax.f32 %v977_v32, 0.0  ;;  %v979_v44 = vpop.f32.mrb[22].mxu0  ;;  %v1958_v36 = vmax.f32 %v1090_v35, 0.0  ;;  %v1092_v38 = vpop.f32.mrb[22].mxu1  ;;  %v2412_v35 = vlaneseq }
 0x133   : > { %v2062_v60 = vadd.f32 %v2061_v10, %v1955_v30  ;;  %v1971_v37 = vmax.f32 %v979_v44, 0.0  ;;  %v981_v14 = vpop.f32.mrb[23].mxu0  ;;  %v2104_v39 = vadd.f32 %v2103_v26, %v1957_v34  ;;  %v1973_v41 = vmax.f32 %v1092_v38, 0.0  ;;  %v1094_v43 = vpop.f32.mrb[23].mxu1 }
 0x134   : > { %v2083_v40 = vadd.f32 %v2082_v27, %v1956_v52  ;;  %v1972_v42 = vmax.f32 %v981_v14, 0.0  ;;  %v2125_v55 = vadd.f32 %v2124_v28, %v1958_v36  ;;  %v1974_v46 = vmax.f32 %v1094_v43, 0.0 }
 0x135   : > { %v2063_v45 = vadd.f32 %v2062_v60, %v1971_v37  ;;  %v2105_v47 = vadd.f32 %v2104_v39, %v1973_v41  ;;  %v2993_v26 = vmov 1966171168   ;;  %v3568_v43 = vshrl.u32 %v2412_v35, 7 }
 0x136   : > { %v2084_v48 = vadd.f32 %v2083_v40, %v1972_v42  ;;  %v2126_v33 = vadd.f32 %v2125_v55, %v1974_v46  ;;  %v2410_v27 = vunpack.c.l.s4 %v2993_v26 }
 0x138   : > { %v985_v49 = vpop.f32.mrb[24].mxu0  ;;  %v1098_v56 = vpop.f32.mrb[24].mxu1  ;;  %v2411_v40 = vunpack.c.0.s8 %v2410_v27 }
 0x139   : > { %v1987_v51 = vmax.f32 %v985_v49, 0.0  ;;  %v987_v57 = vpop.f32.mrb[25].mxu0  ;;  %v1989_v58 = vmax.f32 %v1098_v56, 0.0  ;;  %v1100_v53 = vpop.f32.mrb[25].mxu1 }
 0x13a   : > { %v1988_v59 = vmax.f32 %v987_v57, 0.0  ;;  %v989_v61 = vpop.f32.mrb[26].mxu0  ;;  %v1990_v63 = vmax.f32 %v1100_v53, 0.0  ;;  %v1102_v1 = vpop.f32.mrb[26].mxu1 }
 0x13b   : > { %v2064_v62 = vadd.f32 %v2063_v45, %v1987_v51  ;;  %v2003_v0 = vmax.f32 %v989_v61, 0.0  ;;  %v991_v2 = vpop.f32.mrb[27].mxu0  ;;  %v2106_v3 = vadd.f32 %v2105_v47, %v1989_v58  ;;  %v2005_v5 = vmax.f32 %v1102_v1, 0.0  ;;  %v1104_v7 = vpop.f32.mrb[27].mxu1 }
 0x13c   : > { %v2085_v4 = vadd.f32 %v2084_v48, %v1988_v59  ;;  %v2004_v6 = vmax.f32 %v991_v2, 0.0  ;;  %v2127_v8 = vadd.f32 %v2126_v33, %v1990_v63  ;;  %v2006_v9 = vmax.f32 %v1104_v7, 0.0 }
 0x13d   : > { %v2065_v50 = vadd.f32 %v2064_v62, %v2003_v0  ;;  %v2107_v11 = vadd.f32 %v2106_v3, %v2005_v5 }
 0x13e   : > { %v2086_v12 = vadd.f32 %v2085_v4, %v2004_v6  ;;  %v2128_v13 = vadd.f32 %v2127_v8, %v2006_v9 }
 0x140   : > { %v995_v15 = vpop.f32.mrb[28].mxu0  ;;  %v1108_v17 = vpop.f32.mrb[28].mxu1 }
 0x141   : > { %v2019_v16 = vmax.f32 %v995_v15, 0.0  ;;  %v997_v18 = vpop.f32.mrb[29].mxu0  ;;  %v2021_v19 = vmax.f32 %v1108_v17, 0.0  ;;  %v1110_v54 = vpop.f32.mrb[29].mxu1 }
 0x142   : > { %v2020_v20 = vmax.f32 %v997_v18, 0.0  ;;  %v999_v21 = vpop.f32.mrb[30].mxu0  ;;  %v2022_v23 = vmax.f32 %v1110_v54, 0.0  ;;  %v1112_v10 = vpop.f32.mrb[30].mxu1  ;;  %v3571_v54 = vsub.s32 %v2411_v40, %v3568_v43 }
 0x143   : > { %v2066_v22 = vadd.f32 %v2065_v50, %v2019_v16  ;;  %v2035_v24 = vmax.f32 %v999_v21, 0.0  ;;  %v1001_v25 = vpop.f32.mrb[31].mxu0  ;;  %v2108_v28 = vadd.f32 %v2107_v11, %v2021_v19  ;;  %v2037_v30 = vmax.f32 %v1112_v10, 0.0  ;;  %v1114_v32 = vpop.f32.mrb[31].mxu1 }
 0x144   : > { %v2087_v29 = vadd.f32 %v2086_v12, %v2020_v20  ;;  %v2036_v31 = vmax.f32 %v1001_v25, 0.0  ;;  %v2129_v34 = vadd.f32 %v2128_v13, %v2022_v23  ;;  %v2038_v44 = vmax.f32 %v1114_v32, 0.0 }
 0x145   : > { %v2067_v52 = vadd.f32 %v2066_v22, %v2035_v24  ;;  %v2109_v60 = vadd.f32 %v2108_v28, %v2037_v30 }
 0x146   : > { %v2088_v36 = vadd.f32 %v2087_v29, %v2036_v31  ;;  %v2130_v38 = vadd.f32 %v2129_v34, %v2038_v44 }
 0x147   : > { %v2068_v37 = vrot.slane %v2067_v52, 4  ;;  %v2110_v14 = vrot.slane %v2109_v60, 4 }
 0x148   : > { %v2089_v39 = vrot.slane %v2088_v36, 4  ;;  %v1151_v41 = vpop.f32.mrb[32].mxu0  ;;  %v2131_v55 = vrot.slane %v2130_v38, 4  ;;  %v1264_v46 = vpop.f32.mrb[32].mxu1 }
 0x149   : > { %v2069_v42 = vadd.f32 %v2068_v37, %v2067_v52  ;;  %v1799_v45 = vmax.f32 %v1151_v41, 0.0  ;;  %v1153_v47 = vpop.f32.mrb[33].mxu0  ;;  %v2111_v48 = vadd.f32 %v2110_v14, %v2109_v60  ;;  %v1801_v49 = vmax.f32 %v1264_v46, 0.0  ;;  %v1266_v56 = vpop.f32.mrb[33].mxu1 }
 0x14a   : > { %v2090_v33 = vadd.f32 %v2089_v39, %v2088_v36  ;;  %v1800_v51 = vmax.f32 %v1153_v47, 0.0  ;;  %v1155_v57 = vpop.f32.mrb[34].mxu0  ;;  %v2132_v59 = vadd.f32 %v2131_v55, %v2130_v38  ;;  %v1802_v53 = vmax.f32 %v1266_v56, 0.0  ;;  %v1268_v62 = vpop.f32.mrb[34].mxu1 }
 0x14b   : > { %v2070_v58 = vrot.slane %v2069_v42, 2  ;;  %v1815_v61 = vmax.f32 %v1155_v57, 0.0  ;;  %v1157_v63 = vpop.f32.mrb[35].mxu0  ;;  %v2112_v0 = vrot.slane %v2111_v48, 2  ;;  %v1817_v2 = vmax.f32 %v1268_v62, 0.0  ;;  %v1270_v4 = vpop.f32.mrb[35].mxu1 }
 0x14c   : > { %v2091_v1 = vrot.slane %v2090_v33, 2  ;;  %v1816_v3 = vmax.f32 %v1157_v63, 0.0  ;;  %v2133_v6 = vrot.slane %v2132_v59, 2  ;;  %v1818_v8 = vmax.f32 %v1270_v4, 0.0 }
 0x14d   : > { %v2071_v5 = vadd.f32 %v2070_v58, %v2069_v42  ;;  %v2137_v7 = vadd.f32 %v1815_v61, %v1799_v45  ;;  %v2113_v50 = vadd.f32 %v2112_v0, %v2111_v48  ;;  %v2179_v11 = vadd.f32 %v1817_v2, %v1801_v49 }
 0x14e   : > { %v2092_v9 = vadd.f32 %v2091_v1, %v2090_v33  ;;  %v2158_v12 = vadd.f32 %v1816_v3, %v1800_v51  ;;  %v2134_v15 = vadd.f32 %v2133_v6, %v2132_v59  ;;  %v2200_v16 = vadd.f32 %v1818_v8, %v1802_v53 }
 0x14f   : > { %v2072_v13 = vrot.slane %v2071_v5, 1  ;;  %v2114_v17 = vrot.slane %v2113_v50, 1 }
 0x150   : > { %v2093_v18 = vrot.slane %v2092_v9, 1  ;;  %v1161_v19 = vpop.f32.mrb[36].mxu0  ;;  %v2135_v21 = vrot.slane %v2134_v15, 1  ;;  %v1274_v23 = vpop.f32.mrb[36].mxu1 }
 0x151   : > { %v2073_v20 = vadd.f32 %v2072_v13, %v2071_v5  ;;  %v1831_v22 = vmax.f32 %v1161_v19, 0.0  ;;  %v1163_v24 = vpop.f32.mrb[37].mxu0  ;;  %v2115_v10 = vadd.f32 %v2114_v17, %v2113_v50  ;;  %v1833_v26 = vmax.f32 %v1274_v23, 0.0  ;;  %v1276_v28 = vpop.f32.mrb[37].mxu1 }
 0x152   : > { %v2094_v25 = vadd.f32 %v2093_v18, %v2092_v9  ;;  %v1832_v27 = vmax.f32 %v1163_v24, 0.0  ;;  %v1165_v29 = vpop.f32.mrb[38].mxu0  ;;  %v2136_v30 = vadd.f32 %v2135_v21, %v2134_v15  ;;  %v1834_v32 = vmax.f32 %v1276_v28, 0.0  ;;  %v1278_v52 = vpop.f32.mrb[38].mxu1 }
 0x153   : > { %v2138_v31 = vadd.f32 %v2137_v7, %v1831_v22  ;;  %v1847_v34 = vmax.f32 %v1165_v29, 0.0  ;;  %v1167_v35 = vpop.f32.mrb[39].mxu0  ;;  %v2180_v60 = vadd.f32 %v2179_v11, %v1833_v26  ;;  %v1849_v37 = vmax.f32 %v1278_v52, 0.0  ;;  %v1280_v38 = vpop.f32.mrb[39].mxu1 }
 0x154   : > { %v2405_v44 = vcombine.low %v2073_v20, %v2094_v25  ;;  %v2159_v36 = vadd.f32 %v2158_v12, %v1832_v27  ;;  %v2406_v14 = vcombine.low %v2115_v10, %v2136_v30  ;;  %v2201_v39 = vadd.f32 %v2200_v16, %v1834_v32 }
 0x155   : > { %v2139_v40 = vadd.f32 %v2138_v31, %v1847_v34  ;;  %v1848_v41 = vmax.f32 %v1167_v35, 0.0  ;;  %v2181_v55 = vadd.f32 %v2180_v60, %v1849_v37  ;;  %v1850_v45 = vmax.f32 %v1280_v38, 0.0 }
 0x156   : > { %v3574_v42 = vrot.slane %v2405_v44, %v3571_v54  ;;  %v3577_v46 = vrot.slane %v2406_v14, %v3571_v54 }
 0x157   : > { %v2160_v47 = vadd.f32 %v2159_v36, %v1848_v41  ;;  %v2202_v48 = vadd.f32 %v2201_v39, %v1850_v45 }
 0x158   : > { %v1171_v33 = vpop.f32.mrb[40].mxu0  ;;  %v2437_v49 = vcombine.low %v3574_v42, %v3577_v46  ;;  %v1284_v56 = vpop.f32.mrb[40].mxu1 }
 0x159   : > { %v1863_v51 = vmax.f32 %v1171_v33, 0.0  ;;  %v1173_v57 = vpop.f32.mrb[41].mxu0  ;;  %v1865_v58 = vmax.f32 %v1284_v56, 0.0  ;;  %v1286_v53 = vpop.f32.mrb[41].mxu1 }
 0x15a   : > { %v1864_v59 = vmax.f32 %v1173_v57, 0.0  ;;  %v1175_v61 = vpop.f32.mrb[42].mxu0  ;;  %v1866_v63 = vmax.f32 %v1286_v53, 0.0  ;;  %v1288_v1 = vpop.f32.mrb[42].mxu1 }
 0x15b   : > { %v2140_v62 = vadd.f32 %v2139_v40, %v1863_v51  ;;  %v1879_v0 = vmax.f32 %v1175_v61, 0.0  ;;  %v1177_v2 = vpop.f32.mrb[43].mxu0  ;;  %v2182_v3 = vadd.f32 %v2181_v55, %v1865_v58  ;;  %v1881_v5 = vmax.f32 %v1288_v1, 0.0  ;;  %v1290_v7 = vpop.f32.mrb[43].mxu1 }
 0x15c   : > { %v2161_v4 = vadd.f32 %v2160_v47, %v1864_v59  ;;  %v1880_v6 = vmax.f32 %v1177_v2, 0.0  ;;  %v2203_v8 = vadd.f32 %v2202_v48, %v1866_v63  ;;  %v1882_v9 = vmax.f32 %v1290_v7, 0.0 }
 0x15d   : > { %v2141_v50 = vadd.f32 %v2140_v62, %v1879_v0  ;;  %v2183_v11 = vadd.f32 %v2182_v3, %v1881_v5 }
 0x15e   : > { %v2162_v12 = vadd.f32 %v2161_v4, %v1880_v6  ;;  %v2204_v13 = vadd.f32 %v2203_v8, %v1882_v9 }
 0x160   : > { %v1181_v15 = vpop.f32.mrb[44].mxu0  ;;  %v1294_v17 = vpop.f32.mrb[44].mxu1 }
 0x161   : > { %v1895_v16 = vmax.f32 %v1181_v15, 0.0  ;;  %v1183_v18 = vpop.f32.mrb[45].mxu0  ;;  %v1897_v19 = vmax.f32 %v1294_v17, 0.0  ;;  %v1296_v21 = vpop.f32.mrb[45].mxu1 }
 0x162   : > { %v1896_v20 = vmax.f32 %v1183_v18, 0.0  ;;  %v1185_v22 = vpop.f32.mrb[46].mxu0  ;;  %v1898_v24 = vmax.f32 %v1296_v21, 0.0  ;;  %v1298_v25 = vpop.f32.mrb[46].mxu1 }
 0x163   : > { %v2142_v23 = vadd.f32 %v2141_v50, %v1895_v16  ;;  %v1911_v10 = vmax.f32 %v1185_v22, 0.0  ;;  %v1187_v26 = vpop.f32.mrb[47].mxu0  ;;  %v2184_v27 = vadd.f32 %v2183_v11, %v1897_v19  ;;  %v1913_v29 = vmax.f32 %v1298_v25, 0.0  ;;  %v1300_v31 = vpop.f32.mrb[47].mxu1 }
 0x164   : > { %v2163_v28 = vadd.f32 %v2162_v12, %v1896_v20  ;;  %v1912_v30 = vmax.f32 %v1187_v26, 0.0  ;;  %v2205_v32 = vadd.f32 %v2204_v13, %v1898_v24  ;;  %v1914_v52 = vmax.f32 %v1300_v31, 0.0 }
 0x165   : > { %v2143_v34 = vadd.f32 %v2142_v23, %v1911_v10  ;;  %v2185_v35 = vadd.f32 %v2184_v27, %v1913_v29 }
 0x166   : > { %v2164_v44 = vadd.f32 %v2163_v28, %v1912_v30  ;;  %v2206_v60 = vadd.f32 %v2205_v32, %v1914_v52 }
 0x168   : > { %v1191_v36 = vpop.f32.mrb[48].mxu0  ;;  %v1304_v38 = vpop.f32.mrb[48].mxu1 }
 0x169   : > { %v1927_v37 = vmax.f32 %v1191_v36, 0.0  ;;  %v1193_v14 = vpop.f32.mrb[49].mxu0  ;;  %v1929_v39 = vmax.f32 %v1304_v38, 0.0  ;;  %v1306_v41 = vpop.f32.mrb[49].mxu1 }
 0x16a   : > { %v1928_v40 = vmax.f32 %v1193_v14, 0.0  ;;  %v1195_v55 = vpop.f32.mrb[50].mxu0  ;;  %v1930_v47 = vmax.f32 %v1306_v41, 0.0  ;;  %v1308_v33 = vpop.f32.mrb[50].mxu1 }
 0x16b   : > { %v2144_v45 = vadd.f32 %v2143_v34, %v1927_v37  ;;  %v1943_v48 = vmax.f32 %v1195_v55, 0.0  ;;  %v1197_v51 = vpop.f32.mrb[51].mxu0  ;;  %v2186_v56 = vadd.f32 %v2185_v35, %v1929_v39  ;;  %v1945_v58 = vmax.f32 %v1308_v33, 0.0  ;;  %v1310_v53 = vpop.f32.mrb[51].mxu1 }
 0x16c   : > { %v2165_v57 = vadd.f32 %v2164_v44, %v1928_v40  ;;  %v1944_v59 = vmax.f32 %v1197_v51, 0.0  ;;  %v2207_v61 = vadd.f32 %v2206_v60, %v1930_v47  ;;  %v1946_v63 = vmax.f32 %v1310_v53, 0.0 }
 0x16d   : > { %v2145_v62 = vadd.f32 %v2144_v45, %v1943_v48  ;;  %v2187_v0 = vadd.f32 %v2186_v56, %v1945_v58 }
 0x16e   : > { %v2166_v1 = vadd.f32 %v2165_v57, %v1944_v59  ;;  %v2208_v2 = vadd.f32 %v2207_v61, %v1946_v63 }
 0x170   : > { %v1201_v3 = vpop.f32.mrb[52].mxu0  ;;  %v1314_v5 = vpop.f32.mrb[52].mxu1 }
 0x171   : > { %v1959_v4 = vmax.f32 %v1201_v3, 0.0  ;;  %v1203_v6 = vpop.f32.mrb[53].mxu0  ;;  %v1961_v7 = vmax.f32 %v1314_v5, 0.0  ;;  %v1316_v50 = vpop.f32.mrb[53].mxu1 }
 0x172   : > { %v1960_v8 = vmax.f32 %v1203_v6, 0.0  ;;  %v1205_v9 = vpop.f32.mrb[54].mxu0  ;;  %v1962_v12 = vmax.f32 %v1316_v50, 0.0  ;;  %v1318_v15 = vpop.f32.mrb[54].mxu1 }
 0x173   : > { %v2146_v11 = vadd.f32 %v2145_v62, %v1959_v4  ;;  %v1975_v13 = vmax.f32 %v1205_v9, 0.0  ;;  %v1207_v16 = vpop.f32.mrb[55].mxu0  ;;  %v2188_v17 = vadd.f32 %v2187_v0, %v1961_v7  ;;  %v1977_v19 = vmax.f32 %v1318_v15, 0.0  ;;  %v1320_v21 = vpop.f32.mrb[55].mxu1 }
 0x174   : > { %v2167_v18 = vadd.f32 %v2166_v1, %v1960_v8  ;;  %v1976_v20 = vmax.f32 %v1207_v16, 0.0  ;;  %v2209_v22 = vadd.f32 %v2208_v2, %v1962_v12  ;;  %v1978_v24 = vmax.f32 %v1320_v21, 0.0 }
 0x175   : > { %v2147_v23 = vadd.f32 %v2146_v11, %v1975_v13  ;;  %v2189_v10 = vadd.f32 %v2188_v17, %v1977_v19 }
 0x176   : > { %v2168_v25 = vadd.f32 %v2167_v18, %v1976_v20  ;;  %v2210_v26 = vadd.f32 %v2209_v22, %v1978_v24 }
 0x178   : > { %v1211_v27 = vpop.f32.mrb[56].mxu0  ;;  %v1324_v29 = vpop.f32.mrb[56].mxu1 }
 0x179   : > { %v1991_v28 = vmax.f32 %v1211_v27, 0.0  ;;  %v1213_v30 = vpop.f32.mrb[57].mxu0  ;;  %v1993_v31 = vmax.f32 %v1324_v29, 0.0  ;;  %v1326_v34 = vpop.f32.mrb[57].mxu1 }
 0x17a   : > { %v1992_v32 = vmax.f32 %v1213_v30, 0.0  ;;  %v1215_v52 = vpop.f32.mrb[58].mxu0  ;;  %v1994_v44 = vmax.f32 %v1326_v34, 0.0  ;;  %v1328_v36 = vpop.f32.mrb[58].mxu1 }
 0x17b   : > { %v2148_v35 = vadd.f32 %v2147_v23, %v1991_v28  ;;  %v2007_v60 = vmax.f32 %v1215_v52, 0.0  ;;  %v1217_v37 = vpop.f32.mrb[59].mxu0  ;;  %v2190_v38 = vadd.f32 %v2189_v10, %v1993_v31  ;;  %v2009_v39 = vmax.f32 %v1328_v36, 0.0  ;;  %v1330_v41 = vpop.f32.mrb[59].mxu1 }
 0x17c   : > { %v2169_v14 = vadd.f32 %v2168_v25, %v1992_v32  ;;  %v2008_v40 = vmax.f32 %v1217_v37, 0.0  ;;  %v2211_v55 = vadd.f32 %v2210_v26, %v1994_v44  ;;  %v2010_v47 = vmax.f32 %v1330_v41, 0.0 }
 0x17d   : > { %v2149_v45 = vadd.f32 %v2148_v35, %v2007_v60  ;;  %v2191_v48 = vadd.f32 %v2190_v38, %v2009_v39 }
 0x17e   : > { %v2170_v33 = vadd.f32 %v2169_v14, %v2008_v40  ;;  %v2212_v51 = vadd.f32 %v2211_v55, %v2010_v47 }
 0x180   : > { %v1221_v56 = vpop.f32.mrb[60].mxu0  ;;  %v1334_v58 = vpop.f32.mrb[60].mxu1 }
 0x181   : > { %v2023_v57 = vmax.f32 %v1221_v56, 0.0  ;;  %v1223_v59 = vpop.f32.mrb[61].mxu0  ;;  %v2025_v53 = vmax.f32 %v1334_v58, 0.0  ;;  %v1336_v62 = vpop.f32.mrb[61].mxu1 }
 0x182   : > { %v2024_v61 = vmax.f32 %v1223_v59, 0.0  ;;  %v1225_v63 = vpop.f32.mrb[62].mxu0  ;;  %v2026_v1 = vmax.f32 %v1336_v62, 0.0  ;;  %v1338_v3 = vpop.f32.mrb[62].mxu1 }
 0x183   : > { %v2150_v0 = vadd.f32 %v2149_v45, %v2023_v57  ;;  %v2039_v2 = vmax.f32 %v1225_v63, 0.0  ;;  %v1227_v4 = vpop.f32.mrb[63].mxu0  ;;  %v2192_v5 = vadd.f32 %v2191_v48, %v2025_v53  ;;  %v2041_v7 = vmax.f32 %v1338_v3, 0.0  ;;  %v1340_v50 = vpop.f32.mrb[63].mxu1 }
 0x184   : > { %v2171_v6 = vadd.f32 %v2170_v33, %v2024_v61  ;;  %v2040_v8 = vmax.f32 %v1227_v4, 0.0  ;;  %v2213_v9 = vadd.f32 %v2212_v51, %v2026_v1  ;;  %v2042_v12 = vmax.f32 %v1340_v50, 0.0 }
 0x185   : > { %v2151_v11 = vadd.f32 %v2150_v0, %v2039_v2  ;;  %v2193_v13 = vadd.f32 %v2192_v5, %v2041_v7 }
 0x186   : > { %v2172_v15 = vadd.f32 %v2171_v6, %v2040_v8  ;;  %v2214_v17 = vadd.f32 %v2213_v9, %v2042_v12 }
 0x187   : > { %v2152_v16 = vrot.slane %v2151_v11, 4  ;;  %v2194_v18 = vrot.slane %v2193_v13, 4 }
 0x188   : > { %v2173_v19 = vrot.slane %v2172_v15, 4  ;;  %v1377_v20 = vpop.f32.mrb[64].mxu0  ;;  %v2215_v22 = vrot.slane %v2214_v17, 4  ;;  %v1490_v24 = vpop.f32.mrb[64].mxu1 }
 0x189   : > { %v2153_v21 = vadd.f32 %v2152_v16, %v2151_v11  ;;  %v1803_v23 = vmax.f32 %v1377_v20, 0.0  ;;  %v1379_v10 = vpop.f32.mrb[65].mxu0  ;;  %v2195_v25 = vadd.f32 %v2194_v18, %v2193_v13  ;;  %v1805_v27 = vmax.f32 %v1490_v24, 0.0  ;;  %v1492_v29 = vpop.f32.mrb[65].mxu1 }
 0x18a   : > { %v2174_v26 = vadd.f32 %v2173_v19, %v2172_v15  ;;  %v1804_v28 = vmax.f32 %v1379_v10, 0.0  ;;  %v1381_v30 = vpop.f32.mrb[66].mxu0  ;;  %v2216_v32 = vadd.f32 %v2215_v22, %v2214_v17  ;;  %v1806_v34 = vmax.f32 %v1492_v29, 0.0  ;;  %v1494_v35 = vpop.f32.mrb[66].mxu1 }
 0x18b   : > { %v2154_v31 = vrot.slane %v2153_v21, 2  ;;  %v1819_v52 = vmax.f32 %v1381_v30, 0.0  ;;  %v1383_v44 = vpop.f32.mrb[67].mxu0  ;;  %v2196_v60 = vrot.slane %v2195_v25, 2  ;;  %v1821_v37 = vmax.f32 %v1494_v35, 0.0  ;;  %v1496_v14 = vpop.f32.mrb[67].mxu1 }
 0x18c   : > { %v2175_v36 = vrot.slane %v2174_v26, 2  ;;  %v1820_v38 = vmax.f32 %v1383_v44, 0.0  ;;  %v2217_v40 = vrot.slane %v2216_v32, 2  ;;  %v1822_v55 = vmax.f32 %v1496_v14, 0.0 }
 0x18d   : > { %v2155_v39 = vadd.f32 %v2154_v31, %v2153_v21  ;;  %v2221_v41 = vadd.f32 %v1819_v52, %v1803_v23  ;;  %v2197_v45 = vadd.f32 %v2196_v60, %v2195_v25  ;;  %v2263_v48 = vadd.f32 %v1821_v37, %v1805_v27 }
 0x18e   : > { %v2176_v47 = vadd.f32 %v2175_v36, %v2174_v26  ;;  %v2242_v33 = vadd.f32 %v1820_v38, %v1804_v28  ;;  %v2218_v56 = vadd.f32 %v2217_v40, %v2216_v32  ;;  %v2284_v57 = vadd.f32 %v1822_v55, %v1806_v34  ;;  %v2051_v55 = vld [vmem:[#allocation2] sm:$0xff] }
 0x18f   : > { %v2156_v51 = vrot.slane %v2155_v39, 1  ;;  %v2198_v58 = vrot.slane %v2197_v45, 1  ;;  %v2445_v52 = vrot.slane %v2437_v49, %v3571_v54 }
 0x190   : > { %v2177_v59 = vrot.slane %v2176_v47, 1  ;;  %v1387_v53 = vpop.f32.mrb[68].mxu0  ;;  %v2219_v62 = vrot.slane %v2218_v56, 1  ;;  %v1500_v0 = vpop.f32.mrb[68].mxu1 }
 0x191   : > { %v2157_v61 = vadd.f32 %v2156_v51, %v2155_v39  ;;  %v1835_v63 = vmax.f32 %v1387_v53, 0.0  ;;  %v1389_v1 = vpop.f32.mrb[69].mxu0  ;;  %v2199_v2 = vadd.f32 %v2198_v58, %v2197_v45  ;;  %v1837_v4 = vmax.f32 %v1500_v0, 0.0  ;;  %v1502_v6 = vpop.f32.mrb[69].mxu1 }
 0x192   : > { %v2178_v3 = vadd.f32 %v2177_v59, %v2176_v47  ;;  %v1836_v5 = vmax.f32 %v1389_v1, 0.0  ;;  %v1391_v7 = vpop.f32.mrb[70].mxu0  ;;  %v2220_v8 = vadd.f32 %v2219_v62, %v2218_v56  ;;  %v1838_v9 = vmax.f32 %v1502_v6, 0.0  ;;  %v1504_v12 = vpop.f32.mrb[70].mxu1 }
 0x193   : > { %v2222_v50 = vadd.f32 %v2221_v41, %v1835_v63  ;;  %v1851_v11 = vmax.f32 %v1391_v7, 0.0  ;;  %v1393_v13 = vpop.f32.mrb[71].mxu0  ;;  %v2264_v16 = vadd.f32 %v2263_v48, %v1837_v4  ;;  %v1853_v18 = vmax.f32 %v1504_v12, 0.0  ;;  %v1506_v19 = vpop.f32.mrb[71].mxu1 }
 0x194   : > { %v2407_v15 = vcombine.low %v2157_v61, %v2178_v3  ;;  %v2243_v17 = vadd.f32 %v2242_v33, %v1836_v5  ;;  %v2408_v20 = vcombine.low %v2199_v2, %v2220_v8  ;;  %v2285_v21 = vadd.f32 %v2284_v57, %v1838_v9 }
 0x195   : > { %v2223_v22 = vadd.f32 %v2222_v50, %v1851_v11  ;;  %v1852_v23 = vmax.f32 %v1393_v13, 0.0  ;;  %v2265_v10 = vadd.f32 %v2264_v16, %v1853_v18  ;;  %v1854_v25 = vmax.f32 %v1506_v19, 0.0 }
 0x196   : > { %v2429_v24 = vrot.slane %v2407_v15, %v3571_v54  ;;  %v2436_v26 = vrot.slane %v2408_v20, %v3571_v54 }
 0x197   : > { %v2244_v27 = vadd.f32 %v2243_v17, %v1852_v23  ;;  %v2286_v28 = vadd.f32 %v2285_v21, %v1854_v25 }
 0x198   : > { %v1397_v29 = vpop.f32.mrb[72].mxu0  ;;  %v2438_v30 = vcombine.low %v2429_v24, %v2436_v26  ;;  %v1510_v32 = vpop.f32.mrb[72].mxu1 }
 0x199   : > { %v1867_v31 = vmax.f32 %v1397_v29, 0.0  ;;  %v1399_v34 = vpop.f32.mrb[73].mxu0  ;;  %v1869_v35 = vmax.f32 %v1510_v32, 0.0  ;;  %v1512_v60 = vpop.f32.mrb[73].mxu1 }
 0x19a   : > { %v1868_v44 = vmax.f32 %v1399_v34, 0.0  ;;  %v1401_v36 = vpop.f32.mrb[74].mxu0  ;;  %v2452_v37 = vrot.slane %v2438_v30, %v3571_v54  ;;  %v1870_v14 = vmax.f32 %v1512_v60, 0.0  ;;  %v1514_v40 = vpop.f32.mrb[74].mxu1 }
 0x19b   : > { %v2224_v38 = vadd.f32 %v2223_v22, %v1867_v31  ;;  %v1883_v39 = vmax.f32 %v1401_v36, 0.0  ;;  %v1403_v41 = vpop.f32.mrb[75].mxu0  ;;  %v2266_v45 = vadd.f32 %v2265_v10, %v1869_v35  ;;  %v1885_v48 = vmax.f32 %v1514_v40, 0.0  ;;  %v1516_v51 = vpop.f32.mrb[75].mxu1 }
 0x19c   : > { %v2245_v47 = vadd.f32 %v2244_v27, %v1868_v44  ;;  %v1884_v33 = vmax.f32 %v1403_v41, 0.0  ;;  %v2453_v56 = vcombine.low %v2445_v52, %v2452_v37  ;;  %v2287_v42 = vadd.f32 %v2286_v28, %v1870_v14 }
 0x19d   : > { %v2225_v46 = vadd.f32 %v2224_v38, %v1883_v39  ;;  %v1886_v49 = vmax.f32 %v1516_v51, 0.0  ;;  %v2267_v57 = vadd.f32 %v2266_v45, %v1885_v48 }
 0x19e   : > { %v2246_v58 = vadd.f32 %v2245_v47, %v1884_v33  ;;  %v2505_v59 = vadd.f32 %v2453_v56, %v2051_v55 }
 0x19f   : > { %v2288_v53 = vadd.f32 %v2287_v42, %v1886_v49 }
 0x1a0   : > { %v1407_v61 = vpop.f32.mrb[76].mxu0  ;;  %2507 = vst [vmem:[#allocation2] sm:$0xff] %v2505_v59  ;;  %v1520_v63 = vpop.f32.mrb[76].mxu1 }
 0x1a1   : > { %v1899_v62 = vmax.f32 %v1407_v61, 0.0  ;;  %v1409_v0 = vpop.f32.mrb[77].mxu0  ;;  %v1901_v1 = vmax.f32 %v1520_v63, 0.0  ;;  %v1522_v3 = vpop.f32.mrb[77].mxu1 }
 0x1a2   : > { %v1900_v2 = vmax.f32 %v1409_v0, 0.0  ;;  %v1411_v4 = vpop.f32.mrb[78].mxu0  ;;  %v1902_v6 = vmax.f32 %v1522_v3, 0.0  ;;  %v1524_v8 = vpop.f32.mrb[78].mxu1 }
 0x1a3   : > { %v2226_v5 = vadd.f32 %v2225_v46, %v1899_v62  ;;  %v1915_v7 = vmax.f32 %v1411_v4, 0.0  ;;  %v1413_v50 = vpop.f32.mrb[79].mxu0  ;;  %v2268_v9 = vadd.f32 %v2267_v57, %v1901_v1  ;;  %v1917_v12 = vmax.f32 %v1524_v8, 0.0  ;;  %v1526_v15 = vpop.f32.mrb[79].mxu1 }
 0x1a4   : > { %v2247_v11 = vadd.f32 %v2246_v58, %v1900_v2  ;;  %v1916_v13 = vmax.f32 %v1413_v50, 0.0  ;;  %v2289_v16 = vadd.f32 %v2288_v53, %v1902_v6  ;;  %v1918_v18 = vmax.f32 %v1526_v15, 0.0 }
 0x1a5   : > { %v2227_v17 = vadd.f32 %v2226_v5, %v1915_v7  ;;  %v2269_v19 = vadd.f32 %v2268_v9, %v1917_v12 }
 0x1a6   : > { %v2248_v20 = vadd.f32 %v2247_v11, %v1916_v13  ;;  %v2290_v21 = vadd.f32 %v2289_v16, %v1918_v18 }
 0x1a8   : > { %v1417_v22 = vpop.f32.mrb[80].mxu0  ;;  %v1530_v24 = vpop.f32.mrb[80].mxu1 }
 0x1a9   : > { %v1931_v23 = vmax.f32 %v1417_v22, 0.0  ;;  %v1419_v10 = vpop.f32.mrb[81].mxu0  ;;  %v1933_v25 = vmax.f32 %v1530_v24, 0.0  ;;  %v1532_v27 = vpop.f32.mrb[81].mxu1 }
 0x1aa   : > { %v1932_v26 = vmax.f32 %v1419_v10, 0.0  ;;  %v1421_v28 = vpop.f32.mrb[82].mxu0  ;;  %v1934_v30 = vmax.f32 %v1532_v27, 0.0  ;;  %v1534_v32 = vpop.f32.mrb[82].mxu1 }
 0x1ab   : > { %v2228_v29 = vadd.f32 %v2227_v17, %v1931_v23  ;;  %v1947_v31 = vmax.f32 %v1421_v28, 0.0  ;;  %v1423_v34 = vpop.f32.mrb[83].mxu0  ;;  %v2270_v52 = vadd.f32 %v2269_v19, %v1933_v25  ;;  %v1949_v44 = vmax.f32 %v1534_v32, 0.0  ;;  %v1536_v36 = vpop.f32.mrb[83].mxu1 }
 0x1ac   : > { %v2249_v35 = vadd.f32 %v2248_v20, %v1932_v26  ;;  %v1948_v60 = vmax.f32 %v1423_v34, 0.0  ;;  %v2291_v37 = vadd.f32 %v2290_v21, %v1934_v30  ;;  %v1950_v14 = vmax.f32 %v1536_v36, 0.0 }
 0x1ad   : > { %v2229_v38 = vadd.f32 %v2228_v29, %v1947_v31  ;;  %v2271_v39 = vadd.f32 %v2270_v52, %v1949_v44 }
 0x1ae   : > { %v2250_v40 = vadd.f32 %v2249_v35, %v1948_v60  ;;  %v2292_v41 = vadd.f32 %v2291_v37, %v1950_v14 }
 0x1b0   : > { %v1427_v55 = vpop.f32.mrb[84].mxu0  ;;  %v1540_v47 = vpop.f32.mrb[84].mxu1 }
 0x1b1   : > { %v1963_v45 = vmax.f32 %v1427_v55, 0.0  ;;  %v1429_v48 = vpop.f32.mrb[85].mxu0  ;;  %v1965_v33 = vmax.f32 %v1540_v47, 0.0  ;;  %v1542_v56 = vpop.f32.mrb[85].mxu1 }
 0x1b2   : > { %v1964_v51 = vmax.f32 %v1429_v48, 0.0  ;;  %v1431_v42 = vpop.f32.mrb[86].mxu0  ;;  %v1966_v49 = vmax.f32 %v1542_v56, 0.0  ;;  %v1544_v58 = vpop.f32.mrb[86].mxu1 }
 0x1b3   : > { %v2230_v46 = vadd.f32 %v2229_v38, %v1963_v45  ;;  %v1979_v57 = vmax.f32 %v1431_v42, 0.0  ;;  %v1433_v59 = vpop.f32.mrb[87].mxu0  ;;  %v2272_v53 = vadd.f32 %v2271_v39, %v1965_v33  ;;  %v1981_v62 = vmax.f32 %v1544_v58, 0.0  ;;  %v1546_v0 = vpop.f32.mrb[87].mxu1 }
 0x1b4   : > { %v2251_v61 = vadd.f32 %v2250_v40, %v1964_v51  ;;  %v1980_v63 = vmax.f32 %v1433_v59, 0.0  ;;  %v2293_v1 = vadd.f32 %v2292_v41, %v1966_v49  ;;  %v1982_v3 = vmax.f32 %v1546_v0, 0.0 }
 0x1b5   : > { %v2231_v2 = vadd.f32 %v2230_v46, %v1979_v57  ;;  %v2273_v4 = vadd.f32 %v2272_v53, %v1981_v62 }
 0x1b6   : > { %v2252_v5 = vadd.f32 %v2251_v61, %v1980_v63  ;;  %v2294_v6 = vadd.f32 %v2293_v1, %v1982_v3 }
 0x1b8   : > { %v1437_v7 = vpop.f32.mrb[88].mxu0  ;;  %v1550_v50 = vpop.f32.mrb[88].mxu1 }
 0x1b9   : > { %v1995_v8 = vmax.f32 %v1437_v7, 0.0  ;;  %v1439_v9 = vpop.f32.mrb[89].mxu0  ;;  %v1997_v11 = vmax.f32 %v1550_v50, 0.0  ;;  %v1552_v13 = vpop.f32.mrb[89].mxu1 }
 0x1ba   : > { %v1996_v12 = vmax.f32 %v1439_v9, 0.0  ;;  %v1441_v15 = vpop.f32.mrb[90].mxu0  ;;  %v1998_v17 = vmax.f32 %v1552_v13, 0.0  ;;  %v1554_v19 = vpop.f32.mrb[90].mxu1 }
 0x1bb   : > { %v2232_v16 = vadd.f32 %v2231_v2, %v1995_v8  ;;  %v2011_v18 = vmax.f32 %v1441_v15, 0.0  ;;  %v1443_v20 = vpop.f32.mrb[91].mxu0  ;;  %v2274_v21 = vadd.f32 %v2273_v4, %v1997_v11  ;;  %v2013_v23 = vmax.f32 %v1554_v19, 0.0  ;;  %v1556_v10 = vpop.f32.mrb[91].mxu1 }
 0x1bc   : > { %v2253_v22 = vadd.f32 %v2252_v5, %v1996_v12  ;;  %v2012_v24 = vmax.f32 %v1443_v20, 0.0  ;;  %v2295_v25 = vadd.f32 %v2294_v6, %v1998_v17  ;;  %v2014_v27 = vmax.f32 %v1556_v10, 0.0 }
 0x1bd   : > { %v2233_v26 = vadd.f32 %v2232_v16, %v2011_v18  ;;  %v2275_v28 = vadd.f32 %v2274_v21, %v2013_v23 }
 0x1be   : > { %v2254_v29 = vadd.f32 %v2253_v22, %v2012_v24  ;;  %v2296_v30 = vadd.f32 %v2295_v25, %v2014_v27 }
 0x1c0   : > { %v1447_v31 = vpop.f32.mrb[92].mxu0  ;;  %v1560_v34 = vpop.f32.mrb[92].mxu1 }
 0x1c1   : > { %v2027_v32 = vmax.f32 %v1447_v31, 0.0  ;;  %v1449_v52 = vpop.f32.mrb[93].mxu0  ;;  %v2029_v35 = vmax.f32 %v1560_v34, 0.0  ;;  %v1562_v60 = vpop.f32.mrb[93].mxu1 }
 0x1c2   : > { %v2028_v44 = vmax.f32 %v1449_v52, 0.0  ;;  %v1451_v36 = vpop.f32.mrb[94].mxu0  ;;  %v2030_v38 = vmax.f32 %v1562_v60, 0.0  ;;  %v1564_v39 = vpop.f32.mrb[94].mxu1 }
 0x1c3   : > { %v2234_v37 = vadd.f32 %v2233_v26, %v2027_v32  ;;  %v2043_v14 = vmax.f32 %v1451_v36, 0.0  ;;  %v1453_v40 = vpop.f32.mrb[95].mxu0  ;;  %v2276_v41 = vadd.f32 %v2275_v28, %v2029_v35  ;;  %v2045_v45 = vmax.f32 %v1564_v39, 0.0  ;;  %v1566_v48 = vpop.f32.mrb[95].mxu1 }
 0x1c4   : > { %v2255_v55 = vadd.f32 %v2254_v29, %v2028_v44  ;;  %v2044_v47 = vmax.f32 %v1453_v40, 0.0  ;;  %v2297_v33 = vadd.f32 %v2296_v30, %v2030_v38  ;;  %v2046_v56 = vmax.f32 %v1566_v48, 0.0 }
 0x1c5   : > { %v2235_v51 = vadd.f32 %v2234_v37, %v2043_v14  ;;  %v2277_v42 = vadd.f32 %v2276_v41, %v2045_v45 }
 0x1c6   : > { %v2256_v46 = vadd.f32 %v2255_v55, %v2044_v47  ;;  %v2298_v57 = vadd.f32 %v2297_v33, %v2046_v56 }
 0x1c7   : > { %v2236_v49 = vrot.slane %v2235_v51, 4  ;;  %v2278_v58 = vrot.slane %v2277_v42, 4 }
 0x1c8   : > { %v2257_v59 = vrot.slane %v2256_v46, 4  ;;  %v1603_v53 = vpop.f32.mrb[96].mxu0  ;;  %v2299_v62 = vrot.slane %v2298_v57, 4  ;;  %v1716_v0 = vpop.f32.mrb[96].mxu1 }
 0x1c9   : > { %v2237_v61 = vadd.f32 %v2236_v49, %v2235_v51  ;;  %v1807_v63 = vmax.f32 %v1603_v53, 0.0  ;;  %v1605_v1 = vpop.f32.mrb[97].mxu0  ;;  %v2279_v2 = vadd.f32 %v2278_v58, %v2277_v42  ;;  %v1809_v4 = vmax.f32 %v1716_v0, 0.0  ;;  %v1718_v6 = vpop.f32.mrb[97].mxu1 }
 0x1ca   : > { %v2258_v3 = vadd.f32 %v2257_v59, %v2256_v46  ;;  %v1808_v5 = vmax.f32 %v1605_v1, 0.0  ;;  %v1607_v7 = vpop.f32.mrb[98].mxu0  ;;  %v2300_v50 = vadd.f32 %v2299_v62, %v2298_v57  ;;  %v1810_v9 = vmax.f32 %v1718_v6, 0.0  ;;  %v1720_v12 = vpop.f32.mrb[98].mxu1 }
 0x1cb   : > { %v2238_v8 = vrot.slane %v2237_v61, 2  ;;  %v1823_v11 = vmax.f32 %v1607_v7, 0.0  ;;  %v1609_v13 = vpop.f32.mrb[99].mxu0  ;;  %v2280_v15 = vrot.slane %v2279_v2, 2  ;;  %v1825_v17 = vmax.f32 %v1720_v12, 0.0  ;;  %v1722_v19 = vpop.f32.mrb[99].mxu1 }
 0x1cc   : > { %v2259_v16 = vrot.slane %v2258_v3, 2  ;;  %v1824_v18 = vmax.f32 %v1609_v13, 0.0  ;;  %v2301_v21 = vrot.slane %v2300_v50, 2  ;;  %v1826_v23 = vmax.f32 %v1722_v19, 0.0 }
 0x1cd   : > { %v2239_v20 = vadd.f32 %v2238_v8, %v2237_v61  ;;  %v2305_v22 = vadd.f32 %v1823_v11, %v1807_v63  ;;  %v2281_v24 = vadd.f32 %v2280_v15, %v2279_v2  ;;  %v2347_v25 = vadd.f32 %v1825_v17, %v1809_v4 }
 0x1ce   : > { %v2260_v10 = vadd.f32 %v2259_v16, %v2258_v3  ;;  %v2326_v26 = vadd.f32 %v1824_v18, %v1808_v5  ;;  %v2302_v28 = vadd.f32 %v2301_v21, %v2300_v50  ;;  %v2368_v29 = vadd.f32 %v1826_v23, %v1810_v9 }
 0x1cf   : > { %v2240_v27 = vrot.slane %v2239_v20, 1  ;;  %v2282_v30 = vrot.slane %v2281_v24, 1 }
 0x1d0   : > { %v2261_v31 = vrot.slane %v2260_v10, 1  ;;  %v1613_v32 = vpop.f32.mrb[100].mxu0  ;;  %v2303_v52 = vrot.slane %v2302_v28, 1  ;;  %v1726_v44 = vpop.f32.mrb[100].mxu1 }
 0x1d1   : > { %v2241_v34 = vadd.f32 %v2240_v27, %v2239_v20  ;;  %v1839_v35 = vmax.f32 %v1613_v32, 0.0  ;;  %v1615_v60 = vpop.f32.mrb[101].mxu0  ;;  %v2283_v36 = vadd.f32 %v2282_v30, %v2281_v24  ;;  %v1841_v38 = vmax.f32 %v1726_v44, 0.0  ;;  %v1728_v39 = vpop.f32.mrb[101].mxu1 }
 0x1d2   : > { %v2262_v37 = vadd.f32 %v2261_v31, %v2260_v10  ;;  %v1840_v14 = vmax.f32 %v1615_v60, 0.0  ;;  %v1617_v40 = vpop.f32.mrb[102].mxu0  ;;  %v2304_v41 = vadd.f32 %v2303_v52, %v2302_v28  ;;  %v1842_v45 = vmax.f32 %v1728_v39, 0.0  ;;  %v1730_v48 = vpop.f32.mrb[102].mxu1 }
 0x1d3   : > { %v2306_v55 = vadd.f32 %v2305_v22, %v1839_v35  ;;  %v1855_v47 = vmax.f32 %v1617_v40, 0.0  ;;  %v1619_v33 = vpop.f32.mrb[103].mxu0  ;;  %v2348_v56 = vadd.f32 %v2347_v25, %v1841_v38  ;;  %v1857_v46 = vmax.f32 %v1730_v48, 0.0  ;;  %v1732_v49 = vpop.f32.mrb[103].mxu1 }
 0x1d4   : > { %v2454_v51 = vcombine.low %v2241_v34, %v2262_v37  ;;  %v2327_v42 = vadd.f32 %v2326_v26, %v1840_v14  ;;  %v2455_v57 = vcombine.low %v2283_v36, %v2304_v41  ;;  %v2369_v58 = vadd.f32 %v2368_v29, %v1842_v45 }
 0x1d5   : > { %v2307_v59 = vadd.f32 %v2306_v55, %v1855_v47  ;;  %v1856_v53 = vmax.f32 %v1619_v33, 0.0  ;;  %v2349_v62 = vadd.f32 %v2348_v56, %v1857_v46  ;;  %v1858_v63 = vmax.f32 %v1732_v49, 0.0 }
 0x1d6   : > { %v3589_v61 = vrot.slane %v2454_v51, %v3571_v54  ;;  %v3592_v0 = vrot.slane %v2455_v57, %v3571_v54 }
 0x1d7   : > { %v2328_v1 = vadd.f32 %v2327_v42, %v1856_v53  ;;  %v2370_v2 = vadd.f32 %v2369_v58, %v1858_v63 }
 0x1d8   : > { %v1623_v3 = vpop.f32.mrb[104].mxu0  ;;  %v2486_v4 = vcombine.low %v3589_v61, %v3592_v0  ;;  %v1736_v6 = vpop.f32.mrb[104].mxu1  ;;  %v2529_v61 = vsub.s32 (!%p2881_p8), 1, %v3568_v43  ;;  %v2533_v0 = vsub.s32 (!%p2881_p8), 2, %v3568_v43 }
 0x1d9   : > { %v1871_v5 = vmax.f32 %v1623_v3, 0.0  ;;  %v1625_v7 = vpop.f32.mrb[105].mxu0  ;;  %v1873_v8 = vmax.f32 %v1736_v6, 0.0  ;;  %v1738_v9 = vpop.f32.mrb[105].mxu1 }
 0x1da   : > { %v1872_v50 = vmax.f32 %v1625_v7, 0.0  ;;  %v1627_v11 = vpop.f32.mrb[106].mxu0  ;;  %v1874_v13 = vmax.f32 %v1738_v9, 0.0  ;;  %v1740_v16 = vpop.f32.mrb[106].mxu1 }
 0x1db   : > { %v2308_v12 = vadd.f32 %v2307_v59, %v1871_v5  ;;  %v1887_v15 = vmax.f32 %v1627_v11, 0.0  ;;  %v1629_v17 = vpop.f32.mrb[107].mxu0  ;;  %v2350_v18 = vadd.f32 %v2349_v62, %v1873_v8  ;;  %v1889_v20 = vmax.f32 %v1740_v16, 0.0  ;;  %v1742_v22 = vpop.f32.mrb[107].mxu1 }
 0x1dc   : > { %v2329_v19 = vadd.f32 %v2328_v1, %v1872_v50  ;;  %v1888_v21 = vmax.f32 %v1629_v17, 0.0  ;;  %v2371_v23 = vadd.f32 %v2370_v2, %v1874_v13  ;;  %v1890_v10 = vmax.f32 %v1742_v22, 0.0 }
 0x1dd   : > { %v2309_v24 = vadd.f32 %v2308_v12, %v1887_v15  ;;  %v2351_v25 = vadd.f32 %v2350_v18, %v1889_v20 }
 0x1de   : > { %v2330_v26 = vadd.f32 %v2329_v19, %v1888_v21  ;;  %v2372_v27 = vadd.f32 %v2371_v23, %v1890_v10 }
 0x1e0   : > { %v1633_v28 = vpop.f32.mrb[108].mxu0  ;;  %v1746_v30 = vpop.f32.mrb[108].mxu1 }
 0x1e1   : > { %v1903_v29 = vmax.f32 %v1633_v28, 0.0  ;;  %v1635_v31 = vpop.f32.mrb[109].mxu0  ;;  %v1905_v32 = vmax.f32 %v1746_v30, 0.0  ;;  %v1748_v52 = vpop.f32.mrb[109].mxu1 }
 0x1e2   : > { %v1904_v34 = vmax.f32 %v1635_v31, 0.0  ;;  %v1637_v35 = vpop.f32.mrb[110].mxu0  ;;  %v1906_v60 = vmax.f32 %v1748_v52, 0.0  ;;  %v1750_v37 = vpop.f32.mrb[110].mxu1 }
 0x1e3   : > { %v2310_v44 = vadd.f32 %v2309_v24, %v1903_v29  ;;  %v1919_v36 = vmax.f32 %v1637_v35, 0.0  ;;  %v1639_v38 = vpop.f32.mrb[111].mxu0  ;;  %v2352_v14 = vadd.f32 %v2351_v25, %v1905_v32  ;;  %v1921_v40 = vmax.f32 %v1750_v37, 0.0  ;;  %v1752_v55 = vpop.f32.mrb[111].mxu1 }
 0x1e4   : > { %v2331_v39 = vadd.f32 %v2330_v26, %v1904_v34  ;;  %v1920_v41 = vmax.f32 %v1639_v38, 0.0  ;;  %v2373_v45 = vadd.f32 %v2372_v27, %v1906_v60  ;;  %v1922_v48 = vmax.f32 %v1752_v55, 0.0 }
 0x1e5   : > { %v2311_v47 = vadd.f32 %v2310_v44, %v1919_v36  ;;  %v2353_v33 = vadd.f32 %v2352_v14, %v1921_v40 }
 0x1e6   : > { %v2332_v51 = vadd.f32 %v2331_v39, %v1920_v41  ;;  %v2374_v56 = vadd.f32 %v2373_v45, %v1922_v48 }
 0x1e8   : > { %v1643_v42 = vpop.f32.mrb[112].mxu0  ;;  %v1756_v49 = vpop.f32.mrb[112].mxu1 }
 0x1e9   : > { %v1935_v46 = vmax.f32 %v1643_v42, 0.0  ;;  %v1645_v57 = vpop.f32.mrb[113].mxu0  ;;  %v1937_v58 = vmax.f32 %v1756_v49, 0.0  ;;  %v1758_v53 = vpop.f32.mrb[113].mxu1 }
 0x1ea   : > { %v1936_v59 = vmax.f32 %v1645_v57, 0.0  ;;  %v1647_v62 = vpop.f32.mrb[114].mxu0  ;;  %v1938_v1 = vmax.f32 %v1758_v53, 0.0  ;;  %v1760_v3 = vpop.f32.mrb[114].mxu1 }
 0x1eb   : > { %v2312_v63 = vadd.f32 %v2311_v47, %v1935_v46  ;;  %v1951_v2 = vmax.f32 %v1647_v62, 0.0  ;;  %v1649_v5 = vpop.f32.mrb[115].mxu0  ;;  %v2354_v6 = vadd.f32 %v2353_v33, %v1937_v58  ;;  %v1953_v8 = vmax.f32 %v1760_v3, 0.0  ;;  %v1762_v9 = vpop.f32.mrb[115].mxu1 }
 0x1ec   : > { %v2333_v7 = vadd.f32 %v2332_v51, %v1936_v59  ;;  %v1952_v50 = vmax.f32 %v1649_v5, 0.0  ;;  %v2375_v11 = vadd.f32 %v2374_v56, %v1938_v1  ;;  %v1954_v13 = vmax.f32 %v1762_v9, 0.0 }
 0x1ed   : > { %v2313_v12 = vadd.f32 %v2312_v63, %v1951_v2  ;;  %v2355_v15 = vadd.f32 %v2354_v6, %v1953_v8 }
 0x1ee   : > { %v2334_v16 = vadd.f32 %v2333_v7, %v1952_v50  ;;  %v2376_v17 = vadd.f32 %v2375_v11, %v1954_v13 }
 0x1f0   : > { %v1653_v18 = vpop.f32.mrb[116].mxu0  ;;  %v1766_v20 = vpop.f32.mrb[116].mxu1 }
 0x1f1   : > { %v1967_v19 = vmax.f32 %v1653_v18, 0.0  ;;  %v1655_v21 = vpop.f32.mrb[117].mxu0  ;;  %v1969_v22 = vmax.f32 %v1766_v20, 0.0  ;;  %v1768_v24 = vpop.f32.mrb[117].mxu1 }
 0x1f2   : > { %v1968_v23 = vmax.f32 %v1655_v21, 0.0  ;;  %v1657_v10 = vpop.f32.mrb[118].mxu0  ;;  %v1970_v26 = vmax.f32 %v1768_v24, 0.0  ;;  %v1770_v28 = vpop.f32.mrb[118].mxu1 }
 0x1f3   : > { %v2314_v25 = vadd.f32 %v2313_v12, %v1967_v19  ;;  %v1983_v27 = vmax.f32 %v1657_v10, 0.0  ;;  %v1659_v29 = vpop.f32.mrb[119].mxu0  ;;  %v2356_v30 = vadd.f32 %v2355_v15, %v1969_v22  ;;  %v1985_v32 = vmax.f32 %v1770_v28, 0.0  ;;  %v1772_v52 = vpop.f32.mrb[119].mxu1 }
 0x1f4   : > { %v2335_v31 = vadd.f32 %v2334_v16, %v1968_v23  ;;  %v1984_v34 = vmax.f32 %v1659_v29, 0.0  ;;  %v2377_v35 = vadd.f32 %v2376_v17, %v1970_v26  ;;  %v1986_v60 = vmax.f32 %v1772_v52, 0.0 }
 0x1f5   : > { %v2315_v44 = vadd.f32 %v2314_v25, %v1983_v27  ;;  %v2357_v36 = vadd.f32 %v2356_v30, %v1985_v32 }
 0x1f6   : > { %v2336_v37 = vadd.f32 %v2335_v31, %v1984_v34  ;;  %v2378_v38 = vadd.f32 %v2377_v35, %v1986_v60 }
 0x1f8   : > { %v1663_v14 = vpop.f32.mrb[120].mxu0  ;;  %v1776_v40 = vpop.f32.mrb[120].mxu1 }
 0x1f9   : > { %v1999_v39 = vmax.f32 %v1663_v14, 0.0  ;;  %v1665_v41 = vpop.f32.mrb[121].mxu0  ;;  %v2001_v55 = vmax.f32 %v1776_v40, 0.0  ;;  %v1778_v47 = vpop.f32.mrb[121].mxu1 }
 0x1fa   : > { %v2000_v45 = vmax.f32 %v1665_v41, 0.0  ;;  %v1667_v48 = vpop.f32.mrb[122].mxu0  ;;  %v2002_v51 = vmax.f32 %v1778_v47, 0.0  ;;  %v1780_v42 = vpop.f32.mrb[122].mxu1 }
 0x1fb   : > { %v2316_v33 = vadd.f32 %v2315_v44, %v1999_v39  ;;  %v2015_v56 = vmax.f32 %v1667_v48, 0.0  ;;  %v1669_v46 = vpop.f32.mrb[123].mxu0  ;;  %v2358_v49 = vadd.f32 %v2357_v36, %v2001_v55  ;;  %v2017_v58 = vmax.f32 %v1780_v42, 0.0  ;;  %v1782_v53 = vpop.f32.mrb[123].mxu1 }
 0x1fc   : > { %v2337_v57 = vadd.f32 %v2336_v37, %v2000_v45  ;;  %v2016_v59 = vmax.f32 %v1669_v46, 0.0  ;;  %v2379_v62 = vadd.f32 %v2378_v38, %v2002_v51  ;;  %v2018_v1 = vmax.f32 %v1782_v53, 0.0 }
 0x1fd   : > { %v2317_v63 = vadd.f32 %v2316_v33, %v2015_v56  ;;  %v2359_v2 = vadd.f32 %v2358_v49, %v2017_v58 }
 0x1fe   : > { %v2338_v3 = vadd.f32 %v2337_v57, %v2016_v59  ;;  %v2380_v5 = vadd.f32 %v2379_v62, %v2018_v1  ;;  %v2494_v62 = vrot.slane %v2486_v4, %v3571_v54  ;;  %v2052_v1 = vld [vmem:[#allocation2 + $0x8] sm:$0xff]  ;;  %v2537_v4 = vsub.s32 (!%p2881_p8), 3, %v3568_v43 }
 0x200   : > { %v1673_v6 = vpop.f32.mrb[124].mxu0  ;;  %v1786_v8 = vpop.f32.mrb[124].mxu1 }
 0x201   : > { %v2031_v7 = vmax.f32 %v1673_v6, 0.0  ;;  %v1675_v50 = vpop.f32.mrb[125].mxu0  ;;  %v2033_v9 = vmax.f32 %v1786_v8, 0.0  ;;  %v1788_v12 = vpop.f32.mrb[125].mxu1  ;;  %v2517_v6 = vld [vmem:[%s3656_s2] sm:$0xff] (!%p2881_p8)  ;;  %v2525_v8 = vsub.s32 (!%p2881_p8), 0, %v3568_v43 }
 0x202   : > { %v2032_v11 = vmax.f32 %v1675_v50, 0.0  ;;  %v1677_v13 = vpop.f32.mrb[126].mxu0  ;;  %v2034_v16 = vmax.f32 %v1788_v12, 0.0  ;;  %v1790_v18 = vpop.f32.mrb[126].mxu1 }
 0x203   : > { %v2318_v15 = vadd.f32 %v2317_v63, %v2031_v7  ;;  %v2047_v17 = vmax.f32 %v1677_v13, 0.0  ;;  %v1679_v19 = vpop.f32.mrb[127].mxu0  ;;  %v2360_v20 = vadd.f32 %v2359_v2, %v2033_v9  ;;  %v2049_v22 = vmax.f32 %v1790_v18, 0.0  ;;  %v1792_v24 = vpop.f32.mrb[127].mxu1 }
 0x204   : > { %v2339_v21 = vadd.f32 %v2338_v3, %v2032_v11  ;;  %v2048_v23 = vmax.f32 %v1679_v19, 0.0  ;;  %v2381_v10 = vadd.f32 %v2380_v5, %v2034_v16  ;;  %v2050_v26 = vmax.f32 %v1792_v24, 0.0  ;;  %v2513_v5 = vld [vmem:[#allocation2] sm:$0xff] (!%p2881_p8) }
 0x205   : > { %v2319_v25 = vadd.f32 %v2318_v15, %v2047_v17  ;;  %v2361_v27 = vadd.f32 %v2360_v20, %v2049_v22  ;;  %v2515_v7 = vmul.f32 (!%p2881_p8), 0.0044444446, %v2513_v5  ;;  %v2541_v13 = vsub.s32 (!%p2881_p8), 4, %v3568_v43 }
 0x206   : > { %v2340_v28 = vadd.f32 %v2339_v21, %v2048_v23  ;;  %v2382_v30 = vadd.f32 %v2381_v10, %v2050_v26  ;;  %v2545_v16 = vsub.s32 (!%p2881_p8), 5, %v3568_v43  ;;  %v2549_v18 = vsub.s32 (!%p2881_p8), 6, %v3568_v43  ;;  %v2518_v23 = vld [vmem:[%s3656_s2 + $0x8] sm:$0xff] (!%p2881_p8) }
 0x207   : > { %v2320_v29 = vrot.slane %v2319_v25, 4  ;;  %v2362_v31 = vrot.slane %v2361_v27, 4 }
 0x208   : > { %v2341_v32 = vrot.slane %v2340_v28, 4  ;;  %v2383_v52 = vrot.slane %v2382_v30, 4 }
 0x209   : > { %v2321_v34 = vadd.f32 %v2320_v29, %v2319_v25  ;;  %v2363_v35 = vadd.f32 %v2362_v31, %v2361_v27  ;;  %v2553_v25 = vsub.s32 (!%p2881_p8), 7, %v3568_v43 }
 0x20a   : > { %v2342_v44 = vadd.f32 %v2341_v32, %v2340_v28  ;;  %v2384_v36 = vadd.f32 %v2383_v52, %v2382_v30 }
 0x20b   : > { %v2322_v60 = vrot.slane %v2321_v34, 2  ;;  %v2364_v37 = vrot.slane %v2363_v35, 2 }
 0x20c   : > { %v2343_v38 = vrot.slane %v2342_v44, 2  ;;  %v2385_v39 = vrot.slane %v2384_v36, 2 }
 0x20d   : > { %v2323_v14 = vadd.f32 %v2322_v60, %v2321_v34  ;;  %v2365_v40 = vadd.f32 %v2364_v37, %v2363_v35 }
 0x20e   : > { %v2344_v41 = vadd.f32 %v2343_v38, %v2342_v44  ;;  %v2386_v45 = vadd.f32 %v2385_v39, %v2384_v36 }
 0x20f   : > { %v2324_v55 = vrot.slane %v2323_v14, 1  ;;  %v2366_v47 = vrot.slane %v2365_v40, 1 }
 0x210   : > { %v2345_v48 = vrot.slane %v2344_v41, 1  ;;  %v2387_v51 = vrot.slane %v2386_v45, 1 }
 0x211   : > { %v2325_v33 = vadd.f32 %v2324_v55, %v2323_v14  ;;  %v2367_v56 = vadd.f32 %v2366_v47, %v2365_v40 }
 0x212   : > { %v2346_v42 = vadd.f32 %v2345_v48, %v2344_v41  ;;  %v2388_v46 = vadd.f32 %v2387_v51, %v2386_v45 }
 0x214   : > { %v2456_v49 = vcombine.low %v2325_v33, %v2346_v42  ;;  %v2457_v57 = vcombine.low %v2367_v56, %v2388_v46 }
 0x216   : > { %v2478_v58 = vrot.slane %v2456_v49, %v3571_v54  ;;  %v2485_v59 = vrot.slane %v2457_v57, %v3571_v54 }
 0x218   : > { %v2487_v53 = vcombine.low %v2478_v58, %v2485_v59 }
 0x21a   : > { %v2501_v63 = vrot.slane %v2487_v53, %v3571_v54  ;;  %2512 = sbr.rel (%p2881_p8) target bundleno = 720 (0x2d0), region = 44  ;;  %v2519_v54 = vmul.f32 (!%p2881_p8), %v2517_v6, %v2515_v7 }
 0x21c   : > { %v2502_v2 = vcombine.low %v2494_v62, %v2501_v63  ;;  %v2526_v9 = vrot.slane (!%p2881_p8), %v2519_v54, %v2525_v8  ;;  %v2530_v11 = vrot.slane (!%p2881_p8), %v2519_v54, %v2529_v61  ;;  %v2534_v12 = vrot.slane (!%p2881_p8), %v2519_v54, %v2533_v0 }
 0x21d   : > { %v2538_v15 = vrot.slane (!%p2881_p8), %v2519_v54, %v2537_v4  ;;  %v2542_v19 = vrot.slane (!%p2881_p8), %v2519_v54, %v2541_v13  ;;  %v2546_v10 = vrot.slane (!%p2881_p8), %v2519_v54, %v2545_v16  ;;  %v2550_v29 = vrot.slane (!%p2881_p8), %v2519_v54, %v2549_v18 }
 0x21e   : > { %v2506_v3 = vadd.f32 %v2502_v2, %v2052_v1  ;;  %v2603_v20 = vsel (!%p2881_p8), %vm840_vm0, %v2526_v9, 0.0  ;;  %v2604_v21 = vsel (!%p2881_p8), %vm840_vm0, %v2530_v11, 0.0  ;;  %v2606_v22 = vsel (!%p2881_p8), %vm840_vm0, %v2534_v12, 0.0 }
 0x21f   : > { %v2605_v24 = vadd.f32 (!%p2881_p8), %v2604_v21, %v2603_v20  ;;  %v2608_v26 = vsel (!%p2881_p8), %vm840_vm0, %v2538_v15, 0.0  ;;  %v2610_v30 = vsel (!%p2881_p8), %vm840_vm0, %v2542_v19, 0.0  ;;  %v2554_v32 = vrot.slane (!%p2881_p8), %v2519_v54, %v2553_v25 }
 0x220   : > { %2508 = vst [vmem:[#allocation2 + $0x8] sm:$0xff] %v2506_v3  ;;  %v2612_v34 = vsel (!%p2881_p8), %vm840_vm0, %v2546_v10, 0.0  ;;  %v2614_v44 = vsel (!%p2881_p8), %vm840_vm0, %v2550_v29, 0.0  ;;  %v2636_v3 = vld [vmem:[#allocation3] sm:$0x1] (!%p2881_p8) }
 0x221   : > { %v2607_v27 = vadd.f32 %v2606_v22, %v2605_v24  ;;  %v2616_v37 = vsel %vm840_vm0, %v2554_v32, 0.0 }
 0x223   : > { %v2609_v31 = vadd.f32 %v2608_v26, %v2607_v27 }
 0x225   : > { %v2611_v52 = vadd.f32 %v2610_v30, %v2609_v31 }
 0x227   : > { %v2514_v50 = vld [vmem:[#allocation2 + $0x8] sm:$0xff]  ;;  %v2613_v60 = vadd.f32 %v2612_v34, %v2611_v52 }
 0x228   : > { %v2516_v17 = vmul.f32 0.0044444446, %v2514_v50 }
 0x229   : > { %v2615_v43 = vadd.f32 %v2614_v44, %v2613_v60 }
 0x22a   : > { %v2520_v28 = vmul.f32 %v2518_v23, %v2516_v17 }
 0x22b   : > { %v2617_v39 = vadd.f32 %v2616_v37, %v2615_v43 }
 0x22c   : > { %v2558_v35 = vrot.slane %v2520_v28, %v2525_v8  ;;  %v2562_v36 = vrot.slane %v2520_v28, %v2529_v61  ;;  %v2566_v38 = vrot.slane %v2520_v28, %v2533_v0  ;;  %v2570_v40 = vrot.slane %v2520_v28, %v2537_v4 }
 0x22d   : > { %v2574_v45 = vrot.slane %v2520_v28, %v2541_v13  ;;  %v2578_v33 = vrot.slane %v2520_v28, %v2545_v16  ;;  %v2582_v42 = vrot.slane %v2520_v28, %v2549_v18  ;;  %v2586_v57 = vrot.slane %v2520_v28, %v2553_v25 }
 0x22e   : > { %v2618_v14 = vsel %vm840_vm0, %v2558_v35, 0.0  ;;  %v2620_v41 = vsel %vm840_vm0, %v2562_v36, 0.0  ;;  %v2622_v47 = vsel %vm840_vm0, %v2566_v38, 0.0  ;;  %v2624_v51 = vsel %vm840_vm0, %v2570_v40, 0.0 }
 0x22f   : > { %v2619_v55 = vadd.f32 %v2618_v14, %v2617_v39  ;;  %v2626_v46 = vsel %vm840_vm0, %v2574_v45, 0.0  ;;  %v2628_v58 = vsel %vm840_vm0, %v2578_v33, 0.0  ;;  %v2630_v53 = vsel %vm840_vm0, %v2582_v42, 0.0 }
 0x230   : > { %v2632_v63 = vsel %vm840_vm0, %v2586_v57, 0.0 }
 0x231   : > { %v2621_v48 = vadd.f32 %v2620_v41, %v2619_v55 }
 0x233   : > { %v2623_v56 = vadd.f32 %v2622_v47, %v2621_v48 }
 0x235   : > { %v2625_v49 = vadd.f32 %v2624_v51, %v2623_v56 }
 0x237   : > { %v2627_v59 = vadd.f32 %v2626_v46, %v2625_v49 }
 0x239   : > { %v2629_v62 = vadd.f32 %v2628_v58, %v2627_v59 }
 0x23b   : > { %v2631_v1 = vadd.f32 %v2630_v53, %v2629_v62 }
 0x23d   : > { %v2633_v2 = vadd.f32 %v2632_v63, %v2631_v1 }
 0x23f   : > { %2634 = vadd.xlane.f32.xlu0 %v2633_v2 }
 0x2cc   : > { %v2635_v5 = vpop.xlane.xlu0 %2634 }
 0x2cd   : > { %v2637_v6 = vadd.f32 %v2636_v3, %v2635_v5 }
 0x2cf   : > { %2639 = vst.msk [vmem:[%s223_s27] sm:$0x1] %vm2638_vm2, %v2637_v6 }
 0x2d0 PF: > { %s16_s21 = sadd.s32 1, %s2989_s21   ;;  %s3659_s17 = smov %s2981_s19 }
 0x2d1   : > { %p13_p9 = scmp.ge.s32.totalorder %s16_s21, 6   ;;  %s3660_s18 = smov %s2985_s20 }
 0x2d2   : > { %s3661_s19 = smov %s3664_s3  ;;  %s3662_s20 = smov %s3668_s22 }
 0x2d3   :  { %15 = sbr.rel (!%p13_p9) target bundleno = 3 (0x3), region = 74 }

</bundles_post_ra>
